<compile_context>
chip_gen: v6e
topology: v6e:2x2x1
jax: 0.10.0
libtpu: 0.0.40
codegen_flags: <defaults>
</compile_context>

<pallas_src>
import jax
import jax.numpy as jnp
from jax.experimental import pallas as pl
from jax.experimental.pallas import tpu as pltpu

# ----------------------------- sizes --------------------------------------
B = 8            # batch (8 fills every vreg sublane; same latency as B=2)
T = 8            # TIME_STEPS
D = 32           # INPUT_SIZE
F_CNN = 64       # Conv1d out channels (net1.output_features)
K_CNN = 3        # Conv1d kernel size (valid padding)
H_GRU = 64       # GRU hidden size; bidirectional -> net2.output_features = 2*H
H2 = 2 * H_GRU   # 128  (fused fwd|bwd state width; also one gate block width)
G6 = 6 * H_GRU   # 384  (3 gates x 2 directions)
FC_HID = 300
N_CLASSES = 2
MERGED = F_CNN + 2 * H_GRU       # 192 = fc1 input features
L_CONV = T - K_CNN + 1           # 6   = valid-conv output length


def _round_up(n, m):
    return ((n + m - 1) // m) * m


FC_PAD = _round_up(FC_HID, 128)      # 384
N_PAD = _round_up(N_CLASSES, 128)    # 128


def _vmem():
    return pl.BlockSpec(memory_space=pltpu.MemorySpace.VMEM)


# --------------------------- fused forward kernel ---------------------------
def fused_kernel(x1_ref, x2_ref, wc_ref, wgru_ref, w1_ref, w2_ref, w3_ref,
                 b_ref, out_ref):
    # All six bias rows arrive in one (8, FC_PAD) f32 array (single DMA).
    biases = b_ref[...]
    bc = biases[0:1, :F_CNN]                              # conv bias     (1, 64)
    bi = biases[1:2, :G6]                                 # GRU input bias + folded r/z recurrent bias
    bhn = jnp.broadcast_to(biases[2:3, :H2], (B, H2))     # n-gate recurrent bias (hoisted broadcast)
    b1 = biases[3:4, :FC_PAD]
    b2 = biases[4:5, :FC_PAD]
    b3 = biases[5:6, :N_PAD]

    # ---------------- net1: CNN branch ---------------------------------------
    # 3 per-tap matmuls + sublane-shifted accumulate (no lane-concat relayouts;
    # the tiny MXU pushes hide in the GRU recurrence's drain gaps).
    x1 = x1_ref[...].reshape(B * T, D)
    wc = wc_ref[...].astype(jnp.float32)                  # (K*D, F) bf16 -> f32
    taps = [jnp.dot(x1, wc[j * D:(j + 1) * D, :],
                    preferred_element_type=jnp.float32).reshape(B, T, F_CNN)
            for j in range(K_CNN)]
    conv = (taps[0][:, 0:L_CONV] + taps[1][:, 1:1 + L_CONV]
            + taps[2][:, 2:2 + L_CONV])                   # (B, L_CONV, F)
    conv = jnp.maximum(conv + bc, 0.0)
    cnn_out = jnp.max(conv, axis=1)                       # (B, F_CNN)

    # ---------------- net2: BiGRU branch --------------------------------------
    # Gate/lane layout (width G6=384): [r_f r_b | z_f z_b | n_f n_b]; each gate
    # block is 2H=128 lanes (fwd half then bwd half) so in-loop slices are
    # 128-lane aligned and the final concat(h_f, h_b) is free.
    wgru = wgru_ref[...].astype(jnp.float32)              # (D+2H, 6H)
    wi = wgru[0:D, :]                                     # (D, 6H)
    wh = wgru[D:, :]                                      # (2H, 6H) block-diagonal
    x2 = x2_ref[...].reshape(B * T, D)
    # Hoisted input projection + input bias (incl. folded r/z recurrent bias).
    gi_all = (jnp.dot(x2, wi, preferred_element_type=jnp.float32)
              + bi).reshape(B, T, G6)
    # Hoisted direction select: fwd lanes read time s, bwd lanes read T-1-s.
    fwd_lane = (jax.lax.broadcasted_iota(jnp.int32, (B, G6), 1) % H2) < H_GRU
    gis = [jnp.where(fwd_lane, gi_all[:, s, :], gi_all[:, T - 1 - s, :])
           for s in range(T)]

    h = jnp.zeros((B, H2), jnp.float32)                   # [h_f | h_b]
    for s in range(T):                                    # static full unroll
        gi = gis[s]
        gh = jnp.dot(h, wh, preferred_element_type=jnp.float32)
        r = jax.nn.sigmoid(gi[:, 0:H2] + gh[:, 0:H2])
        z = jax.nn.sigmoid(gi[:, H2:2 * H2] + gh[:, H2:2 * H2])
        n = jnp.tanh(gi[:, 2 * H2:] + r * (gh[:, 2 * H2:] + bhn))
        h = (1.0 - z) * n + z * h
    # h == concat(last forward hidden, last backward hidden)     (B, 2H)

    # ---------------- MLP head (fc1 row-split; lanes padded to 384/128) ------
    w1 = w1_ref[...].astype(jnp.float32)                  # (MERGED, FC_PAD)
    h1 = jnp.maximum(
        jnp.dot(cnn_out, w1[:F_CNN, :], preferred_element_type=jnp.float32)
        + jnp.dot(h, w1[F_CNN:, :], preferred_element_type=jnp.float32)
        + b1, 0.0)
    # TODO(synk): the PyTorch forward hook captures fc2's pre-ReLU output as a
    # side effect (self.inter_outputs); it is not part of the returned value
    # and is not emitted here.
    h2 = jnp.maximum(
        jnp.dot(h1, w2_ref[...].astype(jnp.float32),
                preferred_element_type=jnp.float32) + b2, 0.0)
    out_ref[...] = (jnp.dot(h2, w3_ref[...].astype(jnp.float32),
                            preferred_element_type=jnp.float32) + b3)


def classifiler_net_forward(packed, x1, x2):
    out_pad = pl.pallas_call(
        fused_kernel,
        out_shape=jax.ShapeDtypeStruct((B, N_PAD), jnp.float32),
        in_specs=[_vmem()] * 8,
        out_specs=_vmem(),
    )(x1, x2, packed["wc"], packed["w_gru"], packed["w1"], packed["w2"],
      packed["w3"], packed["biases"])
    return out_pad[:, :N_CLASSES]


# --------------------------- deterministic init -----------------------------
def init_params(key):
    """PyTorch-convention params: gate order (r,z,n), weights as (in, out)."""
    ks = iter(jax.random.split(key, 32))

    def uni(shape, fan_in):
        s = 1.0 / jnp.sqrt(jnp.float32(fan_in))
        return jax.random.uniform(next(ks), shape, jnp.float32, -s, s)

    return {
        "cnn_w": uni((K_CNN, D, F_CNN), K_CNN * D),
        "cnn_b": uni((1, F_CNN), K_CNN * D),
        "gru": {
            "wi_f": uni((D, 3 * H_GRU), H_GRU),
            "wh_f": uni((H_GRU, 3 * H_GRU), H_GRU),
            "bi_f": uni((1, 3 * H_GRU), H_GRU),
            "bh_f": uni((1, 3 * H_GRU), H_GRU),
            "wi_b": uni((D, 3 * H_GRU), H_GRU),
            "wh_b": uni((H_GRU, 3 * H_GRU), H_GRU),
            "bi_b": uni((1, 3 * H_GRU), H_GRU),
            "bh_b": uni((1, 3 * H_GRU), H_GRU),
        },
        "fc": {
            "w1": uni((MERGED, FC_HID), MERGED),
            "b1": uni((1, FC_HID), MERGED),
            "w2": uni((FC_HID, FC_HID), FC_HID),
            "b2": uni((1, FC_HID), FC_HID),
            "w3": uni((FC_HID, N_CLASSES), FC_HID),
            "b3": uni((1, N_CLASSES), FC_HID),
        },
    }


def quantize_weights(p):
    """Round matmul weights to bf16 (the kernel's storage dtype); biases stay
    f32.  Both the kernel and the reference then use identical weight values,
    so the correctness check can stay tight."""
    rb = lambda a: a.astype(jnp.bfloat16).astype(jnp.float32)
    g, f = p["gru"], p["fc"]
    return {
        "cnn_w": rb(p["cnn_w"]), "cnn_b": p["cnn_b"],
        "gru": {
            "wi_f": rb(g["wi_f"]), "wh_f": rb(g["wh_f"]),
            "bi_f": g["bi_f"], "bh_f": g["bh_f"],
            "wi_b": rb(g["wi_b"]), "wh_b": rb(g["wh_b"]),
            "bi_b": g["bi_b"], "bh_b": g["bh_b"],
        },
        "fc": {
            "w1": rb(f["w1"]), "b1": f["b1"],
            "w2": rb(f["w2"]), "b2": f["b2"],
            "w3": rb(f["w3"]), "b3": f["b3"],
        },
    }


def pack_params(p):
    """One-time repack into the fused-kernel layout (done outside the kernel).

    NOTE: all padded weight/bias lanes MUST be exact zeros (jnp.pad guarantees
    this here); nonzero pads would leak through fc2/fc3 because ReLU(0)=0 is
    what makes the lane padding inert.
    """
    H = H_GRU
    g = p["gru"]

    def gate(w, i):                      # gate i columns of a (.., 3H) tensor
        return w[:, i * H:(i + 1) * H]

    # Input weights, columns [r_f r_b | z_f z_b | n_f n_b].
    wi = jnp.concatenate(
        [jnp.concatenate([gate(g["wi_f"], i), gate(g["wi_b"], i)], axis=1)
         for i in range(3)], axis=1)                               # (D, 6H)
    # Fold the r/z recurrent biases into the (hoisted) input bias; keep only
    # the n-gate recurrent bias separate (it is scaled by r in the GRU cell).
    bi_r = jnp.concatenate([gate(g["bi_f"], 0) + gate(g["bh_f"], 0),
                            gate(g["bi_b"], 0) + gate(g["bh_b"], 0)], axis=1)
    bi_z = jnp.concatenate([gate(g["bi_f"], 1) + gate(g["bh_f"], 1),
                            gate(g["bi_b"], 1) + gate(g["bh_b"], 1)], axis=1)
    bi_n = jnp.concatenate([gate(g["bi_f"], 2), gate(g["bi_b"], 2)], axis=1)
    bi = jnp.concatenate([bi_r, bi_z, bi_n], axis=1)               # (1, 6H)
    bh_n = jnp.concatenate([gate(g["bh_f"], 2), gate(g["bh_b"], 2)], axis=1)

    # Block-diagonal recurrent weight: rows [h_f | h_b] -> same column layout.
    zH = jnp.zeros((H, H), jnp.float32)
    wh = jnp.concatenate(
        [jnp.concatenate(
            [jnp.concatenate([gate(g["wh_f"], i), zH], axis=1),
             jnp.concatenate([zH, gate(g["wh_b"], i)], axis=1)], axis=0)
         for i in range(3)], axis=1)                               # (2H, 6H)
    w_gru = jnp.concatenate([wi, wh], axis=0)                      # (D+2H, 6H)

    def pad_to(a, rows, cols):
        r, c = a.shape
        return jnp.pad(a, ((0, rows - r), (0, cols - c)))

    f = p["fc"]
    w1 = pad_to(f["w1"], MERGED, FC_PAD)                           # (192, 384)
    w2 = pad_to(f["w2"], FC_PAD, FC_PAD)                           # (384, 384)
    w3 = pad_to(f["w3"], FC_PAD, N_PAD)                            # (384, 128)
    wc = p["cnn_w"].reshape(K_CNN * D, F_CNN)                      # (96, 64)

    def row(a):
        return pad_to(a, 1, FC_PAD)

    biases = jnp.concatenate(
        [row(p["cnn_b"]), row(bi), row(bh_n),
         row(f["b1"]), row(f["b2"]), row(f["b3"]),
         jnp.zeros((2, FC_PAD), jnp.float32)], axis=0)             # (8, 384) f32

    bf = lambda a: a.astype(jnp.bfloat16)
    return {"wc": bf(wc), "w_gru": bf(w_gru), "w1": bf(w1), "w2": bf(w2),
            "w3": bf(w3), "biases": biases}


# ----------------------- pure-JAX reference (for checking) ------------------
def reference_forward(p, x1, x2):
    conv = jnp.zeros((B, L_CONV, F_CNN), jnp.float32)
    for j in range(K_CNN):
        conv = conv + jnp.einsum("bld,df->blf", x1[:, j:j + L_CONV, :],
                                 p["cnn_w"][j])
    conv = jax.nn.relu(conv + p["cnn_b"])
    out1 = jnp.max(conv, axis=1)

    g = p["gru"]

    def run_dir(wi, wh, bi, bh, xs):        # xs: (T, B, D) in processing order
        h = jnp.zeros((B, H_GRU), jnp.float32)
        for t in range(T):
            gi = xs[t] @ wi + bi
            gh = h @ wh + bh
            r = jax.nn.sigmoid(gi[:, :H_GRU] + gh[:, :H_GRU])
            z = jax.nn.sigmoid(gi[:, H_GRU:2 * H_GRU] + gh[:, H_GRU:2 * H_GRU])
            n = jnp.tanh(gi[:, 2 * H_GRU:] + r * gh[:, 2 * H_GRU:])
            h = (1.0 - z) * n + z * h
        return h

    x_tm = jnp.transpose(x2, (1, 0, 2))
    h_f = run_dir(g["wi_f"], g["wh_f"], g["bi_f"], g["bh_f"], x_tm)
    h_b = run_dir(g["wi_b"], g["wh_b"], g["bi_b"], g["bh_b"], x_tm[::-1])
    out2 = jnp.concatenate([h_f, h_b], axis=1)

    merged = jnp.concatenate([out1, out2], axis=1)
    f = p["fc"]
    h1 = jax.nn.relu(merged @ f["w1"] + f["b1"])
    h2 = jax.nn.relu(h1 @ f["w2"] + f["b2"])
    return h2 @ f["w3"] + f["b3"]


if __name__ == "__main__":
    key = jax.random.PRNGKey(0)
    k_param, k_x1, k_x2 = jax.random.split(key, 3)
    params = quantize_weights(init_params(k_param))
    packed = pack_params(params)
    x1 = jax.random.normal(k_x1, (B, T, D), jnp.float32)
    x2 = jax.random.normal(k_x2, (B, T, D), jnp.float32)

    logits = jax.jit(classifiler_net_forward)(packed, x1, x2)
    logits = jax.block_until_ready(logits)

    ref = jax.jit(reference_forward)(params, x1, x2)
    ref = jax.block_until_ready(ref)

    assert logits.shape == (B, N_CLASSES)
    assert bool(jnp.all(jnp.isfinite(logits)))
    max_err = float(jnp.max(jnp.abs(logits - ref)))
    assert bool(jnp.allclose(logits, ref, atol=5e-4, rtol=5e-4)), max_err
    print("KERNEL_OK")
</pallas_src>

<mosaic_0001>
module attributes {stable_mosaic.version = 11 : i64} {
  func.func @fused_kernel(%arg0: memref<8x8x32xf32, #tpu.memory_space<vmem>>, %arg1: memref<8x8x32xf32, #tpu.memory_space<vmem>>, %arg2: memref<96x64xbf16, #tpu.memory_space<vmem>>, %arg3: memref<160x384xbf16, #tpu.memory_space<vmem>>, %arg4: memref<192x384xbf16, #tpu.memory_space<vmem>>, %arg5: memref<384x384xbf16, #tpu.memory_space<vmem>>, %arg6: memref<384x128xbf16, #tpu.memory_space<vmem>>, %arg7: memref<8x384xf32, #tpu.memory_space<vmem>>, %arg8: memref<8x128xf32, #tpu.memory_space<vmem>>) attributes {dimension_semantics = [], scalar_prefetch = 0 : i64, scratch_operands = 0 : i64, tpu.core_type = #tpu.core_type<tc>} {
    %c0 = arith.constant 0 : index
    %c0_0 = arith.constant 0 : index
    %0 = vector.load %arg7[%c0, %c0_0] : memref<8x384xf32, #tpu.memory_space<vmem>>, vector<8x384xf32>
    %1 = vector.extract_strided_slice %0 {offsets = [0, 0], sizes = [1, 64], strides = [1, 1]} : vector<8x384xf32> to vector<1x64xf32>
    %2 = vector.extract_strided_slice %0 {offsets = [1, 0], sizes = [1, 384], strides = [1, 1]} : vector<8x384xf32> to vector<1x384xf32>
    %3 = vector.extract_strided_slice %0 {offsets = [2, 0], sizes = [1, 128], strides = [1, 1]} : vector<8x384xf32> to vector<1x128xf32>
    %4 = vector.shape_cast %3 : vector<1x128xf32> to vector<1x128xf32>
    %5 = vector.broadcast %4 : vector<1x128xf32> to vector<8x128xf32>
    %6 = vector.extract_strided_slice %0 {offsets = [3, 0], sizes = [1, 384], strides = [1, 1]} : vector<8x384xf32> to vector<1x384xf32>
    %7 = vector.extract_strided_slice %0 {offsets = [4, 0], sizes = [1, 384], strides = [1, 1]} : vector<8x384xf32> to vector<1x384xf32>
    %8 = vector.extract_strided_slice %0 {offsets = [5, 0], sizes = [1, 128], strides = [1, 1]} : vector<8x384xf32> to vector<1x128xf32>
    %c0_1 = arith.constant 0 : index
    %c0_2 = arith.constant 0 : index
    %c0_3 = arith.constant 0 : index
    %9 = vector.load %arg0[%c0_1, %c0_2, %c0_3] : memref<8x8x32xf32, #tpu.memory_space<vmem>>, vector<8x8x32xf32>
    %10 = vector.shape_cast %9 : vector<8x8x32xf32> to vector<64x32xf32>
    %c0_4 = arith.constant 0 : index
    %c0_5 = arith.constant 0 : index
    %11 = vector.load %arg2[%c0_4, %c0_5] : memref<96x64xbf16, #tpu.memory_space<vmem>>, vector<96x64xbf16>
    %12 = arith.extf %11 : vector<96x64xbf16> to vector<96x64xf32>
    %13 = vector.extract_strided_slice %12 {offsets = [0, 0], sizes = [32, 64], strides = [1, 1]} : vector<96x64xf32> to vector<32x64xf32>
    %cst = arith.constant dense<0.000000e+00> : vector<64x64xf32>
    %14 = tpu.matmul %10, %13, %cst {dimension_numbers = #tpu.dot_dimension_numbers<[1], [0], [0], [1], [0, 0, 1, 1], [], []>} : vector<64x32xf32>, vector<32x64xf32>, vector<64x64xf32> -> vector<64x64xf32>
    %15 = vector.shape_cast %14 : vector<64x64xf32> to vector<8x8x64xf32>
    %16 = vector.extract_strided_slice %12 {offsets = [32, 0], sizes = [32, 64], strides = [1, 1]} : vector<96x64xf32> to vector<32x64xf32>
    %cst_6 = arith.constant dense<0.000000e+00> : vector<64x64xf32>
    %17 = tpu.matmul %10, %16, %cst_6 {dimension_numbers = #tpu.dot_dimension_numbers<[1], [0], [0], [1], [0, 0, 1, 1], [], []>} : vector<64x32xf32>, vector<32x64xf32>, vector<64x64xf32> -> vector<64x64xf32>
    %18 = vector.shape_cast %17 : vector<64x64xf32> to vector<8x8x64xf32>
    %19 = vector.extract_strided_slice %12 {offsets = [64, 0], sizes = [32, 64], strides = [1, 1]} : vector<96x64xf32> to vector<32x64xf32>
    %cst_7 = arith.constant dense<0.000000e+00> : vector<64x64xf32>
    %20 = tpu.matmul %10, %19, %cst_7 {dimension_numbers = #tpu.dot_dimension_numbers<[1], [0], [0], [1], [0, 0, 1, 1], [], []>} : vector<64x32xf32>, vector<32x64xf32>, vector<64x64xf32> -> vector<64x64xf32>
    %21 = vector.shape_cast %20 : vector<64x64xf32> to vector<8x8x64xf32>
    %22 = vector.extract_strided_slice %15 {offsets = [0, 0, 0], sizes = [8, 6, 64], strides = [1, 1, 1]} : vector<8x8x64xf32> to vector<8x6x64xf32>
    %23 = vector.extract_strided_slice %18 {offsets = [0, 1, 0], sizes = [8, 6, 64], strides = [1, 1, 1]} : vector<8x8x64xf32> to vector<8x6x64xf32>
    %24 = arith.addf %22, %23 : vector<8x6x64xf32>
    %25 = vector.extract_strided_slice %21 {offsets = [0, 2, 0], sizes = [8, 6, 64], strides = [1, 1, 1]} : vector<8x8x64xf32> to vector<8x6x64xf32>
    %26 = arith.addf %24, %25 : vector<8x6x64xf32>
    %27 = vector.shape_cast %1 : vector<1x64xf32> to vector<1x1x64xf32>
    %28 = vector.broadcast %27 : vector<1x1x64xf32> to vector<8x6x64xf32>
    %29 = arith.addf %26, %28 : vector<8x6x64xf32>
    %cst_8 = arith.constant 0.000000e+00 : f32
    %30 = vector.broadcast %cst_8 : f32 to vector<8x6x64xf32>
    %31 = arith.maximumf %29, %30 : vector<8x6x64xf32>
    %cst_9 = arith.constant dense<0xFF800000> : vector<8x64xf32>
    %32 = vector.multi_reduction <maximumf>, %31, %cst_9 [1] : vector<8x6x64xf32> to vector<8x64xf32>
    %c0_10 = arith.constant 0 : index
    %c0_11 = arith.constant 0 : index
    %33 = vector.load %arg3[%c0_10, %c0_11] : memref<160x384xbf16, #tpu.memory_space<vmem>>, vector<160x384xbf16>
    %34 = arith.extf %33 : vector<160x384xbf16> to vector<160x384xf32>
    %35 = vector.extract_strided_slice %34 {offsets = [0, 0], sizes = [32, 384], strides = [1, 1]} : vector<160x384xf32> to vector<32x384xf32>
    %36 = vector.extract_strided_slice %34 {offsets = [32, 0], sizes = [128, 384], strides = [1, 1]} : vector<160x384xf32> to vector<128x384xf32>
    %c0_12 = arith.constant 0 : index
    %c0_13 = arith.constant 0 : index
    %c0_14 = arith.constant 0 : index
    %37 = vector.load %arg1[%c0_12, %c0_13, %c0_14] : memref<8x8x32xf32, #tpu.memory_space<vmem>>, vector<8x8x32xf32>
    %38 = vector.shape_cast %37 : vector<8x8x32xf32> to vector<64x32xf32>
    %cst_15 = arith.constant dense<0.000000e+00> : vector<64x384xf32>
    %39 = tpu.matmul %38, %35, %cst_15 {dimension_numbers = #tpu.dot_dimension_numbers<[1], [0], [0], [1], [0, 0, 1, 1], [], []>} : vector<64x32xf32>, vector<32x384xf32>, vector<64x384xf32> -> vector<64x384xf32>
    %40 = vector.broadcast %2 : vector<1x384xf32> to vector<64x384xf32>
    %41 = arith.addf %39, %40 : vector<64x384xf32>
    %42 = vector.shape_cast %41 : vector<64x384xf32> to vector<8x8x384xf32>
    %43 = tpu.iota {dimensions = array<i32: 1>} : vector<8x384xi32>
    %c128_i32 = arith.constant 128 : i32
    %c0_i32 = arith.constant 0 : i32
    %44 = arith.cmpi eq, %c128_i32, %c0_i32 : i32
    %c1_i32 = arith.constant 1 : i32
    %45 = arith.select %44, %c1_i32, %c128_i32 : i32
    %46 = vector.broadcast %45 : i32 to vector<8x384xi32>
    %47 = arith.remsi %43, %46 : vector<8x384xi32>
    %c0_i32_16 = arith.constant 0 : i32
    %48 = vector.broadcast %c0_i32_16 : i32 to vector<8x384xi32>
    %49 = arith.cmpi ne, %47, %48 : vector<8x384xi32>
    %c0_i32_17 = arith.constant 0 : i32
    %50 = vector.broadcast %c0_i32_17 : i32 to vector<8x384xi32>
    %51 = arith.cmpi slt, %47, %50 : vector<8x384xi32>
    %c0_i32_18 = arith.constant 0 : i32
    %52 = arith.cmpi slt, %45, %c0_i32_18 : i32
    %53 = vector.broadcast %52 : i1 to vector<8x384xi1>
    %54 = vector.broadcast %53 : vector<8x384xi1> to vector<8x384xi1>
    %55 = arith.xori %51, %54 : vector<8x384xi1>
    %56 = arith.andi %55, %49 : vector<8x384xi1>
    %57 = vector.broadcast %45 : i32 to vector<8x384xi32>
    %58 = arith.addi %47, %57 : vector<8x384xi32>
    %59 = arith.select %56, %58, %47 : vector<8x384xi1>, vector<8x384xi32>
    %c64_i32 = arith.constant 64 : i32
    %60 = vector.broadcast %c64_i32 : i32 to vector<8x384xi32>
    %61 = arith.cmpi slt, %59, %60 : vector<8x384xi32>
    %62 = vector.extract_strided_slice %42 {offsets = [0, 0, 0], sizes = [8, 1, 384], strides = [1, 1, 1]} : vector<8x8x384xf32> to vector<8x1x384xf32>
    %63 = vector.shape_cast %62 : vector<8x1x384xf32> to vector<8x384xf32>
    %64 = vector.extract_strided_slice %42 {offsets = [0, 7, 0], sizes = [8, 1, 384], strides = [1, 1, 1]} : vector<8x8x384xf32> to vector<8x1x384xf32>
    %65 = vector.shape_cast %64 : vector<8x1x384xf32> to vector<8x384xf32>
    %66 = arith.select %61, %63, %65 : vector<8x384xi1>, vector<8x384xf32>
    %67 = vector.extract_strided_slice %42 {offsets = [0, 1, 0], sizes = [8, 1, 384], strides = [1, 1, 1]} : vector<8x8x384xf32> to vector<8x1x384xf32>
    %68 = vector.shape_cast %67 : vector<8x1x384xf32> to vector<8x384xf32>
    %69 = vector.extract_strided_slice %42 {offsets = [0, 6, 0], sizes = [8, 1, 384], strides = [1, 1, 1]} : vector<8x8x384xf32> to vector<8x1x384xf32>
    %70 = vector.shape_cast %69 : vector<8x1x384xf32> to vector<8x384xf32>
    %71 = arith.select %61, %68, %70 : vector<8x384xi1>, vector<8x384xf32>
    %72 = vector.extract_strided_slice %42 {offsets = [0, 2, 0], sizes = [8, 1, 384], strides = [1, 1, 1]} : vector<8x8x384xf32> to vector<8x1x384xf32>
    %73 = vector.shape_cast %72 : vector<8x1x384xf32> to vector<8x384xf32>
    %74 = vector.extract_strided_slice %42 {offsets = [0, 5, 0], sizes = [8, 1, 384], strides = [1, 1, 1]} : vector<8x8x384xf32> to vector<8x1x384xf32>
    %75 = vector.shape_cast %74 : vector<8x1x384xf32> to vector<8x384xf32>
    %76 = arith.select %61, %73, %75 : vector<8x384xi1>, vector<8x384xf32>
    %77 = vector.extract_strided_slice %42 {offsets = [0, 3, 0], sizes = [8, 1, 384], strides = [1, 1, 1]} : vector<8x8x384xf32> to vector<8x1x384xf32>
    %78 = vector.shape_cast %77 : vector<8x1x384xf32> to vector<8x384xf32>
    %79 = vector.extract_strided_slice %42 {offsets = [0, 4, 0], sizes = [8, 1, 384], strides = [1, 1, 1]} : vector<8x8x384xf32> to vector<8x1x384xf32>
    %80 = vector.shape_cast %79 : vector<8x1x384xf32> to vector<8x384xf32>
    %81 = arith.select %61, %78, %80 : vector<8x384xi1>, vector<8x384xf32>
    %82 = vector.extract_strided_slice %42 {offsets = [0, 4, 0], sizes = [8, 1, 384], strides = [1, 1, 1]} : vector<8x8x384xf32> to vector<8x1x384xf32>
    %83 = vector.shape_cast %82 : vector<8x1x384xf32> to vector<8x384xf32>
    %84 = vector.extract_strided_slice %42 {offsets = [0, 3, 0], sizes = [8, 1, 384], strides = [1, 1, 1]} : vector<8x8x384xf32> to vector<8x1x384xf32>
    %85 = vector.shape_cast %84 : vector<8x1x384xf32> to vector<8x384xf32>
    %86 = arith.select %61, %83, %85 : vector<8x384xi1>, vector<8x384xf32>
    %87 = vector.extract_strided_slice %42 {offsets = [0, 5, 0], sizes = [8, 1, 384], strides = [1, 1, 1]} : vector<8x8x384xf32> to vector<8x1x384xf32>
    %88 = vector.shape_cast %87 : vector<8x1x384xf32> to vector<8x384xf32>
    %89 = vector.extract_strided_slice %42 {offsets = [0, 2, 0], sizes = [8, 1, 384], strides = [1, 1, 1]} : vector<8x8x384xf32> to vector<8x1x384xf32>
    %90 = vector.shape_cast %89 : vector<8x1x384xf32> to vector<8x384xf32>
    %91 = arith.select %61, %88, %90 : vector<8x384xi1>, vector<8x384xf32>
    %92 = vector.extract_strided_slice %42 {offsets = [0, 6, 0], sizes = [8, 1, 384], strides = [1, 1, 1]} : vector<8x8x384xf32> to vector<8x1x384xf32>
    %93 = vector.shape_cast %92 : vector<8x1x384xf32> to vector<8x384xf32>
    %94 = vector.extract_strided_slice %42 {offsets = [0, 1, 0], sizes = [8, 1, 384], strides = [1, 1, 1]} : vector<8x8x384xf32> to vector<8x1x384xf32>
    %95 = vector.shape_cast %94 : vector<8x1x384xf32> to vector<8x384xf32>
    %96 = arith.select %61, %93, %95 : vector<8x384xi1>, vector<8x384xf32>
    %97 = vector.extract_strided_slice %42 {offsets = [0, 7, 0], sizes = [8, 1, 384], strides = [1, 1, 1]} : vector<8x8x384xf32> to vector<8x1x384xf32>
    %98 = vector.shape_cast %97 : vector<8x1x384xf32> to vector<8x384xf32>
    %99 = vector.extract_strided_slice %42 {offsets = [0, 0, 0], sizes = [8, 1, 384], strides = [1, 1, 1]} : vector<8x8x384xf32> to vector<8x1x384xf32>
    %100 = vector.shape_cast %99 : vector<8x1x384xf32> to vector<8x384xf32>
    %101 = arith.select %61, %98, %100 : vector<8x384xi1>, vector<8x384xf32>
    %cst_19 = arith.constant 0.000000e+00 : f32
    %102 = vector.broadcast %cst_19 : f32 to vector<8x128xf32>
    %cst_20 = arith.constant dense<0.000000e+00> : vector<8x384xf32>
    %103 = tpu.matmul %102, %36, %cst_20 {dimension_numbers = #tpu.dot_dimension_numbers<[1], [0], [0], [1], [0, 0, 1, 1], [], []>} : vector<8x128xf32>, vector<128x384xf32>, vector<8x384xf32> -> vector<8x384xf32>
    %104 = vector.extract_strided_slice %66 {offsets = [0, 0], sizes = [8, 128], strides = [1, 1]} : vector<8x384xf32> to vector<8x128xf32>
    %105 = vector.extract_strided_slice %103 {offsets = [0, 0], sizes = [8, 128], strides = [1, 1]} : vector<8x384xf32> to vector<8x128xf32>
    %106 = arith.addf %104, %105 : vector<8x128xf32>
    %107 = arith.negf %106 : vector<8x128xf32>
    %108 = math.exp %107 : vector<8x128xf32>
    %cst_21 = arith.constant 1.000000e+00 : f32
    %109 = vector.broadcast %cst_21 : f32 to vector<8x128xf32>
    %110 = arith.addf %109, %108 : vector<8x128xf32>
    %111 = arith.divf %109, %110 : vector<8x128xf32>
    %112 = vector.extract_strided_slice %66 {offsets = [0, 128], sizes = [8, 128], strides = [1, 1]} : vector<8x384xf32> to vector<8x128xf32>
    %113 = vector.extract_strided_slice %103 {offsets = [0, 128], sizes = [8, 128], strides = [1, 1]} : vector<8x384xf32> to vector<8x128xf32>
    %114 = arith.addf %112, %113 : vector<8x128xf32>
    %115 = arith.negf %114 : vector<8x128xf32>
    %116 = math.exp %115 : vector<8x128xf32>
    %cst_22 = arith.constant 1.000000e+00 : f32
    %117 = vector.broadcast %cst_22 : f32 to vector<8x128xf32>
    %118 = arith.addf %117, %116 : vector<8x128xf32>
    %119 = arith.divf %117, %118 : vector<8x128xf32>
    %120 = vector.extract_strided_slice %66 {offsets = [0, 256], sizes = [8, 128], strides = [1, 1]} : vector<8x384xf32> to vector<8x128xf32>
    %121 = vector.extract_strided_slice %103 {offsets = [0, 256], sizes = [8, 128], strides = [1, 1]} : vector<8x384xf32> to vector<8x128xf32>
    %122 = arith.addf %121, %5 : vector<8x128xf32>
    %123 = arith.mulf %111, %122 : vector<8x128xf32>
    %124 = arith.addf %120, %123 : vector<8x128xf32>
    %125 = math.tanh %124 : vector<8x128xf32>
    %cst_23 = arith.constant 1.000000e+00 : f32
    %126 = vector.broadcast %cst_23 : f32 to vector<8x128xf32>
    %127 = arith.subf %126, %119 : vector<8x128xf32>
    %128 = arith.mulf %127, %125 : vector<8x128xf32>
    %129 = arith.mulf %119, %102 : vector<8x128xf32>
    %130 = arith.addf %128, %129 : vector<8x128xf32>
    %cst_24 = arith.constant dense<0.000000e+00> : vector<8x384xf32>
    %131 = tpu.matmul %130, %36, %cst_24 {dimension_numbers = #tpu.dot_dimension_numbers<[1], [0], [0], [1], [0, 0, 1, 1], [], []>} : vector<8x128xf32>, vector<128x384xf32>, vector<8x384xf32> -> vector<8x384xf32>
    %132 = vector.extract_strided_slice %71 {offsets = [0, 0], sizes = [8, 128], strides = [1, 1]} : vector<8x384xf32> to vector<8x128xf32>
    %133 = vector.extract_strided_slice %131 {offsets = [0, 0], sizes = [8, 128], strides = [1, 1]} : vector<8x384xf32> to vector<8x128xf32>
    %134 = arith.addf %132, %133 : vector<8x128xf32>
    %135 = arith.negf %134 : vector<8x128xf32>
    %136 = math.exp %135 : vector<8x128xf32>
    %cst_25 = arith.constant 1.000000e+00 : f32
    %137 = vector.broadcast %cst_25 : f32 to vector<8x128xf32>
    %138 = arith.addf %137, %136 : vector<8x128xf32>
    %139 = arith.divf %137, %138 : vector<8x128xf32>
    %140 = vector.extract_strided_slice %71 {offsets = [0, 128], sizes = [8, 128], strides = [1, 1]} : vector<8x384xf32> to vector<8x128xf32>
    %141 = vector.extract_strided_slice %131 {offsets = [0, 128], sizes = [8, 128], strides = [1, 1]} : vector<8x384xf32> to vector<8x128xf32>
    %142 = arith.addf %140, %141 : vector<8x128xf32>
    %143 = arith.negf %142 : vector<8x128xf32>
    %144 = math.exp %143 : vector<8x128xf32>
    %cst_26 = arith.constant 1.000000e+00 : f32
    %145 = vector.broadcast %cst_26 : f32 to vector<8x128xf32>
    %146 = arith.addf %145, %144 : vector<8x128xf32>
    %147 = arith.divf %145, %146 : vector<8x128xf32>
    %148 = vector.extract_strided_slice %71 {offsets = [0, 256], sizes = [8, 128], strides = [1, 1]} : vector<8x384xf32> to vector<8x128xf32>
    %149 = vector.extract_strided_slice %131 {offsets = [0, 256], sizes = [8, 128], strides = [1, 1]} : vector<8x384xf32> to vector<8x128xf32>
    %150 = arith.addf %149, %5 : vector<8x128xf32>
    %151 = arith.mulf %139, %150 : vector<8x128xf32>
    %152 = arith.addf %148, %151 : vector<8x128xf32>
    %153 = math.tanh %152 : vector<8x128xf32>
    %cst_27 = arith.constant 1.000000e+00 : f32
    %154 = vector.broadcast %cst_27 : f32 to vector<8x128xf32>
    %155 = arith.subf %154, %147 : vector<8x128xf32>
    %156 = arith.mulf %155, %153 : vector<8x128xf32>
    %157 = arith.mulf %147, %130 : vector<8x128xf32>
    %158 = arith.addf %156, %157 : vector<8x128xf32>
    %cst_28 = arith.constant dense<0.000000e+00> : vector<8x384xf32>
    %159 = tpu.matmul %158, %36, %cst_28 {dimension_numbers = #tpu.dot_dimension_numbers<[1], [0], [0], [1], [0, 0, 1, 1], [], []>} : vector<8x128xf32>, vector<128x384xf32>, vector<8x384xf32> -> vector<8x384xf32>
    %160 = vector.extract_strided_slice %76 {offsets = [0, 0], sizes = [8, 128], strides = [1, 1]} : vector<8x384xf32> to vector<8x128xf32>
    %161 = vector.extract_strided_slice %159 {offsets = [0, 0], sizes = [8, 128], strides = [1, 1]} : vector<8x384xf32> to vector<8x128xf32>
    %162 = arith.addf %160, %161 : vector<8x128xf32>
    %163 = arith.negf %162 : vector<8x128xf32>
    %164 = math.exp %163 : vector<8x128xf32>
    %cst_29 = arith.constant 1.000000e+00 : f32
    %165 = vector.broadcast %cst_29 : f32 to vector<8x128xf32>
    %166 = arith.addf %165, %164 : vector<8x128xf32>
    %167 = arith.divf %165, %166 : vector<8x128xf32>
    %168 = vector.extract_strided_slice %76 {offsets = [0, 128], sizes = [8, 128], strides = [1, 1]} : vector<8x384xf32> to vector<8x128xf32>
    %169 = vector.extract_strided_slice %159 {offsets = [0, 128], sizes = [8, 128], strides = [1, 1]} : vector<8x384xf32> to vector<8x128xf32>
    %170 = arith.addf %168, %169 : vector<8x128xf32>
    %171 = arith.negf %170 : vector<8x128xf32>
    %172 = math.exp %171 : vector<8x128xf32>
    %cst_30 = arith.constant 1.000000e+00 : f32
    %173 = vector.broadcast %cst_30 : f32 to vector<8x128xf32>
    %174 = arith.addf %173, %172 : vector<8x128xf32>
    %175 = arith.divf %173, %174 : vector<8x128xf32>
    %176 = vector.extract_strided_slice %76 {offsets = [0, 256], sizes = [8, 128], strides = [1, 1]} : vector<8x384xf32> to vector<8x128xf32>
    %177 = vector.extract_strided_slice %159 {offsets = [0, 256], sizes = [8, 128], strides = [1, 1]} : vector<8x384xf32> to vector<8x128xf32>
    %178 = arith.addf %177, %5 : vector<8x128xf32>
    %179 = arith.mulf %167, %178 : vector<8x128xf32>
    %180 = arith.addf %176, %179 : vector<8x128xf32>
    %181 = math.tanh %180 : vector<8x128xf32>
    %cst_31 = arith.constant 1.000000e+00 : f32
    %182 = vector.broadcast %cst_31 : f32 to vector<8x128xf32>
    %183 = arith.subf %182, %175 : vector<8x128xf32>
    %184 = arith.mulf %183, %181 : vector<8x128xf32>
    %185 = arith.mulf %175, %158 : vector<8x128xf32>
    %186 = arith.addf %184, %185 : vector<8x128xf32>
    %cst_32 = arith.constant dense<0.000000e+00> : vector<8x384xf32>
    %187 = tpu.matmul %186, %36, %cst_32 {dimension_numbers = #tpu.dot_dimension_numbers<[1], [0], [0], [1], [0, 0, 1, 1], [], []>} : vector<8x128xf32>, vector<128x384xf32>, vector<8x384xf32> -> vector<8x384xf32>
    %188 = vector.extract_strided_slice %81 {offsets = [0, 0], sizes = [8, 128], strides = [1, 1]} : vector<8x384xf32> to vector<8x128xf32>
    %189 = vector.extract_strided_slice %187 {offsets = [0, 0], sizes = [8, 128], strides = [1, 1]} : vector<8x384xf32> to vector<8x128xf32>
    %190 = arith.addf %188, %189 : vector<8x128xf32>
    %191 = arith.negf %190 : vector<8x128xf32>
    %192 = math.exp %191 : vector<8x128xf32>
    %cst_33 = arith.constant 1.000000e+00 : f32
    %193 = vector.broadcast %cst_33 : f32 to vector<8x128xf32>
    %194 = arith.addf %193, %192 : vector<8x128xf32>
    %195 = arith.divf %193, %194 : vector<8x128xf32>
    %196 = vector.extract_strided_slice %81 {offsets = [0, 128], sizes = [8, 128], strides = [1, 1]} : vector<8x384xf32> to vector<8x128xf32>
    %197 = vector.extract_strided_slice %187 {offsets = [0, 128], sizes = [8, 128], strides = [1, 1]} : vector<8x384xf32> to vector<8x128xf32>
    %198 = arith.addf %196, %197 : vector<8x128xf32>
    %199 = arith.negf %198 : vector<8x128xf32>
    %200 = math.exp %199 : vector<8x128xf32>
    %cst_34 = arith.constant 1.000000e+00 : f32
    %201 = vector.broadcast %cst_34 : f32 to vector<8x128xf32>
    %202 = arith.addf %201, %200 : vector<8x128xf32>
    %203 = arith.divf %201, %202 : vector<8x128xf32>
    %204 = vector.extract_strided_slice %81 {offsets = [0, 256], sizes = [8, 128], strides = [1, 1]} : vector<8x384xf32> to vector<8x128xf32>
    %205 = vector.extract_strided_slice %187 {offsets = [0, 256], sizes = [8, 128], strides = [1, 1]} : vector<8x384xf32> to vector<8x128xf32>
    %206 = arith.addf %205, %5 : vector<8x128xf32>
    %207 = arith.mulf %195, %206 : vector<8x128xf32>
    %208 = arith.addf %204, %207 : vector<8x128xf32>
    %209 = math.tanh %208 : vector<8x128xf32>
    %cst_35 = arith.constant 1.000000e+00 : f32
    %210 = vector.broadcast %cst_35 : f32 to vector<8x128xf32>
    %211 = arith.subf %210, %203 : vector<8x128xf32>
    %212 = arith.mulf %211, %209 : vector<8x128xf32>
    %213 = arith.mulf %203, %186 : vector<8x128xf32>
    %214 = arith.addf %212, %213 : vector<8x128xf32>
    %cst_36 = arith.constant dense<0.000000e+00> : vector<8x384xf32>
    %215 = tpu.matmul %214, %36, %cst_36 {dimension_numbers = #tpu.dot_dimension_numbers<[1], [0], [0], [1], [0, 0, 1, 1], [], []>} : vector<8x128xf32>, vector<128x384xf32>, vector<8x384xf32> -> vector<8x384xf32>
    %216 = vector.extract_strided_slice %86 {offsets = [0, 0], sizes = [8, 128], strides = [1, 1]} : vector<8x384xf32> to vector<8x128xf32>
    %217 = vector.extract_strided_slice %215 {offsets = [0, 0], sizes = [8, 128], strides = [1, 1]} : vector<8x384xf32> to vector<8x128xf32>
    %218 = arith.addf %216, %217 : vector<8x128xf32>
    %219 = arith.negf %218 : vector<8x128xf32>
    %220 = math.exp %219 : vector<8x128xf32>
    %cst_37 = arith.constant 1.000000e+00 : f32
    %221 = vector.broadcast %cst_37 : f32 to vector<8x128xf32>
    %222 = arith.addf %221, %220 : vector<8x128xf32>
    %223 = arith.divf %221, %222 : vector<8x128xf32>
    %224 = vector.extract_strided_slice %86 {offsets = [0, 128], sizes = [8, 128], strides = [1, 1]} : vector<8x384xf32> to vector<8x128xf32>
    %225 = vector.extract_strided_slice %215 {offsets = [0, 128], sizes = [8, 128], strides = [1, 1]} : vector<8x384xf32> to vector<8x128xf32>
    %226 = arith.addf %224, %225 : vector<8x128xf32>
    %227 = arith.negf %226 : vector<8x128xf32>
    %228 = math.exp %227 : vector<8x128xf32>
    %cst_38 = arith.constant 1.000000e+00 : f32
    %229 = vector.broadcast %cst_38 : f32 to vector<8x128xf32>
    %230 = arith.addf %229, %228 : vector<8x128xf32>
    %231 = arith.divf %229, %230 : vector<8x128xf32>
    %232 = vector.extract_strided_slice %86 {offsets = [0, 256], sizes = [8, 128], strides = [1, 1]} : vector<8x384xf32> to vector<8x128xf32>
    %233 = vector.extract_strided_slice %215 {offsets = [0, 256], sizes = [8, 128], strides = [1, 1]} : vector<8x384xf32> to vector<8x128xf32>
    %234 = arith.addf %233, %5 : vector<8x128xf32>
    %235 = arith.mulf %223, %234 : vector<8x128xf32>
    %236 = arith.addf %232, %235 : vector<8x128xf32>
    %237 = math.tanh %236 : vector<8x128xf32>
    %cst_39 = arith.constant 1.000000e+00 : f32
    %238 = vector.broadcast %cst_39 : f32 to vector<8x128xf32>
    %239 = arith.subf %238, %231 : vector<8x128xf32>
    %240 = arith.mulf %239, %237 : vector<8x128xf32>
    %241 = arith.mulf %231, %214 : vector<8x128xf32>
    %242 = arith.addf %240, %241 : vector<8x128xf32>
    %cst_40 = arith.constant dense<0.000000e+00> : vector<8x384xf32>
    %243 = tpu.matmul %242, %36, %cst_40 {dimension_numbers = #tpu.dot_dimension_numbers<[1], [0], [0], [1], [0, 0, 1, 1], [], []>} : vector<8x128xf32>, vector<128x384xf32>, vector<8x384xf32> -> vector<8x384xf32>
    %244 = vector.extract_strided_slice %91 {offsets = [0, 0], sizes = [8, 128], strides = [1, 1]} : vector<8x384xf32> to vector<8x128xf32>
    %245 = vector.extract_strided_slice %243 {offsets = [0, 0], sizes = [8, 128], strides = [1, 1]} : vector<8x384xf32> to vector<8x128xf32>
    %246 = arith.addf %244, %245 : vector<8x128xf32>
    %247 = arith.negf %246 : vector<8x128xf32>
    %248 = math.exp %247 : vector<8x128xf32>
    %cst_41 = arith.constant 1.000000e+00 : f32
    %249 = vector.broadcast %cst_41 : f32 to vector<8x128xf32>
    %250 = arith.addf %249, %248 : vector<8x128xf32>
    %251 = arith.divf %249, %250 : vector<8x128xf32>
    %252 = vector.extract_strided_slice %91 {offsets = [0, 128], sizes = [8, 128], strides = [1, 1]} : vector<8x384xf32> to vector<8x128xf32>
    %253 = vector.extract_strided_slice %243 {offsets = [0, 128], sizes = [8, 128], strides = [1, 1]} : vector<8x384xf32> to vector<8x128xf32>
    %254 = arith.addf %252, %253 : vector<8x128xf32>
    %255 = arith.negf %254 : vector<8x128xf32>
    %256 = math.exp %255 : vector<8x128xf32>
    %cst_42 = arith.constant 1.000000e+00 : f32
    %257 = vector.broadcast %cst_42 : f32 to vector<8x128xf32>
    %258 = arith.addf %257, %256 : vector<8x128xf32>
    %259 = arith.divf %257, %258 : vector<8x128xf32>
    %260 = vector.extract_strided_slice %91 {offsets = [0, 256], sizes = [8, 128], strides = [1, 1]} : vector<8x384xf32> to vector<8x128xf32>
    %261 = vector.extract_strided_slice %243 {offsets = [0, 256], sizes = [8, 128], strides = [1, 1]} : vector<8x384xf32> to vector<8x128xf32>
    %262 = arith.addf %261, %5 : vector<8x128xf32>
    %263 = arith.mulf %251, %262 : vector<8x128xf32>
    %264 = arith.addf %260, %263 : vector<8x128xf32>
    %265 = math.tanh %264 : vector<8x128xf32>
    %cst_43 = arith.constant 1.000000e+00 : f32
    %266 = vector.broadcast %cst_43 : f32 to vector<8x128xf32>
    %267 = arith.subf %266, %259 : vector<8x128xf32>
    %268 = arith.mulf %267, %265 : vector<8x128xf32>
    %269 = arith.mulf %259, %242 : vector<8x128xf32>
    %270 = arith.addf %268, %269 : vector<8x128xf32>
    %cst_44 = arith.constant dense<0.000000e+00> : vector<8x384xf32>
    %271 = tpu.matmul %270, %36, %cst_44 {dimension_numbers = #tpu.dot_dimension_numbers<[1], [0], [0], [1], [0, 0, 1, 1], [], []>} : vector<8x128xf32>, vector<128x384xf32>, vector<8x384xf32> -> vector<8x384xf32>
    %272 = vector.extract_strided_slice %96 {offsets = [0, 0], sizes = [8, 128], strides = [1, 1]} : vector<8x384xf32> to vector<8x128xf32>
    %273 = vector.extract_strided_slice %271 {offsets = [0, 0], sizes = [8, 128], strides = [1, 1]} : vector<8x384xf32> to vector<8x128xf32>
    %274 = arith.addf %272, %273 : vector<8x128xf32>
    %275 = arith.negf %274 : vector<8x128xf32>
    %276 = math.exp %275 : vector<8x128xf32>
    %cst_45 = arith.constant 1.000000e+00 : f32
    %277 = vector.broadcast %cst_45 : f32 to vector<8x128xf32>
    %278 = arith.addf %277, %276 : vector<8x128xf32>
    %279 = arith.divf %277, %278 : vector<8x128xf32>
    %280 = vector.extract_strided_slice %96 {offsets = [0, 128], sizes = [8, 128], strides = [1, 1]} : vector<8x384xf32> to vector<8x128xf32>
    %281 = vector.extract_strided_slice %271 {offsets = [0, 128], sizes = [8, 128], strides = [1, 1]} : vector<8x384xf32> to vector<8x128xf32>
    %282 = arith.addf %280, %281 : vector<8x128xf32>
    %283 = arith.negf %282 : vector<8x128xf32>
    %284 = math.exp %283 : vector<8x128xf32>
    %cst_46 = arith.constant 1.000000e+00 : f32
    %285 = vector.broadcast %cst_46 : f32 to vector<8x128xf32>
    %286 = arith.addf %285, %284 : vector<8x128xf32>
    %287 = arith.divf %285, %286 : vector<8x128xf32>
    %288 = vector.extract_strided_slice %96 {offsets = [0, 256], sizes = [8, 128], strides = [1, 1]} : vector<8x384xf32> to vector<8x128xf32>
    %289 = vector.extract_strided_slice %271 {offsets = [0, 256], sizes = [8, 128], strides = [1, 1]} : vector<8x384xf32> to vector<8x128xf32>
    %290 = arith.addf %289, %5 : vector<8x128xf32>
    %291 = arith.mulf %279, %290 : vector<8x128xf32>
    %292 = arith.addf %288, %291 : vector<8x128xf32>
    %293 = math.tanh %292 : vector<8x128xf32>
    %cst_47 = arith.constant 1.000000e+00 : f32
    %294 = vector.broadcast %cst_47 : f32 to vector<8x128xf32>
    %295 = arith.subf %294, %287 : vector<8x128xf32>
    %296 = arith.mulf %295, %293 : vector<8x128xf32>
    %297 = arith.mulf %287, %270 : vector<8x128xf32>
    %298 = arith.addf %296, %297 : vector<8x128xf32>
    %cst_48 = arith.constant dense<0.000000e+00> : vector<8x384xf32>
    %299 = tpu.matmul %298, %36, %cst_48 {dimension_numbers = #tpu.dot_dimension_numbers<[1], [0], [0], [1], [0, 0, 1, 1], [], []>} : vector<8x128xf32>, vector<128x384xf32>, vector<8x384xf32> -> vector<8x384xf32>
    %300 = vector.extract_strided_slice %101 {offsets = [0, 0], sizes = [8, 128], strides = [1, 1]} : vector<8x384xf32> to vector<8x128xf32>
    %301 = vector.extract_strided_slice %299 {offsets = [0, 0], sizes = [8, 128], strides = [1, 1]} : vector<8x384xf32> to vector<8x128xf32>
    %302 = arith.addf %300, %301 : vector<8x128xf32>
    %303 = arith.negf %302 : vector<8x128xf32>
    %304 = math.exp %303 : vector<8x128xf32>
    %cst_49 = arith.constant 1.000000e+00 : f32
    %305 = vector.broadcast %cst_49 : f32 to vector<8x128xf32>
    %306 = arith.addf %305, %304 : vector<8x128xf32>
    %307 = arith.divf %305, %306 : vector<8x128xf32>
    %308 = vector.extract_strided_slice %101 {offsets = [0, 128], sizes = [8, 128], strides = [1, 1]} : vector<8x384xf32> to vector<8x128xf32>
    %309 = vector.extract_strided_slice %299 {offsets = [0, 128], sizes = [8, 128], strides = [1, 1]} : vector<8x384xf32> to vector<8x128xf32>
    %310 = arith.addf %308, %309 : vector<8x128xf32>
    %311 = arith.negf %310 : vector<8x128xf32>
    %312 = math.exp %311 : vector<8x128xf32>
    %cst_50 = arith.constant 1.000000e+00 : f32
    %313 = vector.broadcast %cst_50 : f32 to vector<8x128xf32>
    %314 = arith.addf %313, %312 : vector<8x128xf32>
    %315 = arith.divf %313, %314 : vector<8x128xf32>
    %316 = vector.extract_strided_slice %101 {offsets = [0, 256], sizes = [8, 128], strides = [1, 1]} : vector<8x384xf32> to vector<8x128xf32>
    %317 = vector.extract_strided_slice %299 {offsets = [0, 256], sizes = [8, 128], strides = [1, 1]} : vector<8x384xf32> to vector<8x128xf32>
    %318 = arith.addf %317, %5 : vector<8x128xf32>
    %319 = arith.mulf %307, %318 : vector<8x128xf32>
    %320 = arith.addf %316, %319 : vector<8x128xf32>
    %321 = math.tanh %320 : vector<8x128xf32>
    %cst_51 = arith.constant 1.000000e+00 : f32
    %322 = vector.broadcast %cst_51 : f32 to vector<8x128xf32>
    %323 = arith.subf %322, %315 : vector<8x128xf32>
    %324 = arith.mulf %323, %321 : vector<8x128xf32>
    %325 = arith.mulf %315, %298 : vector<8x128xf32>
    %326 = arith.addf %324, %325 : vector<8x128xf32>
    %c0_52 = arith.constant 0 : index
    %c0_53 = arith.constant 0 : index
    %327 = vector.load %arg4[%c0_52, %c0_53] : memref<192x384xbf16, #tpu.memory_space<vmem>>, vector<192x384xbf16>
    %328 = arith.extf %327 : vector<192x384xbf16> to vector<192x384xf32>
    %329 = vector.extract_strided_slice %328 {offsets = [0, 0], sizes = [64, 384], strides = [1, 1]} : vector<192x384xf32> to vector<64x384xf32>
    %cst_54 = arith.constant dense<0.000000e+00> : vector<8x384xf32>
    %330 = tpu.matmul %32, %329, %cst_54 {dimension_numbers = #tpu.dot_dimension_numbers<[1], [0], [0], [1], [0, 0, 1, 1], [], []>} : vector<8x64xf32>, vector<64x384xf32>, vector<8x384xf32> -> vector<8x384xf32>
    %331 = vector.extract_strided_slice %328 {offsets = [64, 0], sizes = [128, 384], strides = [1, 1]} : vector<192x384xf32> to vector<128x384xf32>
    %cst_55 = arith.constant dense<0.000000e+00> : vector<8x384xf32>
    %332 = tpu.matmul %326, %331, %cst_55 {dimension_numbers = #tpu.dot_dimension_numbers<[1], [0], [0], [1], [0, 0, 1, 1], [], []>} : vector<8x128xf32>, vector<128x384xf32>, vector<8x384xf32> -> vector<8x384xf32>
    %333 = arith.addf %330, %332 : vector<8x384xf32>
    %334 = vector.broadcast %6 : vector<1x384xf32> to vector<8x384xf32>
    %335 = arith.addf %333, %334 : vector<8x384xf32>
    %cst_56 = arith.constant 0.000000e+00 : f32
    %336 = vector.broadcast %cst_56 : f32 to vector<8x384xf32>
    %337 = arith.maximumf %335, %336 : vector<8x384xf32>
    %c0_57 = arith.constant 0 : index
    %c0_58 = arith.constant 0 : index
    %338 = vector.load %arg5[%c0_57, %c0_58] : memref<384x384xbf16, #tpu.memory_space<vmem>>, vector<384x384xbf16>
    %339 = arith.extf %338 : vector<384x384xbf16> to vector<384x384xf32>
    %cst_59 = arith.constant dense<0.000000e+00> : vector<8x384xf32>
    %340 = tpu.matmul %337, %339, %cst_59 {dimension_numbers = #tpu.dot_dimension_numbers<[1], [0], [0], [1], [0, 0, 1, 1], [], []>} : vector<8x384xf32>, vector<384x384xf32>, vector<8x384xf32> -> vector<8x384xf32>
    %341 = vector.broadcast %7 : vector<1x384xf32> to vector<8x384xf32>
    %342 = arith.addf %340, %341 : vector<8x384xf32>
    %cst_60 = arith.constant 0.000000e+00 : f32
    %343 = vector.broadcast %cst_60 : f32 to vector<8x384xf32>
    %344 = arith.maximumf %342, %343 : vector<8x384xf32>
    %c0_61 = arith.constant 0 : index
    %c0_62 = arith.constant 0 : index
    %345 = vector.load %arg6[%c0_61, %c0_62] : memref<384x128xbf16, #tpu.memory_space<vmem>>, vector<384x128xbf16>
    %346 = arith.extf %345 : vector<384x128xbf16> to vector<384x128xf32>
    %cst_63 = arith.constant dense<0.000000e+00> : vector<8x128xf32>
    %347 = tpu.matmul %344, %346, %cst_63 {dimension_numbers = #tpu.dot_dimension_numbers<[1], [0], [0], [1], [0, 0, 1, 1], [], []>} : vector<8x384xf32>, vector<384x128xf32>, vector<8x128xf32> -> vector<8x128xf32>
    %348 = vector.broadcast %8 : vector<1x128xf32> to vector<8x128xf32>
    %349 = arith.addf %347, %348 : vector<8x128xf32>
    %c0_64 = arith.constant 0 : index
    %c0_65 = arith.constant 0 : index
    %350 = vector.load %arg8[%c0_64, %c0_65] : memref<8x128xf32, #tpu.memory_space<vmem>>, vector<8x128xf32>
    tpu.vector_store %arg8[%c0_64, %c0_65], %349 {strides = array<i32>} : memref<8x128xf32, #tpu.memory_space<vmem>>, vector<8x128xf32>,
    return
  }
}

</mosaic_0001>

<bundles_post_ra>
// kernel: classifiler_net_forward.1
= control target key start
LH: loop header
LB: loop body
LE: loop exit
PB: predicated region body
PF: predicated region fallthrough
CT: control target
= control target key end

     0   :  { %13 = vsyncpa [#allocation3], 0  ;;  %s7048_s0 = inlined_call_operand.vmem [shape: f32[8,8,32], index: 0, kind: input, shape index: {}]   ;;  %s7049_s1 = inlined_call_operand.hbm [shape: f32[8,8,32], index: 1, kind: input, shape index: {}]   ;;  %s7050_s2 = inlined_call_operand.vmem [shape: bf16[96,64], index: 2, kind: input, shape index: {}]   ;;  %s7051_s3 = inlined_call_operand.hbm [shape: bf16[160,384], index: 3, kind: input, shape index: {}]   ;;  %s7052_s4 = inlined_call_operand.hbm [shape: bf16[192,384], index: 4, kind: input, shape index: {}]   ;;  %s7053_s5 = inlined_call_operand.hbm [shape: bf16[384,384], index: 5, kind: input, shape index: {}]   ;;  %s7054_s6 = inlined_call_operand.hbm [shape: bf16[384,128], index: 6, kind: input, shape index: {}]   ;;  %s7055_s7 = inlined_call_operand.vmem [shape: f32[8,384], index: 7, kind: input, shape index: {}]   ;;  %s7056_s8 = inlined_call_operand.vmem [shape: f32[8,128], index: 8, kind: output, shape index: {}]  }
   0x1   :  { %14 = vsyncpa [#allocation5], 0 }
   0x2   :  { %15 = vsyncpa [#allocation8], 0  ;;  %s5178_s27 = smov [#allocation4]  }
   0x3   :  { %s37_s28 = sshll.u32 %s5178_s27, 4  ;;  %s38_s28 = int_to_ptr.vmem [resolvable:$true] %s37_s28 }
   0x4   :  { %s5080_s29 = scalar_lea.vmem %s38_s28, 3840  ;;  %p5085_p1 = scmp.lt.s32.totalorder %s38_s28, %s38_s28 }
   0x5   :  { %p5081_p0 = scmp.ne.s32.totalorder %s38_s28, %s5080_s29  ;;  %p5086_p2 = scmp.lt.s32.totalorder %s5080_s29, %s5080_s29 }
   0x7   :  { %p5087_p3 = por %p5086_p2, %p5085_p1 }
   0x9   :  { %p5088_p4 = pnand %p5087_p3, %p5081_p0 }
   0xb   :  { %5091 = shalt.err (!%p5088_p4)
}
   0xc   :  { %s5179_s30 = smov 192   ;;  %s5180_s9 = smov 12  }
   0xd   :  { %43 = dma.hbm_to_vmem [thread:$0]  %s7051_s3, 3840, %s38_s28, [#allocation5], %s5179_s30, %s5179_s30, %s5180_s9  }
   0xe   :  { %s5181_s12 = smov [#allocation7]   ;;  %s5182_s14 = smov [#allocation2]  }
   0xf   :  { %s61_s13 = sshll.u32 %s5181_s12, 4  ;;  %s23_s15 = sshll.u32 %s5182_s14, 4  ;;  %s62_s13 = int_to_ptr.vmem [resolvable:$true] %s61_s13  ;;  %s24_s15 = int_to_ptr.vmem [resolvable:$true] %s23_s15 }
  0x10   :  { %s5100_s16 = scalar_lea.vmem %s62_s13, 9216  ;;  %p5105_p6 = scmp.lt.s32.totalorder %s62_s13, %s62_s13 }
  0x11   :  { %p5101_p5 = scmp.ne.s32.totalorder %s62_s13, %s5100_s16  ;;  %p5106_p7 = scmp.lt.s32.totalorder %s5100_s16, %s5100_s16 }
  0x13   :  { %p5107_p8 = por %p5106_p7, %p5105_p6 }
  0x15   :  { %p5108_p9 = pnand %p5107_p8, %p5101_p5 }
  0x17   :  { %5111 = shalt.err (!%p5108_p9)
}
  0x18   :  { %67 = dma.hbm_to_vmem [thread:$0]  %s7053_s5, 9216, %s62_s13, [#allocation8], %s5179_s30, %s5179_s30, %s5180_s9  }
  0x19   :  { %s5120_s3 = scalar_lea.vmem %s24_s15, 1024  ;;  %p5125_p11 = scmp.lt.s32.totalorder %s24_s15, %s24_s15 }
  0x1a   :  { %p5121_p10 = scmp.ne.s32.totalorder %s24_s15, %s5120_s3  ;;  %p5126_p12 = scmp.lt.s32.totalorder %s5120_s3, %s5120_s3 }
  0x1c   :  { %p5127_p13 = por %p5126_p12, %p5125_p11 }
  0x1e   :  { %p5128_p0 = pnand %p5127_p13, %p5121_p10 }
  0x20   :  { %5131 = shalt.err (!%p5128_p0)
}
  0x21   :  { %s5183_s19 = smov 128   ;;  %s5184_s20 = smov 8  }
  0x22   :  { %29 = dma.hbm_to_vmem [thread:$0]  %s7049_s1, 1024, %s24_s15, [#allocation3], %s5183_s19, %s5183_s19, %s5184_s20  }
  0x23   :  { %s5185_s23 = smov [#allocation6]   ;;  %s5186_s25 = smov [#allocation9]  }
  0x24   :  { %s49_s24 = sshll.u32 %s5185_s23, 4  ;;  %s73_s26 = sshll.u32 %s5186_s25, 4  ;;  %s50_s24 = int_to_ptr.vmem [resolvable:$true] %s49_s24  ;;  %s74_s26 = int_to_ptr.vmem [resolvable:$true] %s73_s26 }
  0x25   :  { %s5140_s5 = scalar_lea.vmem %s50_s24, 4608  ;;  %p5145_p2 = scmp.lt.s32.totalorder %s50_s24, %s50_s24 }
  0x26   :  { %p5141_p1 = scmp.ne.s32.totalorder %s50_s24, %s5140_s5  ;;  %p5146_p3 = scmp.lt.s32.totalorder %s5140_s5, %s5140_s5 }
  0x28   :  { %p5147_p4 = por %p5146_p3, %p5145_p2 }
  0x2a   :  { %p5148_p5 = pnand %p5147_p4, %p5141_p1 }
  0x2c   :  { %5151 = shalt.err (!%p5148_p5)
}
  0x2d   :  { %55 = dma.hbm_to_vmem [thread:$0]  %s7052_s4, 4608, %s50_s24, [#allocation5], %s5179_s30, %s5179_s30, %s5180_s9  }
  0x2e   :  { %s5160_s1 = scalar_lea.vmem %s74_s26, 3072  ;;  %p5165_p7 = scmp.lt.s32.totalorder %s74_s26, %s74_s26 }
  0x2f   :  { %p5161_p6 = scmp.ne.s32.totalorder %s74_s26, %s5160_s1  ;;  %p5166_p8 = scmp.lt.s32.totalorder %s5160_s1, %s5160_s1 }
  0x31   :  { %p5167_p9 = por %p5166_p8, %p5165_p7 }
  0x33   :  { %p5168_p10 = pnand %p5167_p9, %p5161_p6 }
  0x35   :  { %5171 = shalt.err (!%p5168_p10)
}
  0x36   :  { %s5187_s29 = smov 64   ;;  %s5188_s10 = smov 4  }
  0x37   :  { %79 = dma.hbm_to_vmem [thread:$0]  %s7054_s6, 3072, %s74_s26, [#allocation8], %s5187_s29, %s5187_s29, %s5188_s10  }
  0x38   :  { %5172 = dma.done.wait [#allocation3], 1024  }
  0x39   :  { %5173 = vsyncadd [#allocation3], 4294966272 }
  0x3a   :  { %5174 = dma.done.wait [#allocation5], 8448  }
  0x3b   :  { %5175 = vsyncadd [#allocation5], 4294958848 }
  0x3c   :  { %5176 = dma.done.wait [#allocation8], 12288  }
  0x3d   :  { %5177 = vsyncadd [#allocation8], 4294955008  ;;  %vm136_vm0 = vcmask 261120   ;;  %v4142_v0 = vld [vmem:[%s7050_s2 + $0x8] sm:$0xff]   ;;  %v4144_v1 = vld [vmem:[%s7050_s2 + $0x18] sm:$0xff]   ;;  %v7057_v36 = vmov 0.0  }
  0x3e   :  { %v4023_v2 = vld [vmem:[%s7050_s2] sm:$0xff]   ;;  %v4028_v3 = vunpack.c.l.bf16 %v4142_v0  ;;  %v4029_v4 = vunpack.c.h.bf16 %v4142_v0  ;;  %v4037_v5 = vunpack.c.h.bf16 %v4144_v1  ;;  %v5269_v6 = vunpack.c.l.bf16 %v4144_v1  ;;  %v4143_v7 = vld [vmem:[%s7050_s2 + $0x10] sm:$0xff]   ;;  %v621_v15 = vld [vmem:[#allocation4 + $0x18] sm:$0xff] }
  0x3f   :  { %v5277_v8 = vld [vmem:[%s7048_s0] sm:$0xff]  ;;  %v4025_v10 = vunpack.c.h.bf16 %v4023_v2  ;;  %v5288_v11 = vunpack.c.h.bf16 %v4143_v7  ;;  %v4024_v12 = vunpack.c.l.bf16 %v4023_v2  ;;  %v5291_v13 = vunpack.c.l.bf16 %v4143_v7  ;;  %v5299_v16 = vld [vmem:[%s7048_s0 + $0x8] sm:$0xff]  ;;  %v5310_v20 = vld [vmem:[%s7048_s0 + $0x10] sm:$0xff] }
  0x40   :  { %v5282_v9 = vld [vmem:[%s7048_s0 + $0x20] sm:$0xff]  ;;  %4492 = vmatprep.mubr.msk.f32.mxu0 %vm136_vm0, %v5277_v8  ;;  %4484 = vmatprep.subr.mxu0 %v4029_v4  ;;  %v5304_v17 = vld [vmem:[%s7048_s0 + $0x28] sm:$0xff]  ;;  %v664_v21 = vunpack.c.h.bf16 %v621_v15  ;;  %v663_v23 = vunpack.c.l.bf16 %v621_v15  ;;  %v5320_v24 = vld [vmem:[%s7048_s0 + $0x30] sm:$0xff]  ;;  %vm5190_vm1 = vmmov 0   ;;  %vm1047_vm2 = vcmask 1041409  }
  0x41   :  { %4518 = vmatprep.mubr.msk.f32.mxu1 %vm136_vm0, %v5282_v9  ;;  %4968 = vmatprep.subr.mxu1 %v4037_v5  ;;  %v623_v14 = vld [vmem:[#allocation4 + $0x24] sm:$0xff]  ;;  %v619_v22 = vld [vmem:[#allocation4 + $0xc] sm:$0xff]  ;;  %v5327_v25 = vld [vmem:[%s7048_s0 + $0x18] sm:$0xff]  ;;  %vm1050_vm3 = vcmask 1042434   ;;  %vm1053_vm4 = vcmask 1043459   ;;  %vm560_vm5 = vcmask 521216  }
  0x42   :  { %4485 = vmatpush3.msra.mxu0 %v4029_v4  ;;  %4972 = vmatpush3.msra.mxu1 %v4037_v5  ;;  %v667_v18 = vunpack.c.h.bf16 %v623_v14  ;;  %v666_v19 = vunpack.c.l.bf16 %v623_v14  ;;  %v617_v26 = vld [vmem:[#allocation4] sm:$0xff]  ;;  %v5332_v27 = vld [vmem:[%s7048_s0 + $0x38] sm:$0xff]  ;;  %v661_v28 = vunpack.c.h.bf16 %v619_v22  ;;  %v660_v29 = vunpack.c.l.bf16 %v619_v22  ;;  %v651_v39 = vld [vmem:[#allocation4 + $0xcc] sm:$0xff] }
  0x43   :  { %4486 = vmatprep.subr.mxu0 %v4028_v3  ;;  %4969 = vmatprep.subr.mxu1 %v5269_v6  ;;  %v658_v30 = vunpack.c.h.bf16 %v617_v26  ;;  %v655_v31 = vld [vmem:[#allocation4 + $0xe4] sm:$0xff]  ;;  %v657_v32 = vunpack.c.l.bf16 %v617_v26  ;;  %v653_v33 = vld [vmem:[#allocation4 + $0xd8] sm:$0xff]  ;;  %v5366_v42 = vunpack.c.h.bf16 %v651_v39  ;;  %v5370_v44 = vunpack.c.l.bf16 %v651_v39  ;;  %v5387_v49 = vld [vmem:[#allocation2 + $0x10] sm:$0xff] }
  0x44   :  { %4487 = vmatpush3.msra.mxu0 %v4028_v3  ;;  %4973 = vmatpush3.msra.mxu1 %v5269_v6  ;;  %v5343_v34 = vld [vmem:[#allocation2] sm:$0xff]  ;;  %v5345_v35 = vunpack.c.h.bf16 %v655_v31  ;;  %v5348_v37 = vunpack.c.l.bf16 %v655_v31  ;;  %v5352_v38 = vunpack.c.h.bf16 %v653_v33  ;;  %v5360_v40 = vld [vmem:[#allocation2 + $0x8] sm:$0xff]  ;;  %v5362_v41 = vunpack.c.l.bf16 %v653_v33  ;;  %v647_v47 = vld [vmem:[#allocation4 + $0xb4] sm:$0xff] }
  0x45   :  { %4488 = vmatprep.subr.mxu0 %v4025_v10  ;;  %4970 = vmatprep.subr.mxu1 %v5288_v11  ;;  %7194 = vst [vmem:[#allocation16_spill] sm:$0xff] %v5366_v42  ;;  %v649_v43 = vld [vmem:[#allocation4 + $0xc0] sm:$0xff]  ;;  %7195 = vst [vmem:[#allocation17_spill] sm:$0xff] %v5370_v44  ;;  %v4146_v45 = vld [vmem:[%s7050_s2 + $0x28] sm:$0xff]   ;;  %v5394_v51 = vunpack.c.h.bf16 %v647_v47  ;;  %v5399_v54 = vunpack.c.l.bf16 %v647_v47  ;;  %vm1056_vm6 = vcmask 1044484   ;;  %vm1059_vm7 = vcmask 1045509  }
  0x46   :  { %4489 = vmatpush3.msra.mxu0 %v4025_v10  ;;  %4974 = vmatpush3.msra.mxu1 %v5288_v11  ;;  %7191 = vst [vmem:[#allocation13_spill] sm:$0xff] %v5345_v35  ;;  %7192 = vst [vmem:[#allocation14_spill] sm:$0xff] %v5352_v38  ;;  %v5381_v46 = vunpack.c.h.bf16 %v649_v43  ;;  %v4045_v48 = vunpack.c.h.bf16 %v4146_v45  ;;  %v5389_v50 = vunpack.c.l.bf16 %v649_v43  ;;  %v4044_v52 = vunpack.c.l.bf16 %v4146_v45  ;;  %v645_v53 = vld [vmem:[#allocation4 + $0xa8] sm:$0xff]  ;;  %v4145_v55 = vld [vmem:[%s7050_s2 + $0x20] sm:$0xff]  }
  0x47   :  { %4490 = vmatprep.subr.mxu0 %v4024_v12  ;;  %4971 = vmatprep.subr.mxu1 %v5291_v13  ;;  %7193 = vst [vmem:[#allocation15_spill] sm:$0xff] %v5362_v41  ;;  %7198 = vst [vmem:[#allocation20_spill] sm:$0xff] %v5394_v51  ;;  %v5407_v56 = vunpack.c.h.bf16 %v645_v53  ;;  %v643_v57 = vld [vmem:[#allocation4 + $0x9c] sm:$0xff]  ;;  %v4041_v58 = vunpack.c.h.bf16 %v4145_v55  ;;  %v5415_v60 = vunpack.c.l.bf16 %v645_v53  ;;  %v4040_v62 = vunpack.c.l.bf16 %v4145_v55  ;;  %v641_v63 = vld [vmem:[#allocation4 + $0x90] sm:$0xff] }
  0x48   :  { %4491 = vmatpush3.msra.mxu0 %v4024_v12  ;;  %4975 = vmatpush3.msra.mxu1 %v5291_v13  ;;  %7196 = vst [vmem:[#allocation18_spill] sm:$0xff] %v5381_v46  ;;  %7197 = vst [vmem:[#allocation19_spill] sm:$0xff] %v5389_v50  ;;  %v5413_v59 = vld [vmem:[#allocation2 + $0x18] sm:$0xff]  ;;  %v5418_v61 = vunpack.c.h.bf16 %v643_v57  ;;  %v5423_v0 = vunpack.c.l.bf16 %v643_v57  ;;  %v5428_v1 = vunpack.c.h.bf16 %v641_v63  ;;  %v639_v2 = vld [vmem:[#allocation4 + $0x84] sm:$0xff]  ;;  %vm1062_vm8 = vcmask 1046534  }
  0x49   :  { %4493 = vmatmul.mubr.msk.f32.vlgmr.msra.gmra.mxu0 %vm136_vm0, %v5299_v16  ;;  %4519 = vmatmul.mubr.msk.f32.vlgmr.msra.gmra.mxu1 %vm136_vm0, %v5304_v17  ;;  %7199 = vst [vmem:[#allocation21_spill] sm:$0xff] %v5399_v54  ;;  %7200 = vst [vmem:[#allocation22_spill] sm:$0xff] %v5407_v56  ;;  %v624_v3 = vld [vmem:[#allocation4 + $0x20] ss:$12 sps:$4 sm:$0xff]   ;;  %v5439_v7 = vunpack.c.h.bf16 %v639_v2  ;;  %v5475_v22 = vld [vmem:[#allocation2 + $0x30] sm:$0xff]  ;;  %vm1065_vm9 = vcmask 1047559  }
  0x4a   :  { %785 = vmatprep.subr.mxu1 %v667_v18  ;;  %4495 = vmatprep.mubr.msk.f32.mxu0 %vm136_vm0, %v5310_v20  ;;  %7201 = vst [vmem:[#allocation23_spill] sm:$0xff] %v5415_v60  ;;  %7202 = vst [vmem:[#allocation24_spill] sm:$0xff] %v5418_v61  ;;  %v5432_v4 = vld [vmem:[#allocation2 + $0x20] sm:$0xff]  ;;  %v668_v10 = vunpack.c.h.bf16 %v624_v3  ;;  %v635_v12 = vld [vmem:[#allocation4 + $0x6c] sm:$0xff]  ;;  %vm3017_vm13 = vcmask 523264  }
  0x4b   :  { %786 = vmatpush1.msra.mxu1 %v666_v19  ;;  %4504 = vmatprep.subr.mxu0 %v4037_v5  ;;  %7203 = vst [vmem:[#allocation25_spill] sm:$0xff] %v5423_v0  ;;  %7204 = vst [vmem:[#allocation26_spill] sm:$0xff] %v5428_v1  ;;  %v633_v15 = vld [vmem:[#allocation4 + $0x60] sm:$0xff]  ;;  %v5464_v18 = vunpack.c.l.bf16 %v635_v12  ;;  %v665_v19 = vunpack.c.l.bf16 %v624_v3  ;;  %v629_v26 = vld [vmem:[#allocation4 + $0x48] sm:$0xff] }
  0x4c   :  { %787 = vmatprep.subr.mxu1 %v664_v21  ;;  %4521 = vmatprep.mubr.msk.f32.mxu1 %vm136_vm0, %v5320_v24  ;;  %7206 = vst [vmem:[#allocation28_spill] sm:$0xff] %v5439_v7  ;;  %v631_v21 = vld [vmem:[#allocation4 + $0x54] sm:$0xff]  ;;  %v627_v31 = vld [vmem:[#allocation4 + $0x3c] sm:$0xff]  ;;  %v5496_v33 = vunpack.c.l.bf16 %v629_v26 }
  0x4d   :  { %788 = vmatpush1.msra.mxu1 %v663_v23  ;;  %4496 = vmatmul.mubr.msk.f32.gmra.mxu0 %vm136_vm0, %v5327_v25  ;;  %7211 = vst [vmem:[#allocation33_spill] sm:$0xff] %v5464_v18  ;;  %v5477_v23 = vunpack.c.l.bf16 %v633_v15  ;;  %v625_v39 = vld [vmem:[#allocation4 + $0x30] sm:$0xff]  ;;  %v5503_v45 = vunpack.c.l.bf16 %v627_v31  ;;  %v656_v47 = vld [vmem:[#allocation4 + $0xe0] ss:$12 sps:$4 sm:$0xff]   ;;  %v644_v57 = vld [vmem:[#allocation4 + $0x98] ss:$12 sps:$4 sm:$0xff]  }
  0x4e   :  { %4505 = vmatpush3.msra.mxu0 %v4037_v5  ;;  %4522 = vmatmul.mubr.msk.f32.gmra.mxu1 %vm136_vm0, %v5332_v27  ;;  %v5434_v5 = vunpack.c.l.bf16 %v641_v63  ;;  %7217 = vst [vmem:[#allocation39_spill] sm:$0xff] %v5496_v33  ;;  %v5525_v53 = vunpack.c.l.bf16 %v656_v47  ;;  %v5565_v63 = vunpack.c.l.bf16 %v644_v57  ;;  %v636_v3 = vld [vmem:[#allocation4 + $0x68] ss:$12 sps:$4 sm:$0xff]  }
  0x4f   :  { %789 = vmatprep.subr.mxu1 %v661_v28  ;;  %4498 = vmatprep.mubr.msk.f32.mxu0 %vm136_vm0, %v5282_v9  ;;  %7213 = vst [vmem:[#allocation35_spill] sm:$0xff] %v5477_v23  ;;  %v5481_v28 = vunpack.c.h.bf16 %v631_v21  ;;  %7219 = vst [vmem:[#allocation41_spill] sm:$0xff] %v5503_v45 }
  0x50   :  { %790 = vmatpush1.msra.mxu1 %v660_v29  ;;  %4506 = vmatprep.subr.mxu0 %v5269_v6  ;;  %7205 = vst [vmem:[#allocation27_spill] sm:$0xff] %v5434_v5  ;;  %v5484_v29 = vunpack.c.l.bf16 %v631_v21  ;;  %7222 = vst [vmem:[#allocation44_spill] sm:$0xff] %v5525_v53 }
  0x51   :  { %791 = vmatprep.subr.mxu1 %v658_v30  ;;  %825 = vmatprep.mubr.f32.mxu1 %v7057_v36  ;;  %7214 = vst [vmem:[#allocation36_spill] sm:$0xff] %v5481_v28  ;;  %v5490_v30 = vunpack.c.h.bf16 %v629_v26  ;;  %7228 = vst [vmem:[#allocation50_spill] sm:$0xff] %v5565_v63 }
  0x52   :  { %792 = vmatpush1.msra.mxu1 %v657_v32  ;;  %4499 = vmatmul.mubr.msk.f32.gmra.mxu0 %vm136_vm0, %v5304_v17  ;;  %7215 = vst [vmem:[#allocation37_spill] sm:$0xff] %v5484_v29  ;;  %v724_v32 = vld [vmem:[#allocation2 + $0x38] sm:$0xff] }
  0x53   :  { %4507 = vmatpush3.msra.mxu0 %v5269_v6  ;;  %3988 = vmatmul.mubr.msk.f32.vlgmr.msra.gmra.mxu1 %vm136_vm0, %v5343_v34  ;;  %v637_v6 = vld [vmem:[#allocation4 + $0x78] sm:$0xff]  ;;  %7216 = vst [vmem:[#allocation38_spill] sm:$0xff] %v5490_v30 }
  0x54   :  { %1437 = vmatprep.subr.mxu1 %v5345_v35  ;;  %4501 = vmatprep.mubr.msk.f32.mxu0 %vm136_vm0, %v5320_v24  ;;  %v5456_v14 = vunpack.c.l.bf16 %v637_v6 }
  0x55   :  { %1438 = vmatpush1.msra.mxu1 %v5348_v37  ;;  %4508 = vmatprep.subr.mxu0 %v5288_v11 }
  0x56   :  { %831 = vmatprep.mubr.f32.mxu1 %v7057_v36  ;;  %1439 = vmatprep.subr.mxu1 %v5352_v38  ;;  %7209 = vst [vmem:[#allocation31_spill] sm:$0xff] %v5456_v14 }
  0x57   :  { %4502 = vmatmul.mubr.msk.f32.gmra.mxu0 %vm136_vm0, %v5332_v27  ;;  %3989 = vmatmul.mubr.msk.f32.gmra.mxu1 %vm136_vm0, %v5360_v40 }
  0x58   :  { %4509 = vmatpush3.msra.mxu0 %v5288_v11  ;;  %1440 = vmatpush1.msra.mxu1 %v5362_v41  ;;  %v5444_v11 = vunpack.c.l.bf16 %v639_v2 }
  0x59   :  { %1441 = vmatprep.subr.mxu1 %v5366_v42  ;;  %4510 = vmatprep.subr.mxu0 %v5291_v13 }
  0x5a   :  { %1442 = vmatpush1.msra.mxu1 %v5370_v44  ;;  %4511 = vmatpush3.msra.mxu0 %v5291_v13  ;;  %7207 = vst [vmem:[#allocation29_spill] sm:$0xff] %v5444_v11  ;;  %v5454_v13 = vld [vmem:[#allocation2 + $0x28] sm:$0xff] }
  0x5b   :  { %4512 = vmatprep.mubr.msk.f32.mxu0 %vm136_vm0, %v5277_v8  ;;  %837 = vmatprep.mubr.f32.mxu1 %v7057_v36 }
  0x5c   :  { %1443 = vmatprep.subr.mxu1 %v5381_v46  ;;  %4513 = vmatmul.mubr.msk.f32.vlgmr.msra.gmra.mxu0 %vm136_vm0, %v5299_v16 }
  0x5d   :  { %4524 = vmatprep.subr.mxu0 %v4045_v48  ;;  %3990 = vmatmul.mubr.msk.f32.gmra.mxu1 %vm136_vm0, %v5387_v49 }
  0x5e   :  { %1444 = vmatpush1.msra.mxu1 %v5389_v50  ;;  %4525 = vmatpush3.msra.mxu0 %v4045_v48  ;;  %v5511_v48 = vunpack.c.l.bf16 %v625_v39 }
  0x5f   :  { %1445 = vmatprep.subr.mxu1 %v5394_v51  ;;  %4526 = vmatprep.subr.mxu0 %v4044_v52 }
  0x60   :  { %1446 = vmatpush1.msra.mxu1 %v5399_v54  ;;  %4515 = vmatprep.mubr.msk.f32.mxu0 %vm136_vm0, %v5310_v20  ;;  %7221 = vst [vmem:[#allocation43_spill] sm:$0xff] %v5511_v48 }
  0x61   :  { %4527 = vmatpush3.msra.mxu0 %v4044_v52  ;;  %843 = vmatprep.mubr.f32.mxu1 %v7057_v36  ;;  %v5515_v52 = vunpack.c.h.bf16 %v656_v47 }
  0x62   :  { %1447 = vmatprep.subr.mxu1 %v5407_v56  ;;  %4516 = vmatmul.mubr.msk.f32.gmra.mxu0 %vm136_vm0, %v5327_v25 }
  0x63   :  { %4528 = vmatprep.subr.mxu0 %v4041_v58  ;;  %3991 = vmatmul.mubr.msk.f32.gmra.mxu1 %vm136_vm0, %v5413_v59 }
  0x64   :  { %1448 = vmatpush1.msra.mxu1 %v5415_v60  ;;  %4529 = vmatpush3.msra.mxu0 %v4041_v58 }
  0x65   :  { %1449 = vmatprep.subr.mxu1 %v5418_v61  ;;  %4530 = vmatprep.subr.mxu0 %v4040_v62 }
  0x66   :  { %1450 = vmatpush1.msra.mxu1 %v5423_v0  ;;  %4531 = vmatpush3.msra.mxu0 %v4040_v62  ;;  %v640_v62 = vld [vmem:[#allocation4 + $0x80] ss:$12 sps:$4 sm:$0xff]  }
  0x67   :  { %4532 = vmatprep.mubr.msk.f32.mxu0 %vm136_vm0, %v5277_v8  ;;  %849 = vmatprep.mubr.f32.mxu1 %v7057_v36  ;;  %v5450_v8 = vunpack.c.h.bf16 %v637_v6  ;;  %v5572_v2 = vunpack.c.h.bf16 %v640_v62  ;;  %v5584_v6 = vunpack.c.h.bf16 %v636_v3 }
  0x68   :  { %1451 = vmatprep.subr.mxu1 %v5428_v1  ;;  %4533 = vmatmul.mubr.msk.f32.vlgmr.msra.gmra.mxu0 %vm136_vm0, %v5299_v16  ;;  %v5459_v16 = vunpack.c.h.bf16 %v635_v12  ;;  %v5590_v12 = vunpack.c.l.bf16 %v636_v3  ;;  %v98_v3 = vld [vmem:[%s7055_s7 + $0x8] sm:$0xff] }
  0x69   :  { %3992 = vmatmul.mubr.msk.f32.gmra.mxu1 %vm136_vm0, %v5432_v4  ;;  %4535 = vmatprep.mubr.msk.f32.mxu0 %vm136_vm0, %v5310_v20  ;;  %7208 = vst [vmem:[#allocation30_spill] sm:$0xff] %v5450_v8  ;;  %v5469_v20 = vunpack.c.h.bf16 %v633_v15  ;;  %7229 = vst [vmem:[#allocation51_spill] sm:$0xff] %v5572_v2  ;;  %v628_v15 = vld [vmem:[#allocation4 + $0x38] ss:$12 sps:$4 sm:$0xff]  }
  0x6a   :  { %1452 = vmatpush1.msra.mxu1 %v5434_v5  ;;  %855 = vmatprep.mubr.f32.mxu1 %v7057_v36  ;;  %7210 = vst [vmem:[#allocation32_spill] sm:$0xff] %v5459_v16  ;;  %7231 = vst [vmem:[#allocation53_spill] sm:$0xff] %v5584_v6  ;;  %v5608_v21 = vunpack.c.h.bf16 %v628_v15 }
  0x6b   :  { %1453 = vmatprep.subr.mxu1 %v5439_v7  ;;  %4544 = vmatprep.subr.mxu0 %v668_v10  ;;  %7212 = vst [vmem:[#allocation34_spill] sm:$0xff] %v5469_v20  ;;  %7232 = vst [vmem:[#allocation54_spill] sm:$0xff] %v5590_v12 }
  0x6c   :  { %1454 = vmatpush1.msra.mxu1 %v5444_v11  ;;  %4536 = vmatmul.mubr.msk.f32.gmra.mxu0 %vm136_vm0, %v5327_v25  ;;  %v620_v25 = vld [vmem:[#allocation4 + $0x8] ss:$12 sps:$4 sm:$0xff]   ;;  %7235 = vst [vmem:[#allocation57_spill] sm:$0xff] %v5608_v21 }
  0x6d   :  { %1455 = vmatprep.subr.mxu1 %v5450_v8  ;;  %3993 = vmatmul.mubr.msk.f32.gmra.mxu1 %vm136_vm0, %v5454_v13  ;;  %v659_v43 = vunpack.c.l.bf16 %v620_v25 }
  0x6e   :  { %4545 = vmatpush3.msra.mxu0 %v668_v10  ;;  %1456 = vmatpush1.msra.mxu1 %v5456_v14  ;;  %v632_v10 = vld [vmem:[#allocation4 + $0x50] ss:$12 sps:$4 sm:$0xff]  }
  0x6f   :  { %1457 = vmatprep.subr.mxu1 %v5459_v16  ;;  %4538 = vmatprep.mubr.msk.f32.mxu0 %vm136_vm0, %v5282_v9  ;;  %v662_v9 = vunpack.c.h.bf16 %v620_v25  ;;  %v100_v25 = vlaneseq }
  0x70   :  { %1458 = vmatpush1.msra.mxu1 %v5464_v18  ;;  %861 = vmatprep.mubr.f32.mxu1 %v7057_v36 }
  0x71   :  { %4546 = vmatprep.subr.mxu0 %v665_v19  ;;  %1459 = vmatprep.subr.mxu1 %v5469_v20 }
  0x72   :  { %4539 = vmatmul.mubr.msk.f32.gmra.mxu0 %vm136_vm0, %v5304_v17  ;;  %3994 = vmatmul.mubr.msk.f32.gmra.mxu1 %vm136_vm0, %v5475_v22  ;;  %v5500_v17 = vunpack.c.h.bf16 %v627_v31  ;;  %v5672_v31 = vshrl.u32 %v100_v25, 7 }
  0x73   :  { %4547 = vmatpush3.msra.mxu0 %v665_v19  ;;  %1460 = vmatpush1.msra.mxu1 %v5477_v23  ;;  %v5602_v19 = vunpack.c.l.bf16 %v632_v10 }
  0x74   :  { %1461 = vmatprep.subr.mxu1 %v5481_v28  ;;  %4541 = vmatprep.mubr.msk.f32.mxu0 %vm136_vm0, %v5320_v24  ;;  %7218 = vst [vmem:[#allocation40_spill] sm:$0xff] %v5500_v17  ;;  %v5508_v24 = vunpack.c.h.bf16 %v625_v39  ;;  %7237 = vst [vmem:[#allocation59_spill] sm:$0xff] %v5672_v31  ;;  %v727_v47 = vsub.s32 1, %v5672_v31 }
  0x75   :  { %1462 = vmatpush1.msra.mxu1 %v5484_v29  ;;  %867 = vmatprep.mubr.f32.mxu1 %v7057_v36  ;;  %7234 = vst [vmem:[#allocation56_spill] sm:$0xff] %v5602_v19 }
  0x76   :  { %4548 = vmatprep.subr.mxu0 %v662_v9  ;;  %1463 = vmatprep.subr.mxu1 %v5490_v30  ;;  %7220 = vst [vmem:[#allocation42_spill] sm:$0xff] %v5508_v24 }
  0x77   :  { %4542 = vmatmul.mubr.msk.f32.gmra.mxu0 %vm136_vm0, %v5332_v27  ;;  %3995 = vmatmul.mubr.msk.f32.gmra.mxu1 %vm136_vm0, %v724_v32  ;;  %v652_v27 = vld [vmem:[#allocation4 + $0xc8] ss:$12 sps:$4 sm:$0xff]  }
  0x78   :  { %4549 = vmatpush3.msra.mxu0 %v662_v9  ;;  %1464 = vmatpush1.msra.mxu1 %v5496_v33  ;;  %v5540_v55 = vunpack.c.l.bf16 %v652_v27 }
  0x79   :  { %1465 = vmatprep.subr.mxu1 %v5500_v17  ;;  %4550 = vmatprep.subr.mxu0 %v659_v43 }
  0x7a   :  { %1466 = vmatpush1.msra.mxu1 %v5503_v45  ;;  %4551 = vmatpush3.msra.mxu0 %v659_v43  ;;  %7224 = vst [vmem:[#allocation46_spill] sm:$0xff] %v5540_v55 }
  0x7b   :  { %4552 = vmatprep.mubr.msk.f32.mxu0 %vm136_vm0, %v5343_v34  ;;  %1467 = vmatprep.subr.mxu1 %v5508_v24  ;;  %v5532_v34 = vunpack.c.h.bf16 %v652_v27 }
  0x7c   :  { %4553 = vmatmul.mubr.msk.f32.vlgmr.msra.gmra.mxu0 %vm136_vm0, %v5360_v40  ;;  %1468 = vmatpush1.msra.mxu1 %v5511_v48  ;;  %v648_v40 = vld [vmem:[#allocation4 + $0xb0] ss:$12 sps:$4 sm:$0xff]  }
  0x7d   :  { %1501 = vmatprep.mubr.f32.mxu1 %v7057_v36  ;;  %4564 = vmatprep.subr.mxu0 %v7057_v36  ;;  %7223 = vst [vmem:[#allocation45_spill] sm:$0xff] %v5532_v34  ;;  %v5554_v58 = vunpack.c.l.bf16 %v648_v40 }
  0x7e   :  { %1502 = vmatmul.mubr.f32.vlgmr.msra.gmra.mxu1 %v7057_v36  ;;  %4565 = vmatpush3.msra.mxu0 %v5515_v52 }
  0x7f   :  { %4555 = vmatprep.mubr.msk.f32.mxu0 %vm136_vm0, %v5387_v49  ;;  %4566 = vmatprep.subr.mxu0 %v7057_v36  ;;  %v5545_v49 = vunpack.c.h.bf16 %v648_v40  ;;  %7226 = vst [vmem:[#allocation48_spill] sm:$0xff] %v5554_v58  ;;  %v97_v40 = vld [vmem:[%s7055_s7] sm:$0xff] }
  0x80   :  { %4556 = vmatmul.mubr.msk.f32.gmra.mxu0 %vm136_vm0, %v5413_v59  ;;  %1600 = vmatprep.subr.mxu1 %v5345_v35  ;;  %v5559_v59 = vunpack.c.h.bf16 %v644_v57 }
  0x81   :  { %4567 = vmatpush3.msra.mxu0 %v5525_v53  ;;  %4558 = vmatprep.mubr.msk.f32.mxu0 %vm136_vm0, %v5432_v4  ;;  %7225 = vst [vmem:[#allocation47_spill] sm:$0xff] %v5545_v49  ;;  %v5578_v4 = vunpack.c.l.bf16 %v640_v62 }
  0x82   :  { %4568 = vmatprep.subr.mxu0 %v7057_v36  ;;  %1601 = vmatpush1.msra.mxu1 %v5348_v37  ;;  %7227 = vst [vmem:[#allocation49_spill] sm:$0xff] %v5559_v59 }
  0x83   :  { %4569 = vmatpush3.msra.mxu0 %v5532_v34  ;;  %1602 = vmatprep.subr.mxu1 %v5352_v38  ;;  %7230 = vst [vmem:[#allocation52_spill] sm:$0xff] %v5578_v4 }
  0x84   :  { %4570 = vmatprep.subr.mxu0 %v7057_v36  ;;  %4559 = vmatmul.mubr.msk.f32.gmra.mxu0 %vm136_vm0, %v5454_v13  ;;  %v5596_v13 = vunpack.c.h.bf16 %v632_v10  ;;  %v5687_v10 = vand.u32 127, %v100_v25 }
  0x85   :  { %4571 = vmatpush3.msra.mxu0 %v5540_v55  ;;  %4561 = vmatprep.mubr.msk.f32.mxu0 %vm136_vm0, %v5475_v22  ;;  %v5614_v22 = vunpack.c.l.bf16 %v628_v15 }
  0x86   :  { %4572 = vmatprep.subr.mxu0 %v7057_v36  ;;  %1603 = vmatpush1.msra.mxu1 %v5362_v41  ;;  %7233 = vst [vmem:[#allocation55_spill] sm:$0xff] %v5596_v13  ;;  %7238 = vst [vmem:[#allocation60_spill] sm:$0xff] %v5687_v10  ;;  %v5700_v25 = vadd.s32 128, %v5687_v10  ;;  %vm1019_vm10 = vcmp.lt.s32.totalorder %v5687_v10, 64 }
  0x87   :  { %4573 = vmatpush3.msra.mxu0 %v5545_v49  ;;  %1604 = vmatprep.subr.mxu1 %v5366_v42  ;;  %7236 = vst [vmem:[#allocation58_spill] sm:$0xff] %v5614_v22 }
  0x88   :  { %4574 = vmatprep.subr.mxu0 %v7057_v36  ;;  %4562 = vmatmul.mubr.msk.f32.gmra.mxu0 %vm136_vm0, %v724_v32 }
  0x89   :  { %4575 = vmatpush3.msra.mxu0 %v5554_v58  ;;  %4596 = vmatprep.mubr.msk.f32.mxu0 %vm5190_vm1, %v7057_v36 }
  0x8a   :  { %4576 = vmatprep.subr.mxu0 %v7057_v36  ;;  %1605 = vmatpush1.msra.mxu1 %v5370_v44 }
  0x8b   :  { %4577 = vmatpush3.msra.mxu0 %v5559_v59  ;;  %1606 = vmatprep.subr.mxu1 %v5381_v46 }
  0x8c   :  { %4578 = vmatprep.subr.mxu0 %v7057_v36  ;;  %1607 = vmatpush1.msra.mxu1 %v5389_v50 }
  0x8d   :  { %4579 = vmatpush3.msra.mxu0 %v5565_v63  ;;  %1608 = vmatprep.subr.mxu1 %v5394_v51 }
  0x8e   :  { %4580 = vmatprep.subr.mxu0 %v7057_v36  ;;  %1609 = vmatpush1.msra.mxu1 %v5399_v54 }
  0x8f   :  { %4581 = vmatpush3.msra.mxu0 %v5572_v2  ;;  %1610 = vmatprep.subr.mxu1 %v5407_v56 }
  0x90   :  { %4582 = vmatprep.subr.mxu0 %v7057_v36  ;;  %1611 = vmatpush1.msra.mxu1 %v5415_v60 }
  0x91   :  { %4583 = vmatpush3.msra.mxu0 %v5578_v4  ;;  %1612 = vmatprep.subr.mxu1 %v5418_v61 }
  0x92   :  { %4584 = vmatprep.subr.mxu0 %v7057_v36  ;;  %1613 = vmatpush1.msra.mxu1 %v5423_v0 }
  0x93   :  { %4585 = vmatpush3.msra.mxu0 %v5584_v6  ;;  %1614 = vmatprep.subr.mxu1 %v5428_v1 }
  0x94   :  { %4586 = vmatprep.subr.mxu0 %v7057_v36  ;;  %1615 = vmatpush1.msra.mxu1 %v5434_v5 }
  0x95   :  { %4587 = vmatpush3.msra.mxu0 %v5590_v12  ;;  %1616 = vmatprep.subr.mxu1 %v5439_v7 }
  0x96   :  { %4588 = vmatprep.subr.mxu0 %v7057_v36  ;;  %1617 = vmatpush1.msra.mxu1 %v5444_v11 }
  0x97   :  { %4589 = vmatpush3.msra.mxu0 %v5596_v13  ;;  %1618 = vmatprep.subr.mxu1 %v5450_v8 }
  0x98   :  { %4590 = vmatprep.subr.mxu0 %v7057_v36  ;;  %1619 = vmatpush1.msra.mxu1 %v5456_v14 }
  0x99   :  { %4591 = vmatpush3.msra.mxu0 %v5602_v19  ;;  %1620 = vmatprep.subr.mxu1 %v5459_v16 }
  0x9a   :  { %4592 = vmatprep.subr.mxu0 %v7057_v36  ;;  %1621 = vmatpush1.msra.mxu1 %v5464_v18 }
  0x9b   :  { %4593 = vmatpush3.msra.mxu0 %v5608_v21  ;;  %1622 = vmatprep.subr.mxu1 %v5469_v20 }
  0x9c   :  { %4594 = vmatprep.subr.mxu0 %v7057_v36  ;;  %1623 = vmatpush1.msra.mxu1 %v5477_v23 }
  0x9d   :  { %4595 = vmatpush3.msra.mxu0 %v5614_v22  ;;  %1624 = vmatprep.subr.mxu1 %v5481_v28 }
  0x9e   :  { %4597 = vmatmul.mubr.f32.vlgmr.msra.gmra.mxu0 %v7057_v36  ;;  %4599 = vmatprep.subr.mxu0 %v7057_v36 }
  0x9f   :  { %4600 = vmatpush3.msra.mxu0 %v5515_v52  ;;  %1625 = vmatpush1.msra.mxu1 %v5484_v29 }
  0xa0   :  { %4601 = vmatprep.subr.mxu0 %v7057_v36  ;;  %1626 = vmatprep.subr.mxu1 %v5490_v30 }
  0xa1   :  { %4602 = vmatpush3.msra.mxu0 %v5525_v53  ;;  %1627 = vmatpush1.msra.mxu1 %v5496_v33 }
  0xa2   :  { %4603 = vmatprep.subr.mxu0 %v7057_v36  ;;  %1628 = vmatprep.subr.mxu1 %v5500_v17 }
  0xa3   :  { %4604 = vmatpush3.msra.mxu0 %v5532_v34  ;;  %1629 = vmatpush1.msra.mxu1 %v5503_v45  ;;  %v542_v45 = vsub.s32 0, %v5672_v31 }
  0xa4   :  { %4605 = vmatprep.subr.mxu0 %v7057_v36  ;;  %1630 = vmatprep.subr.mxu1 %v5508_v24 }
  0xa5   :  { %4606 = vmatpush3.msra.mxu0 %v5540_v55  ;;  %1631 = vmatpush1.msra.mxu1 %v5511_v48  ;;  %v5714_v28 = vrot.slane %v97_v40, %v542_v45 }
  0xa6   :  { %4607 = vmatprep.subr.mxu0 %v7057_v36  ;;  %1664 = vmatprep.mubr.f32.mxu1 %v7057_v36 }
  0xa7   :  { %4608 = vmatpush3.msra.mxu0 %v5545_v49  ;;  %4631 = vmatprep.mubr.msk.f32.mxu0 %vm5190_vm1, %v7057_v36 }
  0xa8   :  { %4609 = vmatprep.subr.mxu0 %v7057_v36  ;;  %1763 = vmatprep.subr.mxu1 %v5345_v35 }
  0xa9   :  { %4610 = vmatpush3.msra.mxu0 %v5554_v58 }
  0xaa   :  { %4611 = vmatprep.subr.mxu0 %v7057_v36 }
  0xab   :  { %4612 = vmatpush3.msra.mxu0 %v5559_v59 }
  0xac   :  { %4613 = vmatprep.subr.mxu0 %v7057_v36 }
  0xad   :  { %4614 = vmatpush3.msra.mxu0 %v5565_v63 }
  0xae   :  { %4615 = vmatprep.subr.mxu0 %v7057_v36 }
  0xaf   :  { %4616 = vmatpush3.msra.mxu0 %v5572_v2 }
  0xb0   :  { %4617 = vmatprep.subr.mxu0 %v7057_v36 }
  0xb1   :  { %4618 = vmatpush3.msra.mxu0 %v5578_v4 }
  0xb2   :  { %4619 = vmatprep.subr.mxu0 %v7057_v36 }
  0xb3   :  { %4620 = vmatpush3.msra.mxu0 %v5584_v6 }
  0xb4   :  { %4621 = vmatprep.subr.mxu0 %v7057_v36 }
  0xb5   :  { %4622 = vmatpush3.msra.mxu0 %v5590_v12 }
  0xb6   :  { %4623 = vmatprep.subr.mxu0 %v7057_v36 }
  0xb7   :  { %4624 = vmatpush3.msra.mxu0 %v5596_v13 }
  0xb8   :  { %4625 = vmatprep.subr.mxu0 %v7057_v36 }
  0xb9   :  { %4626 = vmatpush3.msra.mxu0 %v5602_v19  ;;  %v99_v19 = vld [vmem:[%s7055_s7 + $0x10] sm:$0xff] }
  0xba   :  { %4627 = vmatprep.subr.mxu0 %v7057_v36  ;;  %v5716_v12 = vrot.slane %v99_v19, %v727_v47 }
  0xbb   :  { %4628 = vmatpush3.msra.mxu0 %v5608_v21  ;;  %v5693_v21 = vrot.slane %v98_v3, %v727_v47  ;;  %v5709_v3 = vadd.s32 256, %v5687_v10  ;;  %v7316_v10 = vld [vmem:[#allocation32_spill] sm:$0xff] }
  0xbc   :  { %4629 = vmatprep.subr.mxu0 %v7057_v36 }
  0xbd   :  { %4630 = vmatpush3.msra.mxu0 %v5614_v22 }
  0xbe   :  { %4634 = vmatprep.subr.mxu0 %v7057_v36  ;;  %v5689_v36 = vrot.slane %v97_v40, %v727_v47 }
 0x109   :  { %v5670_v26 = vpop.f32.mrf.mxu0  ;;  %v4520_v9 = vpop.f32.mrf.mxu1 }
 0x10a   :  { %v489_v15 = vrot.slane %v4520_v9, 1 }
 0x10b   :  { %v5674_v32 = vpop.f32.mrf.mxu0  ;;  %v352_v39 = vpop.f32.mrf.mxu1 }
 0x10c   :  { %v488_v22 = vrot.slane %v352_v39, 1  ;;  %v102_v39 = vsub.s32 2, %v5672_v31 }
 0x10d   :  { %v5676_v43 = vpop.f32.mrf.mxu0 }
 0x10e   :  { %v4523_v27 = vpop.f32.mrf.mxu1  ;;  %v5725_v20 = vrot.slane %v97_v40, %v102_v39 }
 0x10f   :  { %v5682_v57 = vpop.f32.mrf.mxu0 }
 0x110   :  { %v362_v62 = vpop.f32.mrf.mxu1  ;;  %7239 = vst [vmem:[#allocation61_spill] sm:$0xff] %v5725_v20 }
 0x112   :  { %v4500_v35 = vpop.f32.mrf.mxu0 }
 0x113   :  { %v5691_v48 = vadd.f32 %v4500_v35, %v489_v15  ;;  %v827_v24 = vpop.f32.mrf.mxu1  ;;  %v491_v15 = vrot.slane %v4523_v27, 1 }
 0x114   :  { %v247_v17 = vpop.f32.mrf.mxu0  ;;  %v5703_v9 = vadd.f32 %v827_v24, %v5689_v36  ;;  %v490_v24 = vrot.slane %v362_v62, 1 }
 0x115   :  { %v5705_v33 = vadd.f32 %v488_v22, %v247_v17  ;;  %v829_v35 = vpop.f32.mrf.mxu1 }
 0x116   :  { %v5712_v30 = vadd.f32 %v829_v35, %v5693_v21  ;;  %v1098_v35 = vrot.slane %v5703_v9, 7  ;;  %v1146_v6 = vrot.slane %v5703_v9, 1  ;;  %v1239_v47 = vrot.slane %v5703_v9, 2 }
 0x117   :  { %v4503_v13 = vpop.f32.mrf.mxu0  ;;  %v833_v29 = vpop.f32.mrf.mxu1 }
 0x118   :  { %v5718_v17 = vadd.f32 %v4503_v13, %v491_v15  ;;  %v5721_v22 = vadd.f32 %v833_v29, %v5689_v36  ;;  %v1191_v29 = vrot.slane %v5703_v9, 6  ;;  %v1112_v62 = vrot.slane %v5712_v30, 7 }
 0x119   :  { %v257_v23 = vpop.f32.mrf.mxu0  ;;  %v835_v27 = vpop.f32.mrf.mxu1  ;;  %v1284_v15 = vrot.slane %v5703_v9, 5 }
 0x11a   :  { %v5729_v19 = vadd.f32 %v490_v24, %v257_v23  ;;  %v5732_v13 = vadd.f32 %v835_v27, %v5693_v21  ;;  %v1046_v23 = vrot.slane %v5721_v22, 7  ;;  %v1160_v24 = vrot.slane %v5712_v30, 1 }
 0x11b   :  { %v1205_v27 = vrot.slane %v5712_v30, 6  ;;  %v1099_v4 = vrot.slane %v5721_v22, 6  ;;  %v1192_v14 = vrot.slane %v5721_v22, 5  ;;  %v1240_v7 = vrot.slane %v5721_v22, 1 }
 0x11c   :  { %v4514_v45 = vpop.f32.mrf.mxu0  ;;  %v1067_v2 = vrot.slane %v5732_v13, 7  ;;  %v1113_v11 = vrot.slane %v5732_v13, 6  ;;  %v1206_v5 = vrot.slane %v5732_v13, 5  ;;  %v1147_v59 = vsel %vm1047_vm2, %v5721_v22, %v1146_v6 }
 0x11d   :  { %v485_v18 = vrot.slane %v4514_v45, 1  ;;  %v839_v16 = vpop.f32.mrf.mxu1  ;;  %v1285_v0 = vrot.slane %v5721_v22, 4  ;;  %v1241_v6 = vsel %vm1047_vm2, %v1240_v7, %v1239_v47 }
 0x11e   :  { %v5748_v40 = vadd.f32 %v839_v16, %v5689_v36  ;;  %v332_v39 = vpop.f32.mrf.mxu0  ;;  %v1048_v16 = vsel %vm1047_vm2, %v1046_v23, %v5703_v9  ;;  %v1068_v23 = vsel %vm1047_vm2, %v1067_v2, %v5712_v30  ;;  %v1114_v58 = vsel %vm1047_vm2, %v1113_v11, %v1112_v62 }
 0x11f   :  { %v501_v31 = vadd.f32 %v5670_v26, %v485_v18  ;;  %v484_v45 = vrot.slane %v332_v39, 1  ;;  %v841_v63 = vpop.f32.mrf.mxu1  ;;  %v1100_v18 = vsel %vm1047_vm2, %v1099_v4, %v1098_v35  ;;  %v1193_v26 = vsel %vm1047_vm2, %v1192_v14, %v1191_v29 }
 0x120   :  { %v5757_v8 = vadd.f32 %v841_v63, %v5693_v21  ;;  %v1161_v39 = vsel %vm1047_vm2, %v5732_v13, %v1160_v24  ;;  %v1049_v63 = vrot.slane %v5748_v40, 6  ;;  %v1101_v4 = vrot.slane %v5748_v40, 5 }
 0x121   :  { %v500_v61 = vadd.f32 %v484_v45, %v5674_v32  ;;  %v1148_v14 = vrot.slane %v5748_v40, 7  ;;  %v1207_v32 = vsel %vm1047_vm2, %v1206_v5, %v1205_v27  ;;  %v1194_v2 = vrot.slane %v5748_v40, 4 }
 0x122   :  { %v4517_v1 = vpop.f32.mrf.mxu0  ;;  %v1069_v24 = vrot.slane %v5757_v8, 6  ;;  %v1286_v11 = vsel %vm1047_vm2, %v1285_v0, %v1284_v15  ;;  %v1115_v62 = vrot.slane %v5757_v8, 5  ;;  %v1162_v45 = vrot.slane %v5757_v8, 7 }
 0x123   :  { %v487_v60 = vrot.slane %v4517_v1, 1  ;;  %v845_v56 = vpop.f32.mrf.mxu1  ;;  %v1242_v27 = vsel %vm1050_vm3, %v5748_v40, %v1241_v6  ;;  %v1287_v49 = vrot.slane %v5748_v40, 3  ;;  %v1208_v15 = vrot.slane %v5757_v8, 4 }
 0x124   :  { %v5778_v35 = vadd.f32 %v845_v56, %v5689_v36  ;;  %v342_v29 = vpop.f32.mrf.mxu0  ;;  %v1051_v56 = vsel %vm1050_vm3, %v1049_v63, %v1048_v16  ;;  %v1070_v16 = vsel %vm1050_vm3, %v1069_v24, %v1068_v23  ;;  %v1195_v63 = vsel %vm1050_vm3, %v1194_v2, %v1193_v26 }
 0x125   :  { %v503_v1 = vadd.f32 %v5676_v43, %v487_v60  ;;  %v486_v7 = vrot.slane %v342_v29, 1  ;;  %v847_v47 = vpop.f32.mrf.mxu1  ;;  %v1102_v60 = vsel %vm1050_vm3, %v1101_v4, %v1100_v18  ;;  %v1149_v43 = vsel %vm1050_vm3, %v1148_v14, %v1147_v59 }
 0x126   :  { %v5787_v5 = vadd.f32 %v847_v47, %v5693_v21  ;;  %v1052_v47 = vrot.slane %v5778_v35, 5  ;;  %v1103_v54 = vrot.slane %v5778_v35, 4  ;;  %v1116_v55 = vsel %vm1050_vm3, %v1115_v62, %v1114_v58 }
 0x127   :  { %v502_v0 = vadd.f32 %v486_v7, %v5682_v57  ;;  %v1150_v57 = vrot.slane %v5778_v35, 6  ;;  %v1163_v18 = vsel %vm1050_vm3, %v1162_v45, %v1161_v39  ;;  %v1196_v7 = vrot.slane %v5778_v35, 3 }
 0x128   :  { %v4534_v29 = vpop.f32.mrf.mxu0  ;;  %v1071_v4 = vrot.slane %v5787_v5, 5  ;;  %v1117_v14 = vrot.slane %v5787_v5, 4  ;;  %v5808_v50 = vsel %vm1050_vm3, %v1287_v49, %v1286_v11  ;;  %v5811_v58 = vsel %vm1050_vm3, %v1208_v15, %v1207_v32 }
 0x129   :  { %v517_v6 = vrot.slane %v4534_v29, 2  ;;  %v851_v51 = vpop.f32.mrf.mxu1  ;;  %v1243_v2 = vrot.slane %v5778_v35, 7  ;;  %v1054_v45 = vsel %vm1053_vm4, %v1052_v47, %v1051_v56  ;;  %v1104_v29 = vsel %vm1053_vm4, %v1103_v54, %v1102_v60 }
 0x12a   :  { %v437_v59 = vpop.f32.mrf.mxu0  ;;  %v5815_v39 = vadd.f32 %v851_v51, %v5689_v36  ;;  %v1164_v49 = vrot.slane %v5787_v5, 6  ;;  %v5822_v32 = vsel %vm1053_vm4, %v1150_v57, %v1149_v43  ;;  %v5825_v46 = vsel %vm1053_vm4, %v1071_v4, %v1070_v16 }
 0x12b   :  { %v533_v23 = vadd.f32 %v517_v6, %v501_v31  ;;  %v516_v26 = vrot.slane %v437_v59, 2  ;;  %v853_v24 = vpop.f32.mrf.mxu1  ;;  %v5828_v51 = vsel %vm1053_vm4, %v1117_v14, %v1116_v55  ;;  %v5831_v56 = vsel %vm1053_vm4, %v1196_v7, %v1195_v63 }
 0x12c   :  { %v4537_v62 = vpop.f32.mrf.mxu0  ;;  %v1055_v43 = vrot.slane %v5815_v39, 4  ;;  %v1105_v57 = vrot.slane %v5815_v39, 3  ;;  %v5838_v16 = vsel %vm1053_vm4, %v1164_v49, %v1163_v18  ;;  %v5841_v55 = vsel %vm1053_vm4, %v1243_v2, %v1242_v27 }
 0x12d   :  { %v545_v31 = vadd.f32 %v5714_v28, %v533_v23  ;;  %v532_v11 = vadd.f32 %v516_v26, %v500_v61  ;;  %v519_v6 = vrot.slane %v4537_v62, 2  ;;  %v857_v59 = vpop.f32.mrf.mxu1 }
 0x12e   :  { %v447_v15 = vpop.f32.mrf.mxu0 }
 0x12f   :  { %v553_v60 = vmax.f32 %v545_v31, 0.0  ;;  %v544_v61 = vadd.f32 %v5714_v28, %v532_v11  ;;  %v535_v47 = vadd.f32 %v519_v6, %v503_v1  ;;  %v518_v23 = vrot.slane %v447_v15, 2  ;;  %v859_v26 = vpop.f32.mrf.mxu1 }
 0x130   :  { %v5846_v1 = vadd.f32 %v853_v24, %v5693_v21  ;;  %v5849_v31 = vadd.f32 %v857_v59, %v5689_v36  ;;  %v5858_v24 = vsel %vm1056_vm6, %v1105_v57, %v1104_v29 }
 0x131   :  { %v568_v63 = vsel %vm560_vm5, %v553_v60, -inf  ;;  %v552_v4 = vmax.f32 %v544_v61, 0.0  ;;  %v547_v14 = vadd.f32 %v5714_v28, %v535_v47  ;;  %v534_v7 = vadd.f32 %v518_v23, %v502_v0 }
 0x132   :  { %v569_v62 = vrot.slane %v568_v63, 4  ;;  %v4540_v11 = vpop.f32.mrf.mxu0  ;;  %v863_v61 = vpop.f32.mrf.mxu1  ;;  %v5855_v47 = vsel %vm1056_vm6, %v1055_v43, %v1054_v45  ;;  %v1058_v57 = vrot.slane %v5849_v31, 3 }
 0x133   :  { %v561_v49 = vsel %vm560_vm5, %v552_v4, -inf  ;;  %v555_v27 = vmax.f32 %v547_v14, 0.0  ;;  %v546_v2 = vadd.f32 %v5714_v28, %v534_v7  ;;  %v521_v6 = vrot.slane %v4540_v11, 2 }
 0x134   :  { %v570_v15 = vmax.f32 %v568_v63, %v569_v62  ;;  %v562_v60 = vrot.slane %v561_v49, 4  ;;  %v457_v0 = vpop.f32.mrf.mxu0  ;;  %v5863_v7 = vadd.f32 %v859_v26, %v5693_v21  ;;  %v1073_v63 = vrot.slane %v5846_v1, 4 }
 0x135   :  { %v582_v59 = vsel %vm560_vm5, %v555_v27, -inf  ;;  %v554_v23 = vmax.f32 %v546_v2, 0.0  ;;  %v537_v54 = vadd.f32 %v521_v6, %v5691_v48  ;;  %v520_v4 = vrot.slane %v457_v0, 2  ;;  %v865_v6 = vpop.f32.mrf.mxu1 }
 0x136   :  { %v571_v14 = vrot.slane %v570_v15, 2  ;;  %v563_v18 = vmax.f32 %v561_v49, %v562_v60  ;;  %v583_v48 = vrot.slane %v582_v59, 4 }
 0x137   :  { %v575_v62 = vsel %vm560_vm5, %v554_v23, -inf  ;;  %v549_v45 = vadd.f32 %v5714_v28, %v537_v54  ;;  %v536_v29 = vadd.f32 %v520_v4, %v5705_v33  ;;  %v4543_v43 = vpop.f32.mrf.mxu0  ;;  %v1107_v23 = vrot.slane %v5849_v31, 2  ;;  %v869_v53 = vpop.f32.mrf.mxu1 }
 0x138   :  { %v572_v11 = vmax.f32 %v570_v15, %v571_v14  ;;  %v564_v27 = vrot.slane %v563_v18, 2  ;;  %v576_v2 = vrot.slane %v575_v62, 4  ;;  %v523_v60 = vrot.slane %v4543_v43, 2 }
 0x139   :  { %v557_v49 = vmax.f32 %v549_v45, 0.0  ;;  %v548_v26 = vadd.f32 %v5714_v28, %v536_v29  ;;  %v467_v0 = vpop.f32.mrf.mxu0  ;;  %v5873_v33 = vadd.f32 %v863_v61, %v5689_v36  ;;  %v584_v29 = vmax.f32 %v582_v59, %v583_v48 }
 0x13a   :  { %v573_v34 = vrot.slane %v572_v11, 1  ;;  %v565_v54 = vmax.f32 %v563_v18, %v564_v27  ;;  %v577_v44 = vmax.f32 %v575_v62, %v576_v2  ;;  %v539_v14 = vadd.f32 %v523_v60, %v5718_v17 }
 0x13b   :  { %v596_v15 = vsel %vm560_vm5, %v557_v49, -inf  ;;  %v556_v4 = vmax.f32 %v548_v26, 0.0  ;;  %v522_v42 = vrot.slane %v467_v0, 2  ;;  %v1074_v18 = vsel %vm1056_vm6, %v1073_v63, %v5825_v46 }
 0x13c   :  { %v566_v45 = vrot.slane %v565_v54, 1  ;;  %v578_v43 = vrot.slane %v577_v44, 2  ;;  %v4554_v41 = vpop.f32.mrf.mxu0  ;;  %v574_v61 = vmax.f32 %v572_v11, %v573_v34  ;;  %v551_v27 = vadd.f32 %v5714_v28, %v539_v14  ;;  %v871_v14 = vpop.f32.mrf.mxu1 }
 0x13d   :  { %v589_v62 = vsel %vm560_vm5, %v556_v4, -inf  ;;  %v538_v17 = vadd.f32 %v522_v42, %v5729_v19  ;;  %v597_v26 = vrot.slane %v596_v15, 4  ;;  %v5884_v0 = vadd.f32 %v869_v53, %v5689_v36 }
 0x13e   :  { %v567_v2 = vmax.f32 %v565_v54, %v566_v45  ;;  %v579_v49 = vmax.f32 %v577_v44, %v578_v43  ;;  %v590_v60 = vrot.slane %v589_v62, 4  ;;  %v940_v59 = vpop.f32.mrf.mxu0  ;;  %v559_v48 = vmax.f32 %v551_v27, 0.0 }
 0x13f   :  { %v550_v38 = vadd.f32 %v5714_v28, %v538_v17  ;;  %v1061_v46 = vrot.slane %v5873_v33, 2  ;;  %v585_v63 = vrot.slane %v584_v29, 2  ;;  %v1060_v54 = vsel %vm1059_vm7, %v1058_v57, %v5855_v47 }
 0x140   :  { %v3010_v34 = vsel %vm1047_vm2, %v574_v61, %v567_v2  ;;  %v580_v11 = vrot.slane %v579_v49, 1  ;;  %v591_v4 = vmax.f32 %v589_v62, %v590_v60  ;;  %v4557_v42 = vpop.f32.mrf.mxu0  ;;  %v610_v44 = vsel %vm560_vm5, %v559_v48, -inf }
 0x141   :  { %v558_v19 = vmax.f32 %v550_v38, 0.0  ;;  %v1075_v36 = vrot.slane %v5863_v7, 3  ;;  %v598_v45 = vmax.f32 %v596_v15, %v597_v26  ;;  %v5894_v28 = vadd.f32 %v865_v6, %v5693_v21 }
 0x142   :  { %v581_v53 = vmax.f32 %v579_v49, %v580_v11  ;;  %v611_v43 = vrot.slane %v610_v44, 4  ;;  %v950_v61 = vpop.f32.mrf.mxu0  ;;  %v592_v27 = vrot.slane %v591_v4, 2  ;;  %v5897_v62 = vadd.f32 %v871_v14, %v5693_v21  ;;  %v1503_v14 = vpop.f32.mrf.mxu1 }
 0x143   :  { %v1064_v17 = vrot.slane %v5884_v0, 1  ;;  %v1109_v38 = vrot.slane %v5873_v33, 1  ;;  %v5901_v2 = vmax.f32 %v584_v29, %v585_v63  ;;  %v1063_v57 = vsel %vm1062_vm8, %v1061_v46, %v1060_v54 }
 0x144   :  { %v5904_v47 = vsel %vm1050_vm3, %v581_v53, %v3010_v34  ;;  %v1108_v6 = vsel %vm1059_vm7, %v1107_v23, %v5858_v24  ;;  %v7241_v15 = vand.u32 127, %v5700_v25  ;;  %v7242_v49 = vmov 0  ;;  %v4560_v21 = vpop.f32.mrf.mxu0 }
 0x145   :  { %7240 = vst [vmem:[#allocation62_spill] sm:$0xff] %v5904_v47  ;;  %v612_v26 = vmax.f32 %v610_v44, %v611_v43  ;;  %v603_v60 = vsel %vm560_vm5, %v558_v19, -inf  ;;  %v5917_v29 = vsel %vm1065_vm9, %v1064_v17, %v1063_v57  ;;  %v1110_v48 = vsel %vm1062_vm8, %v1109_v38, %v1108_v6 }
 0x146   :  { %vm5911_vm11 = vcmp.lt.s32.totalorder %v7241_v15, 64  ;;  %7245 = vst [vmem:[#allocation64_spill] sm:$0xff] %v5917_v29  ;;  %v599_v34 = vrot.slane %v598_v45, 2  ;;  %v5922_v46 = vsel %vm1065_vm9, %v5884_v0, %v1110_v48  ;;  %v1076_v25 = vsel %vm1059_vm7, %v1075_v36, %v1074_v18  ;;  %v960_v24 = vpop.f32.mrf.mxu0 }
 0x147   :  { %v7243_v49 = vsel %vm5911_vm11, 4294967295, %v7242_v49  ;;  %7246 = vst [vmem:[#allocation65_spill] sm:$0xff] %v5922_v46  ;;  %v5926_v63 = vmax.f32 %v591_v4, %v592_v27  ;;  %v1143_v11 = vsel %vm1019_vm10, %v5917_v29, %v5922_v46  ;;  %v1077_v44 = vrot.slane %v5894_v28, 2 }
 0x148   :  { %7244 = vst [vmem:[#allocation63_spill] sm:$0xff] %v7243_v49  ;;  %v1079_v19 = vrot.slane %v5897_v62, 1  ;;  %v604_v53 = vrot.slane %v603_v60, 4  ;;  %v5936_v18 = vadd.f32 %v4554_v41, %v5716_v12  ;;  %v1578_v36 = vadd.f32 %v1503_v14, %v1143_v11  ;;  %v4563_v43 = vpop.f32.mrf.mxu0 }
 0x149   :  { %v613_v4 = vrot.slane %v612_v26, 2  ;;  %v1119_v27 = vrot.slane %v5846_v1, 3  ;;  %v1121_v17 = vrot.slane %v5863_v7, 2  ;;  %v1123_v38 = vrot.slane %v5894_v28, 1 }
 0x14a   :  { %v5941_v57 = vmax.f32 %v598_v45, %v599_v34  ;;  %v4004_v6 = vmul.f32 -1.442695, %v1578_v36  ;;  %v5944_v15 = vadd.f32 %v940_v59, %v5716_v12  ;;  %v1078_v48 = vsel %vm1062_vm8, %v1077_v44, %v1076_v25  ;;  %v970_v25 = vpop.f32.mrf.mxu0 }
 0x14b   :  { %v5949_v11 = vsel %vm1065_vm9, %v1079_v19, %v1078_v48  ;;  %v1120_v14 = vsel %vm1056_vm6, %v1119_v27, %v5828_v51  ;;  %v5954_v54 = vadd.f32 %v950_v61, %v5716_v12  ;;  %v5958_v34 = vadd.f32 %v4557_v42, %v5716_v12 }
 0x14c   :  { %7247 = vst [vmem:[#allocation66_spill] sm:$0xff] %v5949_v11  ;;  %4989 = vpow2.f32 %v4004_v6  ;;  %v1122_v45 = vsel %vm1059_vm7, %v1121_v17, %v1120_v14  ;;  %v5961_v59 = vadd.f32 %v960_v24, %v5716_v12  ;;  %v5963_v44 = vmax.f32 %v612_v26, %v613_v4 }
 0x14d   :  { %v5965_v19 = vmax.f32 %v603_v60, %v604_v53  ;;  %v1124_v36 = vsel %vm1062_vm8, %v1123_v38, %v1122_v45  ;;  %v1081_v51 = vrot.slane %v5936_v18, 7  ;;  %v5974_v27 = vadd.f32 %v4560_v21, %v5716_v12  ;;  %v1505_v60 = vpop.f32.mrf.mxu1 }
 0x14e   :  { %7248 = vst [vmem:[#allocation67_spill] sm:$0xff] %v5963_v44  ;;  %v5971_v61 = vsel %vm1065_vm9, %v5897_v62, %v1124_v36  ;;  %v1083_v42 = vrot.slane %v5954_v54, 6  ;;  %v1085_v24 = vrot.slane %v5958_v34, 5  ;;  %v5983_v53 = vadd.f32 %v970_v25, %v5716_v12 }
 0x14f   :  { %7249 = vst [vmem:[#allocation68_spill] sm:$0xff] %v5971_v61  ;;  %v1144_v26 = vsel %vm5911_vm11, %v5949_v11, %v5971_v61  ;;  %v1082_v4 = vsel %vm1047_vm2, %v1081_v51, %v5944_v15  ;;  %v1087_v17 = vrot.slane %v5961_v59, 4  ;;  %v5989_v38 = vadd.f32 %v4563_v43, %v5716_v12 }
 0x150   :  { %v1585_v21 = vadd.f32 %v1505_v60, %v1144_v26  ;;  %v1084_v6 = vsel %vm1050_vm3, %v1083_v42, %v1082_v4  ;;  %v1089_v48 = vrot.slane %v5974_v27, 3  ;;  %v1126_v45 = vrot.slane %v5944_v15, 7 }
 0x151   :  { %v1086_v14 = vsel %vm1053_vm4, %v1085_v24, %v1084_v6  ;;  %v1127_v25 = vrot.slane %v5936_v18, 6  ;;  %v1129_v36 = vrot.slane %v5954_v54, 5  ;;  %v1131_v26 = vrot.slane %v5958_v34, 4 }
 0x152   :  { %v4005_v41 = vmul.f32 -1.442695, %v1585_v21  ;;  %v1088_v51 = vsel %vm1056_vm6, %v1087_v17, %v1086_v14  ;;  %v1133_v12 = vrot.slane %v5961_v59, 3  ;;  %v606_v43 = vrot.slane %v5965_v19, 2 }
 0x153   :  { %v1091_v42 = vrot.slane %v5983_v53, 2  ;;  %v1093_v60 = vrot.slane %v5989_v38, 1  ;;  %v1128_v24 = vsel %vm1047_vm2, %v1127_v25, %v1126_v45  ;;  %v1090_v4 = vsel %vm1059_vm7, %v1089_v48, %v1088_v51 }
 0x154   :  { %4991 = vpow2.f32 %v4005_v41  ;;  %v1130_v6 = vsel %vm1050_vm3, %v1129_v36, %v1128_v24  ;;  %v1135_v21 = vrot.slane %v5974_v27, 2  ;;  %v1137_v14 = vrot.slane %v5983_v53, 1 }
 0x155   :  { %v1132_v17 = vsel %vm1053_vm4, %v1131_v26, %v1130_v6  ;;  %v1154_v23 = vrot.slane %v5849_v31, 4  ;;  %v1156_v61 = vrot.slane %v5873_v33, 3  ;;  %v7250_v11 = vand.u32 127, %v5709_v3 }
 0x156   :  { %v1134_v41 = vsel %vm1056_vm6, %v1133_v12, %v1132_v17  ;;  %v7253_v48 = vrot.slane %v5815_v39, 5  ;;  %v1158_v25 = vrot.slane %v5884_v0, 2  ;;  %v1200_v36 = vrot.slane %v5849_v31, 1 }
 0x157   :  { %vm6013_vm12 = vcmp.lt.s32.totalorder %v7250_v11, 64  ;;  %v7254_v3 = vrot.slane %v5815_v39, 2  ;;  %v1203_v26 = vrot.slane %v5884_v0, 7  ;;  %v1174_v12 = vrot.slane %v5944_v15, 1 }
 0x158   :  { %v1153_v45 = vsel %vm1056_vm6, %v7253_v48, %v5822_v32  ;;  %v1092_v24 = vsel %vm1062_vm8, %v1091_v42, %v1090_v4  ;;  %v1176_v17 = vrot.slane %v5954_v54, 7 }
 0x159   :  { %v1155_v51 = vsel %vm1059_vm7, %v1154_v23, %v1153_v45  ;;  %v1199_v11 = vsel %vm1056_vm6, %v7254_v3, %v5831_v56  ;;  %v4990_v48 = vpop.eup %4989  ;;  %v1136_v23 = vsel %vm1059_vm7, %v1135_v21, %v1134_v41  ;;  %v1175_v3 = vsel %vm1047_vm2, %v5936_v18, %v1174_v12 }
 0x15a   :  { %v1157_v6 = vsel %vm1062_vm8, %v1156_v61, %v1155_v51  ;;  %v1201_v32 = vsel %vm1059_vm7, %v1200_v36, %v1199_v11  ;;  %v1582_v29 = vadd.f32 1.0, %v4990_v48  ;;  %v1138_v42 = vsel %vm1062_vm8, %v1137_v14, %v1136_v23 }
 0x15b   :  { %v6037_v45 = vsel %vm1065_vm9, %v1158_v25, %v1157_v6  ;;  %v1202_v56 = vsel %vm1062_vm8, %v5873_v33, %v1201_v32  ;;  %v1177_v4 = vsel %vm1050_vm3, %v1176_v17, %v1175_v3  ;;  %v1178_v41 = vrot.slane %v5958_v34, 6 }
 0x15c   :  { %v6045_v61 = vsel %vm1065_vm9, %v1203_v26, %v1202_v56  ;;  %v1180_v25 = vrot.slane %v5961_v59, 5  ;;  %v1182_v36 = vrot.slane %v5974_v27, 4  ;;  %4993 = vrcp.f32 %v1582_v29 }
 0x15d   :  { %v6052_v21 = vsel %vm1019_vm10, %v6037_v45, %v6045_v61  ;;  %v1184_v14 = vrot.slane %v5983_v53, 3  ;;  %v1186_v51 = vrot.slane %v5989_v38, 2  ;;  %v1219_v11 = vrot.slane %v5944_v15, 6 }
 0x15e   :  { %7255 = vst [vmem:[#allocation69_spill] sm:$0xff] %v6052_v21  ;;  %v1179_v26 = vsel %vm1053_vm4, %v1178_v41, %v1177_v4  ;;  %v1220_v12 = vrot.slane %v5936_v18, 5  ;;  %v1222_v6 = vrot.slane %v5954_v54, 4  ;;  %v1224_v32 = vrot.slane %v5958_v34, 3  ;;  %v1574_v48 = vpop.f32.mrf.mxu0 }
 0x15f   :  { %v6065_v17 = vsel %vm1065_vm9, %v1093_v60, %v1092_v24  ;;  %v6069_v29 = vsel %vm1065_vm9, %v5989_v38, %v1138_v42  ;;  %v1181_v23 = vsel %vm1056_vm6, %v1180_v25, %v1179_v26  ;;  %v1226_v56 = vrot.slane %v5961_v59, 2 }
 0x160   :  { %7256 = vst [vmem:[#allocation70_spill] sm:$0xff] %v6065_v17  ;;  %7257 = vst [vmem:[#allocation71_spill] sm:$0xff] %v6069_v29  ;;  %v1183_v3 = vsel %vm1059_vm7, %v1182_v36, %v1181_v23  ;;  %v1221_v4 = vsel %vm1047_vm2, %v1220_v12, %v1219_v11  ;;  %v1228_v41 = vrot.slane %v5974_v27, 1  ;;  %v1166_v21 = vrot.slane %v5846_v1, 5  ;;  %v4598_v24 = vpop.f32.mrf.mxu0 }
 0x161   :  { %v6078_v60 = vmax.f32 %v5965_v19, %v606_v43  ;;  %v1185_v42 = vsel %vm1062_vm8, %v1184_v14, %v1183_v3  ;;  %v1223_v47 = vsel %vm1050_vm3, %v1222_v6, %v1221_v4  ;;  %v1168_v25 = vrot.slane %v5863_v7, 4  ;;  %v4992_v26 = vpop.eup %4991 }
 0x162   :  { %v1145_v36 = vsel %vm6013_vm12, %v6065_v17, %v6069_v29  ;;  %v6088_v11 = vsel %vm1065_vm9, %v1186_v51, %v1185_v42  ;;  %v1225_v12 = vsel %vm1053_vm4, %v1224_v32, %v1223_v47  ;;  %v1231_v19 = vrot.slane %v5989_v38, 7 }
 0x163   :  { %7258 = vst [vmem:[#allocation72_spill] sm:$0xff] %v6088_v11  ;;  %v1589_v43 = vadd.f32 1.0, %v4992_v26  ;;  %v1592_v14 = vadd.f32 %v1574_v48, %v5725_v20  ;;  %v1227_v6 = vsel %vm1056_vm6, %v1226_v56, %v1225_v12  ;;  %v1170_v23 = vrot.slane %v5894_v28, 3 }
 0x164   :  { %v1229_v3 = vsel %vm1059_vm7, %v1228_v41, %v1227_v6  ;;  %v1167_v4 = vsel %vm1056_vm6, %v1166_v21, %v5838_v16  ;;  %v1172_v24 = vrot.slane %v5897_v62, 2  ;;  %v1212_v51 = vrot.slane %v5846_v1, 2 }
 0x165   :  { %4995 = vrcp.f32 %v1589_v43  ;;  %v1230_v47 = vsel %vm1062_vm8, %v5983_v53, %v1229_v3  ;;  %v1169_v32 = vsel %vm1059_vm7, %v1168_v25, %v1167_v4  ;;  %v1214_v48 = vrot.slane %v5863_v7, 1 }
 0x166   :  { %v6105_v56 = vsel %vm1065_vm9, %v1231_v19, %v1230_v47  ;;  %v7260_v41 = vrot.slane %v5787_v5, 3  ;;  %v1245_v21 = vrot.slane %v5815_v39, 6  ;;  %v1247_v42 = vrot.slane %v5849_v31, 5 }
 0x167   :  { %7259 = vst [vmem:[#allocation73_spill] sm:$0xff] %v6105_v56  ;;  %v1171_v25 = vsel %vm1062_vm8, %v1170_v23, %v1169_v32  ;;  %v1249_v12 = vrot.slane %v5873_v33, 4  ;;  %v1251_v19 = vrot.slane %v5884_v0, 3  ;;  %v1289_v6 = vrot.slane %v5778_v35, 2 }
 0x168   :  { %v1211_v16 = vsel %vm1053_vm4, %v7260_v41, %v5811_v58  ;;  %v1246_v58 = vsel %vm1056_vm6, %v1245_v21, %v5841_v55  ;;  %v1291_v3 = vrot.slane %v5815_v39, 1  ;;  %v1217_v47 = vrot.slane %v5897_v62, 7 }
 0x169   :  { %v1213_v43 = vsel %vm1056_vm6, %v1212_v51, %v1211_v16  ;;  %v1248_v41 = vsel %vm1059_vm7, %v1247_v42, %v1246_v58  ;;  %v1294_v23 = vrot.slane %v5873_v33, 7  ;;  %v4994_v32 = vpop.eup %4993  ;;  %v1290_v51 = vsel %vm1053_vm4, %v1289_v6, %v5808_v50 }
 0x16a   :  { %v1215_v4 = vsel %vm1059_vm7, %v1214_v48, %v1213_v43  ;;  %v1250_v26 = vsel %vm1062_vm8, %v1249_v12, %v1248_v41  ;;  %v1296_v55 = vrot.slane %v5884_v0, 6  ;;  %v1267_v16 = vrot.slane %v5944_v15, 2 }
 0x16b   :  { %v1593_v21 = vmul.f32 %v4994_v32, %v1592_v14  ;;  %v6135_v20 = vsel %vm1065_vm9, %v1251_v19, %v1250_v26  ;;  %v1292_v48 = vsel %vm1056_vm6, %v1291_v3, %v1290_v51  ;;  %v1268_v42 = vrot.slane %v5936_v18, 1 }
 0x16c   :  { %v1293_v43 = vsel %vm1059_vm7, %v5849_v31, %v1292_v48  ;;  %v1271_v12 = vrot.slane %v5958_v34, 7  ;;  %v1273_v58 = vrot.slane %v5961_v59, 6  ;;  %v1275_v50 = vrot.slane %v5974_v27, 5 }
 0x16d   :  { %v1594_v6 = vadd.f32 %v1593_v21, %v1145_v36  ;;  %v1295_v41 = vsel %vm1062_vm8, %v1294_v23, %v1293_v43  ;;  %v1269_v14 = vsel %vm1047_vm2, %v1268_v42, %v1267_v16  ;;  %v1277_v26 = vrot.slane %v5983_v53, 4 }
 0x16e   :  { %v6148_v19 = vsel %vm1065_vm9, %v1296_v55, %v1295_v41  ;;  %v1270_v3 = vsel %vm1050_vm3, %v5954_v54, %v1269_v14  ;;  %v1279_v32 = vrot.slane %v5989_v38, 3  ;;  %v1312_v51 = vrot.slane %v5944_v15, 5 }
 0x16f   :  { %4997 = vtanh.f32 %v1594_v6  ;;  %v6158_v36 = vsel %vm1019_vm10, %v6135_v20, %v6148_v19  ;;  %v1272_v23 = vsel %vm1053_vm4, %v1271_v12, %v1270_v3  ;;  %v1313_v16 = vrot.slane %v5936_v18, 4 }
 0x170   :  { %7261 = vst [vmem:[#allocation74_spill] sm:$0xff] %v6158_v36  ;;  %v1274_v55 = vsel %vm1056_vm6, %v1273_v58, %v1272_v23  ;;  %v1315_v21 = vrot.slane %v5954_v54, 3  ;;  %v1317_v48 = vrot.slane %v5958_v34, 2  ;;  %v1319_v42 = vrot.slane %v5961_v59, 1 }
 0x171   :  { %v6167_v43 = vsel %vm1065_vm9, %v1172_v24, %v1171_v25  ;;  %v1216_v6 = vsel %vm1062_vm8, %v5894_v28, %v1215_v4  ;;  %v1276_v41 = vsel %vm1059_vm7, %v1275_v50, %v1274_v55  ;;  %v1314_v12 = vsel %vm1047_vm2, %v1313_v16, %v1312_v51 }
 0x172   :  { %7262 = vst [vmem:[#allocation75_spill] sm:$0xff] %v6167_v43  ;;  %v4996_v14 = vpop.eup %4995  ;;  %v1278_v3 = vsel %vm1062_vm8, %v1277_v26, %v1276_v41  ;;  %v1316_v58 = vsel %vm1050_vm3, %v1315_v21, %v1314_v12  ;;  %v1322_v23 = vrot.slane %v5983_v53, 7  ;;  %v1254_v36 = vrot.slane %v5732_v13, 1 }
 0x173   :  { %v6178_v29 = vsel %vm1065_vm9, %v1279_v32, %v1278_v3  ;;  %v1318_v24 = vsel %vm1053_vm4, %v1317_v48, %v1316_v58  ;;  %v1324_v25 = vrot.slane %v5989_v38, 6  ;;  %v1257_v4 = vrot.slane %v5787_v5, 7 }
 0x174   :  { %7263 = vst [vmem:[#allocation76_spill] sm:$0xff] %v6178_v29  ;;  %v6184_v50 = vsel %vm1065_vm9, %v1217_v47, %v1216_v6  ;;  %v1320_v26 = vsel %vm1056_vm6, %v1319_v42, %v1318_v24  ;;  %v7265_v51 = vrot.slane %v5712_v30, 2  ;;  %v1259_v55 = vrot.slane %v5846_v1, 6 }
 0x175   :  { %7264 = vst [vmem:[#allocation77_spill] sm:$0xff] %v6184_v50  ;;  %v1596_v21 = vsub.f32 1.0, %v4996_v14  ;;  %v1321_v32 = vsel %vm1059_vm7, %v5974_v27, %v1320_v26  ;;  %v1261_v41 = vrot.slane %v5863_v7, 5  ;;  %v1263_v6 = vrot.slane %v5894_v28, 4 }
 0x176   :  { %v1255_v16 = vsel %vm1047_vm2, %v1254_v36, %v7265_v51  ;;  %v1323_v47 = vsel %vm1062_vm8, %v1322_v23, %v1321_v32  ;;  %v1299_v42 = vrot.slane %v5732_v13, 4  ;;  %v1301_v12 = vrot.slane %v5757_v8, 3 }
 0x177   :  { %v1256_v48 = vsel %vm1050_vm3, %v5757_v8, %v1255_v16  ;;  %v1598_v36 = vmul.f32 0.0, %v4996_v14  ;;  %v6201_v3 = vsel %vm1065_vm9, %v1324_v25, %v1323_v47  ;;  %v1303_v24 = vrot.slane %v5787_v5, 2 }
 0x178   :  { %7266 = vst [vmem:[#allocation78_spill] sm:$0xff] %v6201_v3  ;;  %v1258_v58 = vsel %vm1053_vm4, %v1257_v4, %v1256_v48  ;;  %v1265_v51 = vrot.slane %v5897_v62, 3  ;;  %v1305_v16 = vrot.slane %v5846_v1, 1  ;;  %v7267_v25 = vrot.slane %v5712_v30, 5 }
 0x179   :  { %v1260_v23 = vsel %vm1056_vm6, %v1259_v55, %v1258_v58  ;;  %v1333_v48 = vrot.slane %v5721_v22, 2  ;;  %v1335_v55 = vrot.slane %v5748_v40, 1  ;;  %v1338_v58 = vrot.slane %v5815_v39, 7 }
 0x17a   :  { %v1262_v14 = vsel %vm1059_vm7, %v1261_v41, %v1260_v23  ;;  %v1300_v32 = vsel %vm1047_vm2, %v1299_v42, %v7267_v25  ;;  %v7268_v23 = vrot.slane %v5703_v9, 3  ;;  %v1340_v25 = vrot.slane %v5849_v31, 6 }
 0x17b   :  { %v1264_v47 = vsel %vm1062_vm8, %v1263_v6, %v1262_v14  ;;  %v1302_v26 = vsel %vm1050_vm3, %v1301_v12, %v1300_v32  ;;  %v1342_v12 = vrot.slane %v5873_v33, 5  ;;  %v1378_v14 = vrot.slane %v5721_v22, 3 }
 0x17c   :  { %v1304_v17 = vsel %vm1053_vm4, %v1303_v24, %v1302_v26  ;;  %v1334_v42 = vsel %vm1047_vm2, %v1333_v48, %v7268_v23  ;;  %v4998_v4 = vpop.eup %4997  ;;  %v1344_v26 = vrot.slane %v5884_v0, 4  ;;  %v1380_v41 = vrot.slane %v5748_v40, 2 }
 0x17d   :  { %v1306_v44 = vsel %vm1056_vm6, %v1305_v16, %v1304_v17  ;;  %v1336_v6 = vsel %vm1050_vm3, %v1335_v55, %v1334_v42  ;;  %v1597_v32 = vmul.f32 %v4998_v4, %v1596_v21  ;;  %v6237_v48 = vsel %vm1065_vm9, %v1265_v51, %v1264_v47 }
 0x17e   :  { %v1337_v24 = vsel %vm1053_vm4, %v5778_v35, %v1336_v6  ;;  %7269 = vst [vmem:[#allocation79_spill] sm:$0xff] %v6237_v48  ;;  %v7270_v17 = vrot.slane %v5703_v9, 4  ;;  %v1382_v55 = vrot.slane %v5778_v35, 1  ;;  %v6248_v21 = vsel %vm1059_vm7, %v5863_v7, %v1306_v44  ;;  %v7271_v6 = vld [vmem:[#allocation14_spill] sm:$0xff] }
 0x17f   :  { %v1339_v23 = vsel %vm1056_vm6, %v1338_v58, %v1337_v24  ;;  %v6244_v22 = vadd.f32 %v1598_v36, %v1597_v32  ;;  %v1385_v9 = vrot.slane %v5849_v31, 7  ;;  %v1387_v58 = vrot.slane %v5873_v33, 6  ;;  %v7273_v24 = vld [vmem:[#allocation15_spill] sm:$0xff] }
 0x180   :  { %v1379_v16 = vsel %vm1047_vm2, %v1378_v14, %v7270_v17  ;;  %v1341_v4 = vsel %vm1059_vm7, %v1340_v25, %v1339_v23  ;;  %v1389_v36 = vrot.slane %v5884_v0, 5  ;;  %v1361_v33 = vrot.slane %v5936_v18, 2 }
 0x181   :  { %v1381_v40 = vsel %vm1050_vm3, %v1380_v41, %v1379_v16  ;;  %v1343_v51 = vsel %vm1062_vm8, %v1342_v12, %v1341_v4  ;;  %1665 = vmatmul.mubr.f32.vlgmr.msra.gmra.mxu1 %v6244_v22  ;;  %4632 = vmatmul.mubr.f32.vlgmr.msra.gmra.mxu0 %v6244_v22  ;;  %v1360_v41 = vrot.slane %v5944_v15, 3  ;;  %v1363_v42 = vrot.slane %v5954_v54, 1  ;;  %v7275_v4 = vld [vmem:[#allocation16_spill] sm:$0xff] }
 0x182   :  { %v1383_v47 = vsel %vm1053_vm4, %v1382_v55, %v1381_v40  ;;  %v6259_v35 = vsel %vm1065_vm9, %v1344_v26, %v1343_v51  ;;  %1764 = vmatpush1.msra.mxu1 %v5348_v37  ;;  %4635 = vmatpush3.msra.mxu0 %v5515_v52  ;;  %v1366_v25 = vrot.slane %v5961_v59, 7  ;;  %v7272_v12 = vmov 0.0   ;;  %v7274_v26 = vld [vmem:[#allocation44_spill] sm:$0xff] }
 0x183   :  { %v1384_v44 = vsel %vm1056_vm6, %v5815_v39, %v1383_v47  ;;  %1765 = vmatprep.subr.mxu1 %v7271_v6  ;;  %4636 = vmatprep.subr.mxu0 %v7272_v12  ;;  %v1368_v0 = vrot.slane %v5974_v27, 6  ;;  %v1370_v14 = vrot.slane %v5983_v53, 5  ;;  %v1372_v32 = vrot.slane %v5989_v38, 4 }
 0x184   :  { %v1386_v31 = vsel %vm1059_vm7, %v1385_v9, %v1384_v44  ;;  %1766 = vmatpush1.msra.mxu1 %v7273_v24  ;;  %4637 = vmatpush3.msra.mxu0 %v7274_v26  ;;  %v1362_v17 = vsel %vm1047_vm2, %v1361_v33, %v1360_v41  ;;  %v1405_v16 = vrot.slane %v5944_v15, 4  ;;  %v1406_v55 = vrot.slane %v5936_v18, 3  ;;  %v7278_v15 = vld [vmem:[#allocation45_spill] sm:$0xff] }
 0x185   :  { %v1388_v39 = vsel %vm1062_vm8, %v1387_v58, %v1386_v31  ;;  %1767 = vmatprep.subr.mxu1 %v7275_v4  ;;  %4638 = vmatprep.subr.mxu0 %v7272_v12  ;;  %v1364_v51 = vsel %vm1050_vm3, %v1363_v42, %v1362_v17  ;;  %v1408_v47 = vrot.slane %v5954_v54, 2  ;;  %v1410_v9 = vrot.slane %v5958_v34, 1  ;;  %v7277_v58 = vld [vmem:[#allocation17_spill] sm:$0xff]  ;;  %v7279_v31 = vld [vmem:[#allocation18_spill] sm:$0xff]  ;;  %v7280_v17 = vld [vmem:[#allocation19_spill] sm:$0xff] }
 0x186   :  { %v6280_v23 = vsel %vm1065_vm9, %v1389_v36, %v1388_v39  ;;  %1768 = vmatpush1.msra.mxu1 %v7277_v58  ;;  %4639 = vmatpush3.msra.mxu0 %v7278_v15  ;;  %v1365_v18 = vsel %vm1053_vm4, %v5958_v34, %v1364_v51  ;;  %v1407_v44 = vsel %vm1047_vm2, %v1406_v55, %v1405_v16  ;;  %v1413_v36 = vrot.slane %v5974_v27, 7  ;;  %v7281_v34 = vld [vmem:[#allocation46_spill] sm:$0xff]  ;;  %v7282_v51 = vld [vmem:[#allocation20_spill] sm:$0xff] }
 0x187   :  { %v6291_v40 = vsel %vm1019_vm10, %v6259_v35, %v6280_v23  ;;  %v1415_v41 = vrot.slane %v5983_v53, 6  ;;  %1769 = vmatprep.subr.mxu1 %v7279_v31  ;;  %4640 = vmatprep.subr.mxu0 %v7272_v12  ;;  %v1367_v54 = vsel %vm1056_vm6, %v1366_v25, %v1365_v18  ;;  %v1409_v33 = vsel %vm1050_vm3, %v1408_v47, %v1407_v44  ;;  %v7285_v44 = vld [vmem:[#allocation47_spill] sm:$0xff] }
 0x188   :  { %7276 = vst [vmem:[#allocation14_spill] sm:$0xff] %v6291_v40  ;;  %v1417_v42 = vrot.slane %v5989_v38, 5  ;;  %v1347_v39 = vrot.slane %v5732_v13, 2  ;;  %1770 = vmatpush1.msra.mxu1 %v7280_v17  ;;  %4641 = vmatpush3.msra.mxu0 %v7281_v34  ;;  %v1369_v27 = vsel %vm1059_vm7, %v1368_v0, %v1367_v54  ;;  %v1411_v53 = vsel %vm1053_vm4, %v1410_v9, %v1409_v33  ;;  %v7284_v9 = vld [vmem:[#allocation21_spill] sm:$0xff] }
 0x189   :  { %v1349_v16 = vrot.slane %v5757_v8, 1  ;;  %v1352_v55 = vrot.slane %v5846_v1, 7  ;;  %1771 = vmatprep.subr.mxu1 %v7282_v51  ;;  %4642 = vmatprep.subr.mxu0 %v7272_v12  ;;  %v1371_v38 = vsel %vm1062_vm8, %v1370_v14, %v1369_v27  ;;  %v1412_v25 = vsel %vm1056_vm6, %v5961_v59, %v1411_v53  ;;  %v7287_v59 = vld [vmem:[#allocation22_spill] sm:$0xff] }
 0x18a   :  { %v7283_v47 = vrot.slane %v5712_v30, 3  ;;  %v1354_v0 = vrot.slane %v5863_v7, 6  ;;  %1772 = vmatpush1.msra.mxu1 %v7284_v9  ;;  %4643 = vmatpush3.msra.mxu0 %v7285_v44  ;;  %v6327_v54 = vsel %vm1065_vm9, %v1372_v32, %v1371_v38  ;;  %v1414_v33 = vsel %vm1059_vm7, %v1413_v36, %v1412_v25  ;;  %v7288_v38 = vld [vmem:[#allocation23_spill] sm:$0xff]  ;;  %v7289_v36 = vld [vmem:[#allocation48_spill] sm:$0xff] }
 0x18b   :  { %7286 = vst [vmem:[#allocation15_spill] sm:$0xff] %v6327_v54  ;;  %v1356_v27 = vrot.slane %v5894_v28, 5  ;;  %1773 = vmatprep.subr.mxu1 %v7287_v59  ;;  %4644 = vmatprep.subr.mxu0 %v7272_v12  ;;  %v1391_v32 = vrot.slane %v5712_v30, 4  ;;  %v7292_v30 = vrot.slane %v5894_v28, 7  ;;  %v7337_v54 = vld [vmem:[#allocation69_spill] sm:$0xff]  ;;  %v1237_v48 = vsel %vm5911_vm11, %v6167_v43, %v6184_v50 }
 0x18c   :  { %v1348_v18 = vsel %vm1047_vm2, %v1347_v39, %v7283_v47  ;;  %v1416_v39 = vsel %vm1062_vm8, %v1415_v41, %v1414_v33  ;;  %v1358_v47 = vrot.slane %v5897_v62, 4  ;;  %1774 = vmatpush1.msra.mxu1 %v7288_v38  ;;  %4645 = vmatpush3.msra.mxu0 %v7289_v36  ;;  %v1394_v41 = vrot.slane %v5757_v8, 2  ;;  %v7291_v33 = vld [vmem:[#allocation24_spill] sm:$0xff]  ;;  %v7294_v8 = vld [vmem:[#allocation49_spill] sm:$0xff] }
 0x18d   :  { %v1350_v14 = vsel %vm1050_vm3, %v1349_v16, %v1348_v18  ;;  %v6342_v16 = vsel %vm1065_vm9, %v1417_v42, %v1416_v39  ;;  %v1392_v18 = vrot.slane %v5732_v13, 3  ;;  %1775 = vmatprep.subr.mxu1 %v7291_v33  ;;  %4646 = vmatprep.subr.mxu0 %v7272_v12  ;;  %v1396_v13 = vrot.slane %v5787_v5, 1  ;;  %v7293_v39 = vld [vmem:[#allocation25_spill] sm:$0xff]  ;;  %v7297_v42 = vld [vmem:[#allocation26_spill] sm:$0xff] }
 0x18e   :  { %v1351_v53 = vsel %vm1053_vm4, %v5787_v5, %v1350_v14  ;;  %7290 = vst [vmem:[#allocation44_spill] sm:$0xff] %v6342_v16  ;;  %v1309_v14 = vsel %vm1062_vm8, %v7292_v30, %v6248_v21  ;;  %1776 = vmatpush1.msra.mxu1 %v7293_v39  ;;  %4647 = vmatpush3.msra.mxu0 %v7294_v8  ;;  %v1399_v33 = vrot.slane %v5863_v7, 7  ;;  %v7301_v7 = vld [vmem:[#allocation50_spill] sm:$0xff] }
 0x18f   :  { %v1353_v25 = vsel %vm1056_vm6, %v1352_v55, %v1351_v53  ;;  %v7295_v53 = vrot.slane %v5897_v62, 6  ;;  %v1393_v30 = vsel %vm1047_vm2, %v1392_v18, %v1391_v32  ;;  %1777 = vmatprep.subr.mxu1 %v7297_v42  ;;  %4648 = vmatprep.subr.mxu0 %v7272_v12  ;;  %v7300_v32 = vld [vmem:[#allocation27_spill] sm:$0xff] }
 0x190   :  { %v1355_v55 = vsel %vm1059_vm7, %v1354_v0, %v1353_v25  ;;  %v1395_v0 = vsel %vm1050_vm3, %v1394_v41, %v1393_v30  ;;  %v1401_v25 = vrot.slane %v5894_v28, 6  ;;  %1778 = vmatpush1.msra.mxu1 %v7300_v32  ;;  %4649 = vmatpush3.msra.mxu0 %v7301_v7  ;;  %v6394_v28 = vsel %vm1019_vm10, %v6148_v19, %v6135_v20  ;;  %v7311_v20 = vld [vmem:[#allocation31_spill] sm:$0xff] }
 0x191   :  { %v6364_v40 = vsel %vm1065_vm9, %v7295_v53, %v1309_v14  ;;  %v1357_v21 = vsel %vm1062_vm8, %v1356_v27, %v1355_v55  ;;  %v6380_v27 = vsel %vm1019_vm10, %v6280_v23, %v6259_v35  ;;  %v1397_v18 = vsel %vm1053_vm4, %v1396_v13, %v1395_v0  ;;  %7302 = vst [vmem:[#allocation18_spill] sm:$0xff] %v6394_v28  ;;  %v7303_v23 = vld [vmem:[#allocation28_spill] sm:$0xff]  ;;  %v7304_v55 = vld [vmem:[#allocation29_spill] sm:$0xff]  ;;  %v7305_v13 = vld [vmem:[#allocation51_spill] sm:$0xff] }
 0x192   :  { %7296 = vst [vmem:[#allocation16_spill] sm:$0xff] %v6364_v40  ;;  %v6372_v5 = vsel %vm1065_vm9, %v1358_v47, %v1357_v21  ;;  %7299 = vst [vmem:[#allocation45_spill] sm:$0xff] %v6380_v27  ;;  %v1403_v14 = vrot.slane %v5897_v62, 5  ;;  %v608_v35 = vrot.slane %v6078_v60, 1  ;;  %1779 = vmatprep.subr.mxu1 %v7303_v23  ;;  %4650 = vmatprep.subr.mxu0 %v7272_v12  ;;  %v601_v19 = vrot.slane %v5941_v57, 1  ;;  %v7310_v21 = vld [vmem:[#allocation67_spill] sm:$0xff] }
 0x193   :  { %7298 = vst [vmem:[#allocation17_spill] sm:$0xff] %v6372_v5  ;;  %v1398_v62 = vsel %vm1056_vm6, %v5846_v1, %v1397_v18  ;;  %1780 = vmatpush1.msra.mxu1 %v7304_v55  ;;  %4651 = vmatpush3.msra.mxu0 %v7305_v13  ;;  %v6417_v1 = vsel %vm1019_vm10, %v6045_v61, %v6037_v45  ;;  %v7307_v30 = vrot.slane %v5926_v63, 1  ;;  %v7308_v18 = vld [vmem:[#allocation30_spill] sm:$0xff]  ;;  %v7309_v61 = vrot.slane %v5901_v2, 1  ;;  %v7325_v28 = vld [vmem:[#allocation55_spill] sm:$0xff] }
 0x194   :  { %v1400_v53 = vsel %vm1059_vm7, %v1399_v33, %v1398_v62  ;;  %7306 = vst [vmem:[#allocation19_spill] sm:$0xff] %v6417_v1  ;;  %1781 = vmatprep.subr.mxu1 %v7308_v18  ;;  %4652 = vmatprep.subr.mxu0 %v7272_v12  ;;  %v615_v41 = vrot.slane %v7310_v21, 1  ;;  %v609_v45 = vmax.f32 %v6078_v60, %v608_v35  ;;  %v7319_v1 = vld [vmem:[#allocation62_spill] sm:$0xff]  ;;  %v7321_v35 = vld [vmem:[#allocation35_spill] sm:$0xff] }
 0x195   :  { %v595_v0 = vmax.f32 %v5926_v63, %v7307_v30  ;;  %v1402_v33 = vsel %vm1062_vm8, %v1401_v25, %v1400_v53  ;;  %v588_v62 = vmax.f32 %v5901_v2, %v7309_v61  ;;  %1782 = vmatpush1.msra.mxu1 %v7311_v20  ;;  %v7312_v63 = vld [vmem:[#allocation52_spill] sm:$0xff]  ;;  %v602_v61 = vmax.f32 %v5941_v57, %v601_v19  ;;  %v7320_v47 = vld [vmem:[#allocation34_spill] sm:$0xff] }
 0x196   :  { %4653 = vmatpush3.msra.mxu0 %v7312_v63  ;;  %v6440_v30 = vsel %vm1065_vm9, %v1403_v14, %v1402_v33  ;;  %1783 = vmatprep.subr.mxu1 %v7316_v10  ;;  %v7317_v14 = vld [vmem:[#allocation33_spill] sm:$0xff]  ;;  %v7322_v25 = vld [vmem:[#allocation54_spill] sm:$0xff]  ;;  %v616_v2 = vmax.f32 %v7310_v21, %v615_v41  ;;  %v7323_v19 = vld [vmem:[#allocation36_spill] sm:$0xff] }
 0x197   :  { %7313 = vst [vmem:[#allocation46_spill] sm:$0xff] %v6440_v30  ;;  %4654 = vmatprep.subr.mxu0 %v7272_v12  ;;  %1784 = vmatpush1.msra.mxu1 %v7317_v14  ;;  %v7318_v33 = vld [vmem:[#allocation53_spill] sm:$0xff]  ;;  %v3012_v53 = vsel %vm1053_vm4, %v588_v62, %v7319_v1  ;;  %v7328_v41 = vld [vmem:[#allocation39_spill] sm:$0xff]  ;;  %v7329_v21 = vld [vmem:[#allocation56_spill] sm:$0xff] }
 0x198   :  { %4655 = vmatpush3.msra.mxu0 %v7318_v33  ;;  %1785 = vmatprep.subr.mxu1 %v7320_v47  ;;  %v3013_v60 = vsel %vm1056_vm6, %v595_v0, %v3012_v53  ;;  %v7324_v62 = vld [vmem:[#allocation37_spill] sm:$0xff]  ;;  %v7327_v53 = vld [vmem:[#allocation38_spill] sm:$0xff] }
 0x199   :  { %4656 = vmatprep.subr.mxu0 %v7272_v12  ;;  %1786 = vmatpush1.msra.mxu1 %v7321_v35  ;;  %v3014_v57 = vsel %vm1059_vm7, %v602_v61, %v3013_v60  ;;  %v7330_v61 = vld [vmem:[#allocation40_spill] sm:$0xff]  ;;  %v7332_v60 = vld [vmem:[#allocation57_spill] sm:$0xff] }
 0x19a   :  { %4657 = vmatpush3.msra.mxu0 %v7322_v25  ;;  %1787 = vmatprep.subr.mxu1 %v7323_v19  ;;  %v3015_v1 = vsel %vm1062_vm8, %v609_v45, %v3014_v57  ;;  %v7331_v45 = vld [vmem:[#allocation41_spill] sm:$0xff]  ;;  %v7333_v57 = vld [vmem:[#allocation42_spill] sm:$0xff] }
 0x19b   :  { %4658 = vmatprep.subr.mxu0 %v7272_v12  ;;  %1788 = vmatpush1.msra.mxu1 %v7324_v62  ;;  %v6471_v0 = vsel %vm1065_vm9, %v616_v2, %v3015_v1  ;;  %v7334_v2 = vld [vmem:[#allocation43_spill] sm:$0xff]  ;;  %v7335_v1 = vld [vmem:[#allocation58_spill] sm:$0xff] }
 0x19c   :  { %4659 = vmatpush3.msra.mxu0 %v7325_v28  ;;  %7326 = vst [vmem:[#allocation20_spill] sm:$0xff] %v6471_v0  ;;  %1789 = vmatprep.subr.mxu1 %v7327_v53  ;;  %v7336_v0 = vld [vmem:[#allocation13_spill] sm:$0xff] }
 0x19d   :  { %4660 = vmatprep.subr.mxu0 %v7272_v12  ;;  %1790 = vmatpush1.msra.mxu1 %v7328_v41 }
 0x19e   :  { %4661 = vmatpush3.msra.mxu0 %v7329_v21  ;;  %1791 = vmatprep.subr.mxu1 %v7330_v61 }
 0x19f   :  { %4662 = vmatprep.subr.mxu0 %v7272_v12  ;;  %1792 = vmatpush1.msra.mxu1 %v7331_v45  ;;  %v7338_v45 = vld [vmem:[#allocation61_spill] sm:$0xff] }
 0x1a0   :  { %4663 = vmatpush3.msra.mxu0 %v7332_v60  ;;  %1793 = vmatprep.subr.mxu1 %v7333_v57 }
 0x1a1   :  { %4664 = vmatprep.subr.mxu0 %v7272_v12  ;;  %1794 = vmatpush1.msra.mxu1 %v7334_v2 }
 0x1a2   :  { %1827 = vmatprep.mubr.f32.mxu1 %v7272_v12  ;;  %4665 = vmatpush3.msra.mxu0 %v7335_v1 }
 0x1a3   :  { %4666 = vmatprep.mubr.msk.f32.mxu0 %vm5190_vm1, %v7272_v12  ;;  %1926 = vmatprep.subr.mxu1 %v7336_v0 }
 0x1a4   :  { %4669 = vmatprep.subr.mxu0 %v7272_v12 }
 0x241   :  { %v1666_v27 = vpop.f32.mrf.mxu1  ;;  %v1737_v16 = vpop.f32.mrf.mxu0 }
 0x242   :  { %v1741_v5 = vadd.f32 %v1666_v27, %v7337_v54  ;;  %v1755_v61 = vadd.f32 %v1737_v16, %v7338_v45  ;;  %v7341_v16 = vld [vmem:[#allocation40_spill] sm:$0xff] }
 0x243   :  { %v4633_v30 = vpop.f32.mrf.mxu0  ;;  %v1668_v29 = vpop.f32.mrf.mxu1 }
 0x244   :  { %v4006_v3 = vmul.f32 -1.442695, %v1741_v5  ;;  %v1748_v40 = vadd.f32 %v1668_v29, %v1237_v48 }
 0x246   :  { %4999 = vpow2.f32 %v4006_v3  ;;  %v4007_v1 = vmul.f32 -1.442695, %v1748_v40  ;;  %v7339_v3 = vsel %vm6013_vm12, %v6088_v11, %v6105_v56  ;;  %v7349_v11 = vld [vmem:[#allocation16_spill] sm:$0xff]  ;;  %v7350_v56 = vld [vmem:[#allocation79_spill] sm:$0xff] }
 0x247   :  { %v1330_v43 = vsel %vm5911_vm11, %v7350_v56, %v7349_v11 }
 0x248   :  { %5001 = vpow2.f32 %v4007_v1  ;;  %v7345_v1 = vld [vmem:[#allocation43_spill] sm:$0xff] }
 0x253   :  { %v5000_v2 = vpop.eup %4999 }
 0x254   :  { %v1745_v0 = vadd.f32 1.0, %v5000_v2 }
 0x255   :  { %v5002_v57 = vpop.eup %5001 }
 0x256   :  { %5003 = vrcp.f32 %v1745_v0  ;;  %v1752_v60 = vadd.f32 1.0, %v5002_v57  ;;  %v7344_v57 = vld [vmem:[#allocation42_spill] sm:$0xff] }
 0x258   :  { %5005 = vrcp.f32 %v1752_v60  ;;  %v7343_v60 = vld [vmem:[#allocation57_spill] sm:$0xff] }
 0x263   :  { %v5004_v54 = vpop.eup %5003 }
 0x264   :  { %v1756_v27 = vmul.f32 %v5004_v54, %v1755_v61  ;;  %v7342_v61 = vld [vmem:[#allocation41_spill] sm:$0xff]  ;;  %v7346_v54 = vld [vmem:[#allocation58_spill] sm:$0xff] }
 0x265   :  { %v5006_v29 = vpop.eup %5005 }
 0x266   :  { %v1757_v5 = vadd.f32 %v1756_v27, %v7339_v3  ;;  %v1759_v48 = vsub.f32 1.0, %v5006_v29  ;;  %v1761_v0 = vmul.f32 %v5006_v29, %v6244_v22  ;;  %v7340_v22 = vld [vmem:[#allocation24_spill] sm:$0xff]  ;;  %v7347_v27 = vld [vmem:[#allocation13_spill] sm:$0xff]  ;;  %v7348_v29 = vld [vmem:[#allocation74_spill] sm:$0xff] }
 0x268   :  { %5007 = vtanh.f32 %v1757_v5 }
 0x275   :  { %v5008_v40 = vpop.eup %5007 }
 0x276   :  { %v1760_v30 = vmul.f32 %v5008_v40, %v1759_v48 }
 0x278   :  { %v6502_v2 = vadd.f32 %v1761_v0, %v1760_v30 }
 0x27a   :  { %1828 = vmatmul.mubr.f32.vlgmr.msra.gmra.mxu1 %v6502_v2  ;;  %4667 = vmatmul.mubr.f32.vlgmr.msra.gmra.mxu0 %v6502_v2 }
 0x27b   :  { %1927 = vmatpush1.msra.mxu1 %v5348_v37  ;;  %4670 = vmatpush3.msra.mxu0 %v5515_v52 }
 0x27c   :  { %1928 = vmatprep.subr.mxu1 %v7271_v6  ;;  %4671 = vmatprep.subr.mxu0 %v7272_v12 }
 0x27d   :  { %1929 = vmatpush1.msra.mxu1 %v7273_v24  ;;  %4672 = vmatpush3.msra.mxu0 %v7274_v26 }
 0x27e   :  { %1930 = vmatprep.subr.mxu1 %v7275_v4  ;;  %4673 = vmatprep.subr.mxu0 %v7272_v12 }
 0x27f   :  { %1931 = vmatpush1.msra.mxu1 %v7277_v58  ;;  %4674 = vmatpush3.msra.mxu0 %v7278_v15 }
 0x280   :  { %1932 = vmatprep.subr.mxu1 %v7279_v31  ;;  %4675 = vmatprep.subr.mxu0 %v7272_v12 }
 0x281   :  { %1933 = vmatpush1.msra.mxu1 %v7280_v17  ;;  %4676 = vmatpush3.msra.mxu0 %v7281_v34 }
 0x282   :  { %1934 = vmatprep.subr.mxu1 %v7282_v51  ;;  %4677 = vmatprep.subr.mxu0 %v7272_v12 }
 0x283   :  { %1935 = vmatpush1.msra.mxu1 %v7284_v9  ;;  %4678 = vmatpush3.msra.mxu0 %v7285_v44 }
 0x284   :  { %1936 = vmatprep.subr.mxu1 %v7287_v59  ;;  %4679 = vmatprep.subr.mxu0 %v7272_v12 }
 0x285   :  { %1937 = vmatpush1.msra.mxu1 %v7288_v38  ;;  %4680 = vmatpush3.msra.mxu0 %v7289_v36 }
 0x286   :  { %1938 = vmatprep.subr.mxu1 %v7340_v22  ;;  %4681 = vmatprep.subr.mxu0 %v7272_v12 }
 0x287   :  { %1939 = vmatpush1.msra.mxu1 %v7293_v39  ;;  %4682 = vmatpush3.msra.mxu0 %v7294_v8 }
 0x288   :  { %1940 = vmatprep.subr.mxu1 %v7297_v42  ;;  %4683 = vmatprep.subr.mxu0 %v7272_v12 }
 0x289   :  { %1941 = vmatpush1.msra.mxu1 %v7300_v32  ;;  %4684 = vmatpush3.msra.mxu0 %v7301_v7 }
 0x28a   :  { %1942 = vmatprep.subr.mxu1 %v7303_v23  ;;  %4685 = vmatprep.subr.mxu0 %v7272_v12 }
 0x28b   :  { %1943 = vmatpush1.msra.mxu1 %v7304_v55  ;;  %4686 = vmatpush3.msra.mxu0 %v7305_v13 }
 0x28c   :  { %1944 = vmatprep.subr.mxu1 %v7308_v18  ;;  %4687 = vmatprep.subr.mxu0 %v7272_v12 }
 0x28d   :  { %1945 = vmatpush1.msra.mxu1 %v7311_v20  ;;  %4688 = vmatpush3.msra.mxu0 %v7312_v63 }
 0x28e   :  { %1946 = vmatprep.subr.mxu1 %v7316_v10  ;;  %4689 = vmatprep.subr.mxu0 %v7272_v12 }
 0x28f   :  { %1947 = vmatpush1.msra.mxu1 %v7317_v14  ;;  %4690 = vmatpush3.msra.mxu0 %v7318_v33 }
 0x290   :  { %1948 = vmatprep.subr.mxu1 %v7320_v47  ;;  %4691 = vmatprep.subr.mxu0 %v7272_v12 }
 0x291   :  { %1949 = vmatpush1.msra.mxu1 %v7321_v35  ;;  %4692 = vmatpush3.msra.mxu0 %v7322_v25 }
 0x292   :  { %1950 = vmatprep.subr.mxu1 %v7323_v19  ;;  %4693 = vmatprep.subr.mxu0 %v7272_v12 }
 0x293   :  { %1951 = vmatpush1.msra.mxu1 %v7324_v62  ;;  %4694 = vmatpush3.msra.mxu0 %v7325_v28 }
 0x294   :  { %1952 = vmatprep.subr.mxu1 %v7327_v53  ;;  %4695 = vmatprep.subr.mxu0 %v7272_v12 }
 0x295   :  { %1953 = vmatpush1.msra.mxu1 %v7328_v41  ;;  %4696 = vmatpush3.msra.mxu0 %v7329_v21 }
 0x296   :  { %1954 = vmatprep.subr.mxu1 %v7341_v16  ;;  %4697 = vmatprep.subr.mxu0 %v7272_v12 }
 0x297   :  { %1955 = vmatpush1.msra.mxu1 %v7342_v61  ;;  %4698 = vmatpush3.msra.mxu0 %v7343_v60 }
 0x298   :  { %1956 = vmatprep.subr.mxu1 %v7344_v57  ;;  %4699 = vmatprep.subr.mxu0 %v7272_v12 }
 0x299   :  { %1957 = vmatpush1.msra.mxu1 %v7345_v1  ;;  %1990 = vmatprep.mubr.f32.mxu1 %v7272_v12 }
 0x29a   :  { %4700 = vmatpush3.msra.mxu0 %v7346_v54  ;;  %4701 = vmatprep.mubr.msk.f32.mxu0 %vm5190_vm1, %v7272_v12 }
 0x29b   :  { %2089 = vmatprep.subr.mxu1 %v7347_v27  ;;  %4704 = vmatprep.subr.mxu0 %v7272_v12 }
 0x33a   :  { %v1829_v3 = vpop.f32.mrf.mxu1  ;;  %v1900_v5 = vpop.f32.mrf.mxu0 }
 0x33b   :  { %v1904_v48 = vadd.f32 %v1829_v3, %v7348_v29  ;;  %v1918_v61 = vadd.f32 %v1900_v5, %v7338_v45  ;;  %v7359_v5 = vld [vmem:[#allocation13_spill] sm:$0xff] }
 0x33c   :  { %v4668_v40 = vpop.f32.mrf.mxu0  ;;  %v1831_v0 = vpop.f32.mrf.mxu1 }
 0x33d   :  { %v4008_v30 = vmul.f32 -1.442695, %v1904_v48  ;;  %v1911_v50 = vadd.f32 %v1831_v0, %v1330_v43  ;;  %v7351_v48 = vld [vmem:[#allocation76_spill] sm:$0xff]  ;;  %v7352_v40 = vld [vmem:[#allocation78_spill] sm:$0xff] }
 0x33f   :  { %5009 = vpow2.f32 %v4008_v30  ;;  %v4009_v54 = vmul.f32 -1.442695, %v1911_v50  ;;  %v7353_v30 = vsel %vm6013_vm12, %v7351_v48, %v7352_v40  ;;  %v7362_v48 = vld [vmem:[#allocation17_spill] sm:$0xff] }
 0x341   :  { %5011 = vpow2.f32 %v4009_v54 }
 0x34c   :  { %v5010_v1 = vpop.eup %5009 }
 0x34d   :  { %v1908_v27 = vadd.f32 1.0, %v5010_v1 }
 0x34e   :  { %v5012_v57 = vpop.eup %5011 }
 0x34f   :  { %5013 = vrcp.f32 %v1908_v27  ;;  %v1915_v60 = vadd.f32 1.0, %v5012_v57  ;;  %v7358_v57 = vld [vmem:[#allocation58_spill] sm:$0xff] }
 0x351   :  { %5015 = vrcp.f32 %v1915_v60  ;;  %v7357_v60 = vld [vmem:[#allocation43_spill] sm:$0xff] }
 0x35c   :  { %v5014_v3 = vpop.eup %5013 }
 0x35d   :  { %v1919_v29 = vmul.f32 %v5014_v3, %v1918_v61  ;;  %v7356_v61 = vld [vmem:[#allocation42_spill] sm:$0xff] }
 0x35e   :  { %v5016_v43 = vpop.eup %5015 }
 0x35f   :  { %v1920_v49 = vadd.f32 %v1919_v29, %v7353_v30  ;;  %v1922_v50 = vsub.f32 1.0, %v5016_v43  ;;  %v1924_v1 = vmul.f32 %v5016_v43, %v6502_v2  ;;  %v7355_v2 = vld [vmem:[#allocation57_spill] sm:$0xff]  ;;  %v7360_v30 = vld [vmem:[#allocation14_spill] sm:$0xff] }
 0x361   :  { %5017 = vtanh.f32 %v1920_v49  ;;  %v7354_v49 = vld [vmem:[#allocation41_spill] sm:$0xff] }
 0x36e   :  { %v5018_v54 = vpop.eup %5017 }
 0x36f   :  { %v1923_v0 = vmul.f32 %v5018_v54, %v1922_v50 }
 0x371   :  { %v6585_v27 = vadd.f32 %v1924_v1, %v1923_v0  ;;  %v7361_v1 = vld [vmem:[#allocation46_spill] sm:$0xff] }
 0x372   :  { %v1423_v56 = vsel %vm5911_vm11, %v7362_v48, %v7361_v1 }
 0x373   :  { %1991 = vmatmul.mubr.f32.vlgmr.msra.gmra.mxu1 %v6585_v27  ;;  %4702 = vmatmul.mubr.f32.vlgmr.msra.gmra.mxu0 %v6585_v27 }
 0x374   :  { %2090 = vmatpush1.msra.mxu1 %v5348_v37  ;;  %4705 = vmatpush3.msra.mxu0 %v5515_v52 }
 0x375   :  { %2091 = vmatprep.subr.mxu1 %v7271_v6  ;;  %4706 = vmatprep.subr.mxu0 %v7272_v12 }
 0x376   :  { %2092 = vmatpush1.msra.mxu1 %v7273_v24  ;;  %4707 = vmatpush3.msra.mxu0 %v7274_v26 }
 0x377   :  { %2093 = vmatprep.subr.mxu1 %v7275_v4  ;;  %4708 = vmatprep.subr.mxu0 %v7272_v12 }
 0x378   :  { %2094 = vmatpush1.msra.mxu1 %v7277_v58  ;;  %4709 = vmatpush3.msra.mxu0 %v7278_v15 }
 0x379   :  { %2095 = vmatprep.subr.mxu1 %v7279_v31  ;;  %4710 = vmatprep.subr.mxu0 %v7272_v12 }
 0x37a   :  { %2096 = vmatpush1.msra.mxu1 %v7280_v17  ;;  %4711 = vmatpush3.msra.mxu0 %v7281_v34 }
 0x37b   :  { %2097 = vmatprep.subr.mxu1 %v7282_v51  ;;  %4712 = vmatprep.subr.mxu0 %v7272_v12 }
 0x37c   :  { %2098 = vmatpush1.msra.mxu1 %v7284_v9  ;;  %4713 = vmatpush3.msra.mxu0 %v7285_v44 }
 0x37d   :  { %2099 = vmatprep.subr.mxu1 %v7287_v59  ;;  %4714 = vmatprep.subr.mxu0 %v7272_v12 }
 0x37e   :  { %2100 = vmatpush1.msra.mxu1 %v7288_v38  ;;  %4715 = vmatpush3.msra.mxu0 %v7289_v36 }
 0x37f   :  { %2101 = vmatprep.subr.mxu1 %v7340_v22  ;;  %4716 = vmatprep.subr.mxu0 %v7272_v12 }
 0x380   :  { %2102 = vmatpush1.msra.mxu1 %v7293_v39  ;;  %4717 = vmatpush3.msra.mxu0 %v7294_v8 }
 0x381   :  { %2103 = vmatprep.subr.mxu1 %v7297_v42  ;;  %4718 = vmatprep.subr.mxu0 %v7272_v12 }
 0x382   :  { %2104 = vmatpush1.msra.mxu1 %v7300_v32  ;;  %4719 = vmatpush3.msra.mxu0 %v7301_v7 }
 0x383   :  { %2105 = vmatprep.subr.mxu1 %v7303_v23  ;;  %4720 = vmatprep.subr.mxu0 %v7272_v12 }
 0x384   :  { %2106 = vmatpush1.msra.mxu1 %v7304_v55  ;;  %4721 = vmatpush3.msra.mxu0 %v7305_v13 }
 0x385   :  { %2107 = vmatprep.subr.mxu1 %v7308_v18  ;;  %4722 = vmatprep.subr.mxu0 %v7272_v12 }
 0x386   :  { %2108 = vmatpush1.msra.mxu1 %v7311_v20  ;;  %4723 = vmatpush3.msra.mxu0 %v7312_v63 }
 0x387   :  { %2109 = vmatprep.subr.mxu1 %v7316_v10  ;;  %4724 = vmatprep.subr.mxu0 %v7272_v12 }
 0x388   :  { %2110 = vmatpush1.msra.mxu1 %v7317_v14  ;;  %4725 = vmatpush3.msra.mxu0 %v7318_v33 }
 0x389   :  { %2111 = vmatprep.subr.mxu1 %v7320_v47  ;;  %4726 = vmatprep.subr.mxu0 %v7272_v12 }
 0x38a   :  { %2112 = vmatpush1.msra.mxu1 %v7321_v35  ;;  %4727 = vmatpush3.msra.mxu0 %v7322_v25 }
 0x38b   :  { %2113 = vmatprep.subr.mxu1 %v7323_v19  ;;  %4728 = vmatprep.subr.mxu0 %v7272_v12 }
 0x38c   :  { %2114 = vmatpush1.msra.mxu1 %v7324_v62  ;;  %4729 = vmatpush3.msra.mxu0 %v7325_v28 }
 0x38d   :  { %2115 = vmatprep.subr.mxu1 %v7327_v53  ;;  %4730 = vmatprep.subr.mxu0 %v7272_v12 }
 0x38e   :  { %2116 = vmatpush1.msra.mxu1 %v7328_v41  ;;  %4731 = vmatpush3.msra.mxu0 %v7329_v21 }
 0x38f   :  { %2117 = vmatprep.subr.mxu1 %v7341_v16  ;;  %4732 = vmatprep.subr.mxu0 %v7272_v12 }
 0x390   :  { %2118 = vmatpush1.msra.mxu1 %v7354_v49  ;;  %4733 = vmatpush3.msra.mxu0 %v7355_v2 }
 0x391   :  { %2119 = vmatprep.subr.mxu1 %v7356_v61  ;;  %4734 = vmatprep.subr.mxu0 %v7272_v12 }
 0x392   :  { %2120 = vmatpush1.msra.mxu1 %v7357_v60  ;;  %2153 = vmatprep.mubr.f32.mxu1 %v7272_v12 }
 0x393   :  { %4735 = vmatpush3.msra.mxu0 %v7358_v57  ;;  %4736 = vmatprep.mubr.msk.f32.mxu0 %vm5190_vm1, %v7272_v12 }
 0x394   :  { %2252 = vmatprep.subr.mxu1 %v7359_v5  ;;  %4739 = vmatprep.subr.mxu0 %v7272_v12 }
 0x433   :  { %v1992_v3 = vpop.f32.mrf.mxu1  ;;  %v2063_v29 = vpop.f32.mrf.mxu0 }
 0x434   :  { %v2067_v43 = vadd.f32 %v1992_v3, %v7360_v30  ;;  %v2081_v49 = vadd.f32 %v2063_v29, %v7338_v45  ;;  %v7372_v29 = vld [vmem:[#allocation13_spill] sm:$0xff] }
 0x435   :  { %v4703_v50 = vpop.f32.mrf.mxu0  ;;  %v1994_v0 = vpop.f32.mrf.mxu1 }
 0x436   :  { %v4010_v54 = vmul.f32 -1.442695, %v2067_v43  ;;  %v2074_v11 = vadd.f32 %v1994_v0, %v1423_v56  ;;  %v7364_v43 = vld [vmem:[#allocation15_spill] sm:$0xff]  ;;  %v7365_v50 = vld [vmem:[#allocation44_spill] sm:$0xff] }
 0x438   :  { %5019 = vpow2.f32 %v4010_v54  ;;  %v4011_v57 = vmul.f32 -1.442695, %v2074_v11  ;;  %v7366_v54 = vsel %vm6013_vm12, %v7364_v43, %v7365_v50 }
 0x43a   :  { %5021 = vpow2.f32 %v4011_v57 }
 0x445   :  { %v5020_v60 = vpop.eup %5019 }
 0x446   :  { %v2071_v5 = vadd.f32 1.0, %v5020_v60 }
 0x447   :  { %v5022_v61 = vpop.eup %5021 }
 0x448   :  { %5023 = vrcp.f32 %v2071_v5  ;;  %v2078_v2 = vadd.f32 1.0, %v5022_v61  ;;  %v7371_v61 = vld [vmem:[#allocation58_spill] sm:$0xff] }
 0x44a   :  { %5025 = vrcp.f32 %v2078_v2  ;;  %v7370_v2 = vld [vmem:[#allocation43_spill] sm:$0xff] }
 0x455   :  { %v5024_v3 = vpop.eup %5023 }
 0x456   :  { %v2082_v30 = vmul.f32 %v5024_v3, %v2081_v49  ;;  %v7369_v49 = vld [vmem:[#allocation42_spill] sm:$0xff] }
 0x457   :  { %v5026_v56 = vpop.eup %5025 }
 0x458   :  { %v2083_v40 = vadd.f32 %v2082_v30, %v7366_v54  ;;  %v2085_v11 = vsub.f32 1.0, %v5026_v56  ;;  %v2087_v60 = vmul.f32 %v5026_v56, %v6585_v27  ;;  %v7368_v27 = vld [vmem:[#allocation57_spill] sm:$0xff] }
 0x459   :  { %v7373_v54 = vld [vmem:[#allocation45_spill] sm:$0xff] }
 0x45a   :  { %5027 = vtanh.f32 %v2083_v40  ;;  %v7367_v40 = vld [vmem:[#allocation41_spill] sm:$0xff] }
 0x467   :  { %v5028_v57 = vpop.eup %5027 }
 0x468   :  { %v2086_v0 = vmul.f32 %v5028_v57, %v2085_v11 }
 0x46a   :  { %v6668_v5 = vadd.f32 %v2087_v60, %v2086_v0 }
 0x46c   :  { %2154 = vmatmul.mubr.f32.vlgmr.msra.gmra.mxu1 %v6668_v5  ;;  %4737 = vmatmul.mubr.f32.vlgmr.msra.gmra.mxu0 %v6668_v5 }
 0x46d   :  { %2253 = vmatpush1.msra.mxu1 %v5348_v37  ;;  %4740 = vmatpush3.msra.mxu0 %v5515_v52 }
 0x46e   :  { %2254 = vmatprep.subr.mxu1 %v7271_v6  ;;  %4741 = vmatprep.subr.mxu0 %v7272_v12 }
 0x46f   :  { %2255 = vmatpush1.msra.mxu1 %v7273_v24  ;;  %4742 = vmatpush3.msra.mxu0 %v7274_v26 }
 0x470   :  { %2256 = vmatprep.subr.mxu1 %v7275_v4  ;;  %4743 = vmatprep.subr.mxu0 %v7272_v12 }
 0x471   :  { %2257 = vmatpush1.msra.mxu1 %v7277_v58  ;;  %4744 = vmatpush3.msra.mxu0 %v7278_v15 }
 0x472   :  { %2258 = vmatprep.subr.mxu1 %v7279_v31  ;;  %4745 = vmatprep.subr.mxu0 %v7272_v12 }
 0x473   :  { %2259 = vmatpush1.msra.mxu1 %v7280_v17  ;;  %4746 = vmatpush3.msra.mxu0 %v7281_v34 }
 0x474   :  { %2260 = vmatprep.subr.mxu1 %v7282_v51  ;;  %4747 = vmatprep.subr.mxu0 %v7272_v12 }
 0x475   :  { %2261 = vmatpush1.msra.mxu1 %v7284_v9  ;;  %4748 = vmatpush3.msra.mxu0 %v7285_v44 }
 0x476   :  { %2262 = vmatprep.subr.mxu1 %v7287_v59  ;;  %4749 = vmatprep.subr.mxu0 %v7272_v12 }
 0x477   :  { %2263 = vmatpush1.msra.mxu1 %v7288_v38  ;;  %4750 = vmatpush3.msra.mxu0 %v7289_v36 }
 0x478   :  { %2264 = vmatprep.subr.mxu1 %v7340_v22  ;;  %4751 = vmatprep.subr.mxu0 %v7272_v12 }
 0x479   :  { %2265 = vmatpush1.msra.mxu1 %v7293_v39  ;;  %4752 = vmatpush3.msra.mxu0 %v7294_v8 }
 0x47a   :  { %2266 = vmatprep.subr.mxu1 %v7297_v42  ;;  %4753 = vmatprep.subr.mxu0 %v7272_v12 }
 0x47b   :  { %2267 = vmatpush1.msra.mxu1 %v7300_v32  ;;  %4754 = vmatpush3.msra.mxu0 %v7301_v7 }
 0x47c   :  { %2268 = vmatprep.subr.mxu1 %v7303_v23  ;;  %4755 = vmatprep.subr.mxu0 %v7272_v12 }
 0x47d   :  { %2269 = vmatpush1.msra.mxu1 %v7304_v55  ;;  %4756 = vmatpush3.msra.mxu0 %v7305_v13 }
 0x47e   :  { %2270 = vmatprep.subr.mxu1 %v7308_v18  ;;  %4757 = vmatprep.subr.mxu0 %v7272_v12 }
 0x47f   :  { %2271 = vmatpush1.msra.mxu1 %v7311_v20  ;;  %4758 = vmatpush3.msra.mxu0 %v7312_v63 }
 0x480   :  { %2272 = vmatprep.subr.mxu1 %v7316_v10  ;;  %4759 = vmatprep.subr.mxu0 %v7272_v12 }
 0x481   :  { %2273 = vmatpush1.msra.mxu1 %v7317_v14  ;;  %4760 = vmatpush3.msra.mxu0 %v7318_v33 }
 0x482   :  { %2274 = vmatprep.subr.mxu1 %v7320_v47  ;;  %4761 = vmatprep.subr.mxu0 %v7272_v12 }
 0x483   :  { %2275 = vmatpush1.msra.mxu1 %v7321_v35  ;;  %4762 = vmatpush3.msra.mxu0 %v7322_v25 }
 0x484   :  { %2276 = vmatprep.subr.mxu1 %v7323_v19  ;;  %4763 = vmatprep.subr.mxu0 %v7272_v12 }
 0x485   :  { %2277 = vmatpush1.msra.mxu1 %v7324_v62  ;;  %4764 = vmatpush3.msra.mxu0 %v7325_v28 }
 0x486   :  { %2278 = vmatprep.subr.mxu1 %v7327_v53  ;;  %4765 = vmatprep.subr.mxu0 %v7272_v12 }
 0x487   :  { %2279 = vmatpush1.msra.mxu1 %v7328_v41  ;;  %4766 = vmatpush3.msra.mxu0 %v7329_v21 }
 0x488   :  { %2280 = vmatprep.subr.mxu1 %v7341_v16  ;;  %4767 = vmatprep.subr.mxu0 %v7272_v12 }
 0x489   :  { %2281 = vmatpush1.msra.mxu1 %v7367_v40  ;;  %4768 = vmatpush3.msra.mxu0 %v7368_v27 }
 0x48a   :  { %2282 = vmatprep.subr.mxu1 %v7369_v49  ;;  %4769 = vmatprep.subr.mxu0 %v7272_v12 }
 0x48b   :  { %2283 = vmatpush1.msra.mxu1 %v7370_v2  ;;  %2316 = vmatprep.mubr.f32.mxu1 %v7272_v12 }
 0x48c   :  { %4770 = vmatpush3.msra.mxu0 %v7371_v61  ;;  %4771 = vmatprep.mubr.msk.f32.mxu0 %vm5190_vm1, %v7272_v12  ;;  %v7375_v61 = vsel %vm5911_vm11, %v7361_v1, %v7362_v48 }
 0x48d   :  { %2415 = vmatprep.subr.mxu1 %v7372_v29  ;;  %4774 = vmatprep.subr.mxu0 %v7272_v12 }
 0x52c   :  { %v2155_v3 = vpop.f32.mrf.mxu1  ;;  %v2226_v30 = vpop.f32.mrf.mxu0 }
 0x52d   :  { %v2230_v56 = vadd.f32 %v2155_v3, %v7373_v54  ;;  %v2244_v21 = vadd.f32 %v2226_v30, %v7338_v45  ;;  %v7384_v30 = vld [vmem:[#allocation13_spill] sm:$0xff] }
 0x52e   :  { %v4738_v11 = vpop.f32.mrf.mxu0  ;;  %v2157_v0 = vpop.f32.mrf.mxu1 }
 0x52f   :  { %v4012_v57 = vmul.f32 -1.442695, %v2230_v56  ;;  %v2237_v2 = vadd.f32 %v2157_v0, %v7375_v61  ;;  %v7376_v56 = vsel %vm6013_vm12, %v7365_v50, %v7364_v43  ;;  %v7379_v43 = vld [vmem:[#allocation41_spill] sm:$0xff] }
 0x530   :  { %v7380_v50 = vld [vmem:[#allocation57_spill] sm:$0xff] }
 0x531   :  { %5029 = vpow2.f32 %v4012_v57  ;;  %v4013_v49 = vmul.f32 -1.442695, %v2237_v2 }
 0x533   :  { %5031 = vpow2.f32 %v4013_v49 }
 0x53e   :  { %v5030_v27 = vpop.eup %5029 }
 0x53f   :  { %v2234_v29 = vadd.f32 1.0, %v5030_v27 }
 0x540   :  { %v5032_v40 = vpop.eup %5031 }
 0x541   :  { %5033 = vrcp.f32 %v2234_v29  ;;  %v2241_v16 = vadd.f32 1.0, %v5032_v40  ;;  %v7382_v40 = vld [vmem:[#allocation43_spill] sm:$0xff]  ;;  %v7383_v29 = vld [vmem:[#allocation58_spill] sm:$0xff] }
 0x543   :  { %5035 = vrcp.f32 %v2241_v16  ;;  %v7378_v16 = vld [vmem:[#allocation40_spill] sm:$0xff] }
 0x54e   :  { %v5034_v3 = vpop.eup %5033 }
 0x54f   :  { %v2245_v54 = vmul.f32 %v5034_v3, %v2244_v21  ;;  %v7377_v21 = vld [vmem:[#allocation56_spill] sm:$0xff]  ;;  %v7385_v3 = vld [vmem:[#allocation18_spill] sm:$0xff] }
 0x550   :  { %v5036_v48 = vpop.eup %5035 }
 0x551   :  { %v2246_v11 = vadd.f32 %v2245_v54, %v7376_v56  ;;  %v2248_v1 = vsub.f32 1.0, %v5036_v48  ;;  %v2250_v27 = vmul.f32 %v5036_v48, %v6668_v5  ;;  %v7381_v5 = vld [vmem:[#allocation42_spill] sm:$0xff] }
 0x553   :  { %5037 = vtanh.f32 %v2246_v11 }
 0x560   :  { %v5038_v49 = vpop.eup %5037 }
 0x561   :  { %v2249_v2 = vmul.f32 %v5038_v49, %v2248_v1  ;;  %v7386_v1 = vld [vmem:[#allocation16_spill] sm:$0xff]  ;;  %v7387_v49 = vld [vmem:[#allocation79_spill] sm:$0xff] }
 0x563   :  { %v6752_v61 = vadd.f32 %v2250_v27, %v2249_v2  ;;  %v7388_v2 = vsel %vm5911_vm11, %v7386_v1, %v7387_v49 }
 0x565   :  { %2317 = vmatmul.mubr.f32.vlgmr.msra.gmra.mxu1 %v6752_v61  ;;  %4772 = vmatmul.mubr.f32.vlgmr.msra.gmra.mxu0 %v6752_v61 }
 0x566   :  { %2416 = vmatpush1.msra.mxu1 %v5348_v37  ;;  %4775 = vmatpush3.msra.mxu0 %v5515_v52 }
 0x567   :  { %2417 = vmatprep.subr.mxu1 %v7271_v6  ;;  %4776 = vmatprep.subr.mxu0 %v7272_v12 }
 0x568   :  { %2418 = vmatpush1.msra.mxu1 %v7273_v24  ;;  %4777 = vmatpush3.msra.mxu0 %v7274_v26 }
 0x569   :  { %2419 = vmatprep.subr.mxu1 %v7275_v4  ;;  %4778 = vmatprep.subr.mxu0 %v7272_v12 }
 0x56a   :  { %2420 = vmatpush1.msra.mxu1 %v7277_v58  ;;  %4779 = vmatpush3.msra.mxu0 %v7278_v15 }
 0x56b   :  { %2421 = vmatprep.subr.mxu1 %v7279_v31  ;;  %4780 = vmatprep.subr.mxu0 %v7272_v12 }
 0x56c   :  { %2422 = vmatpush1.msra.mxu1 %v7280_v17  ;;  %4781 = vmatpush3.msra.mxu0 %v7281_v34 }
 0x56d   :  { %2423 = vmatprep.subr.mxu1 %v7282_v51  ;;  %4782 = vmatprep.subr.mxu0 %v7272_v12 }
 0x56e   :  { %2424 = vmatpush1.msra.mxu1 %v7284_v9  ;;  %4783 = vmatpush3.msra.mxu0 %v7285_v44 }
 0x56f   :  { %2425 = vmatprep.subr.mxu1 %v7287_v59  ;;  %4784 = vmatprep.subr.mxu0 %v7272_v12 }
 0x570   :  { %2426 = vmatpush1.msra.mxu1 %v7288_v38  ;;  %4785 = vmatpush3.msra.mxu0 %v7289_v36 }
 0x571   :  { %2427 = vmatprep.subr.mxu1 %v7340_v22  ;;  %4786 = vmatprep.subr.mxu0 %v7272_v12 }
 0x572   :  { %2428 = vmatpush1.msra.mxu1 %v7293_v39  ;;  %4787 = vmatpush3.msra.mxu0 %v7294_v8 }
 0x573   :  { %2429 = vmatprep.subr.mxu1 %v7297_v42  ;;  %4788 = vmatprep.subr.mxu0 %v7272_v12 }
 0x574   :  { %2430 = vmatpush1.msra.mxu1 %v7300_v32  ;;  %4789 = vmatpush3.msra.mxu0 %v7301_v7 }
 0x575   :  { %2431 = vmatprep.subr.mxu1 %v7303_v23  ;;  %4790 = vmatprep.subr.mxu0 %v7272_v12 }
 0x576   :  { %2432 = vmatpush1.msra.mxu1 %v7304_v55  ;;  %4791 = vmatpush3.msra.mxu0 %v7305_v13 }
 0x577   :  { %2433 = vmatprep.subr.mxu1 %v7308_v18  ;;  %4792 = vmatprep.subr.mxu0 %v7272_v12 }
 0x578   :  { %2434 = vmatpush1.msra.mxu1 %v7311_v20  ;;  %4793 = vmatpush3.msra.mxu0 %v7312_v63 }
 0x579   :  { %2435 = vmatprep.subr.mxu1 %v7316_v10  ;;  %4794 = vmatprep.subr.mxu0 %v7272_v12 }
 0x57a   :  { %2436 = vmatpush1.msra.mxu1 %v7317_v14  ;;  %4795 = vmatpush3.msra.mxu0 %v7318_v33 }
 0x57b   :  { %2437 = vmatprep.subr.mxu1 %v7320_v47  ;;  %4796 = vmatprep.subr.mxu0 %v7272_v12 }
 0x57c   :  { %2438 = vmatpush1.msra.mxu1 %v7321_v35  ;;  %4797 = vmatpush3.msra.mxu0 %v7322_v25 }
 0x57d   :  { %2439 = vmatprep.subr.mxu1 %v7323_v19  ;;  %4798 = vmatprep.subr.mxu0 %v7272_v12 }
 0x57e   :  { %2440 = vmatpush1.msra.mxu1 %v7324_v62  ;;  %4799 = vmatpush3.msra.mxu0 %v7325_v28 }
 0x57f   :  { %2441 = vmatprep.subr.mxu1 %v7327_v53  ;;  %4800 = vmatprep.subr.mxu0 %v7272_v12 }
 0x580   :  { %2442 = vmatpush1.msra.mxu1 %v7328_v41  ;;  %4801 = vmatpush3.msra.mxu0 %v7377_v21 }
 0x581   :  { %2443 = vmatprep.subr.mxu1 %v7378_v16  ;;  %4802 = vmatprep.subr.mxu0 %v7272_v12 }
 0x582   :  { %2444 = vmatpush1.msra.mxu1 %v7379_v43  ;;  %4803 = vmatpush3.msra.mxu0 %v7380_v50 }
 0x583   :  { %2445 = vmatprep.subr.mxu1 %v7381_v5  ;;  %4804 = vmatprep.subr.mxu0 %v7272_v12 }
 0x584   :  { %2446 = vmatpush1.msra.mxu1 %v7382_v40  ;;  %2479 = vmatprep.mubr.f32.mxu1 %v7272_v12 }
 0x585   :  { %4805 = vmatpush3.msra.mxu0 %v7383_v29  ;;  %4806 = vmatprep.mubr.msk.f32.mxu0 %vm5190_vm1, %v7272_v12 }
 0x586   :  { %2578 = vmatprep.subr.mxu1 %v7384_v30  ;;  %4809 = vmatprep.subr.mxu0 %v7272_v12 }
 0x625   :  { %v2318_v57 = vpop.f32.mrf.mxu1  ;;  %v2389_v0 = vpop.f32.mrf.mxu0 }
 0x626   :  { %v2393_v54 = vadd.f32 %v2318_v57, %v7385_v3  ;;  %v2407_v43 = vadd.f32 %v2389_v0, %v7338_v45 }
 0x627   :  { %v4773_v56 = vpop.f32.mrf.mxu0  ;;  %v2320_v48 = vpop.f32.mrf.mxu1 }
 0x628   :  { %v4014_v11 = vmul.f32 -1.442695, %v2393_v54  ;;  %v2400_v27 = vadd.f32 %v2320_v48, %v7388_v2  ;;  %v7389_v54 = vld [vmem:[#allocation78_spill] sm:$0xff]  ;;  %v7390_v56 = vld [vmem:[#allocation76_spill] sm:$0xff] }
 0x62a   :  { %5039 = vpow2.f32 %v4014_v11  ;;  %v4015_v29 = vmul.f32 -1.442695, %v2400_v27  ;;  %v7391_v11 = vsel %vm6013_vm12, %v7389_v54, %v7390_v56 }
 0x62c   :  { %5041 = vpow2.f32 %v4015_v29 }
 0x637   :  { %v5040_v40 = vpop.eup %5039 }
 0x638   :  { %v2397_v30 = vadd.f32 1.0, %v5040_v40 }
 0x639   :  { %v5042_v5 = vpop.eup %5041 }
 0x63a   :  { %5043 = vrcp.f32 %v2397_v30  ;;  %v2404_v50 = vadd.f32 1.0, %v5042_v5  ;;  %v2781_v5 = vld [vmem:[#allocation6 + $0xf0] sm:$0xff] }
 0x63b   :  { %v2850_v54 = vunpack.c.h.bf16 %v2781_v5 }
 0x63c   :  { %5045 = vrcp.f32 %v2404_v50 }
 0x647   :  { %v5044_v57 = vpop.eup %5043 }
 0x648   :  { %v2408_v3 = vmul.f32 %v5044_v57, %v2407_v43  ;;  %v2779_v57 = vld [vmem:[#allocation6 + $0xe4] sm:$0xff] }
 0x649   :  { %v5046_v48 = vpop.eup %5045 }
 0x64a   :  { %v2409_v60 = vadd.f32 %v2408_v3, %v7391_v11  ;;  %v2411_v1 = vsub.f32 1.0, %v5046_v48  ;;  %v2413_v40 = vmul.f32 %v5046_v48, %v6752_v61  ;;  %v2783_v61 = vld [vmem:[#allocation6 + $0xfc] sm:$0xff]  ;;  %v2849_v11 = vunpack.c.l.bf16 %v2781_v5 }
 0x64b   :  { %v2853_v0 = vunpack.c.h.bf16 %v2783_v61  ;;  %v2852_v30 = vunpack.c.l.bf16 %v2783_v61  ;;  %v2780_v3 = vld [vmem:[#allocation6 + $0xe0] ss:$12 sps:$4 sm:$0xff]   ;;  %v2777_v48 = vld [vmem:[#allocation6 + $0xd8] sm:$0xff] }
 0x64c   :  { %5047 = vtanh.f32 %v2409_v60  ;;  %v2757_v61 = vld [vmem:[#allocation6 + $0x60] sm:$0xff] }
 0x64d   :  { %v2814_v5 = vunpack.c.h.bf16 %v2757_v61 }
 0x659   :  { %v5048_v29 = vpop.eup %5047 }
 0x65a   :  { %v2412_v49 = vmul.f32 %v5048_v29, %v2411_v1  ;;  %v2847_v1 = vunpack.c.h.bf16 %v2779_v57  ;;  %v2848_v29 = vunpack.c.h.bf16 %v2780_v3 }
 0x65c   :  { %v6836_v2 = vadd.f32 %v2413_v40, %v2412_v49  ;;  %v2846_v49 = vunpack.c.l.bf16 %v2779_v57  ;;  %v2775_v40 = vld [vmem:[#allocation6 + $0xcc] sm:$0xff]  ;;  %v7405_v57 = vld [vmem:[#allocation64_spill] sm:$0xff] }
 0x65e   :  { %2480 = vmatmul.mubr.f32.vlgmr.msra.gmra.mxu1 %v6836_v2  ;;  %4807 = vmatmul.mubr.f32.vlgmr.msra.gmra.mxu0 %v6836_v2 }
 0x65f   :  { %2579 = vmatpush1.msra.mxu1 %v5348_v37  ;;  %4810 = vmatpush3.msra.mxu0 %v5515_v52  ;;  %v7392_v37 = vld [vmem:[#allocation41_spill] sm:$0xff] }
 0x660   :  { %2580 = vmatprep.subr.mxu1 %v7271_v6  ;;  %4811 = vmatprep.subr.mxu0 %v7272_v12  ;;  %v7393_v52 = vld [vmem:[#allocation57_spill] sm:$0xff]  ;;  %v7395_v6 = vld [vmem:[#allocation43_spill] sm:$0xff] }
 0x661   :  { %2581 = vmatpush1.msra.mxu1 %v7273_v24  ;;  %4812 = vmatpush3.msra.mxu0 %v7274_v26  ;;  %v7396_v24 = vld [vmem:[#allocation58_spill] sm:$0xff] }
 0x662   :  { %2582 = vmatprep.subr.mxu1 %v7275_v4  ;;  %4813 = vmatprep.subr.mxu0 %v7272_v12 }
 0x663   :  { %2583 = vmatpush1.msra.mxu1 %v7277_v58  ;;  %4814 = vmatpush3.msra.mxu0 %v7278_v15  ;;  %v7397_v58 = vld [vmem:[#allocation19_spill] sm:$0xff] }
 0x664   :  { %2584 = vmatprep.subr.mxu1 %v7279_v31  ;;  %4815 = vmatprep.subr.mxu0 %v7272_v12 }
 0x665   :  { %2585 = vmatpush1.msra.mxu1 %v7280_v17  ;;  %4816 = vmatpush3.msra.mxu0 %v7281_v34 }
 0x666   :  { %2586 = vmatprep.subr.mxu1 %v7282_v51  ;;  %4817 = vmatprep.subr.mxu0 %v7272_v12 }
 0x667   :  { %2587 = vmatpush1.msra.mxu1 %v7284_v9  ;;  %4818 = vmatpush3.msra.mxu0 %v7285_v44  ;;  %v7399_v9 = vld [vmem:[#allocation77_spill] sm:$0xff]  ;;  %v7400_v44 = vld [vmem:[#allocation75_spill] sm:$0xff] }
 0x668   :  { %2588 = vmatprep.subr.mxu1 %v7287_v59  ;;  %4819 = vmatprep.subr.mxu0 %v7272_v12  ;;  %v7401_v59 = vsel %vm5911_vm11, %v7399_v9, %v7400_v44  ;;  %v2769_v9 = vld [vmem:[#allocation6 + $0xa8] sm:$0xff] }
 0x669   :  { %2589 = vmatpush1.msra.mxu1 %v7288_v38  ;;  %4820 = vmatpush3.msra.mxu0 %v7289_v36 }
 0x66a   :  { %2590 = vmatprep.subr.mxu1 %v7340_v22  ;;  %4821 = vmatprep.subr.mxu0 %v7272_v12 }
 0x66b   :  { %2591 = vmatpush1.msra.mxu1 %v7293_v39  ;;  %4822 = vmatpush3.msra.mxu0 %v7294_v8 }
 0x66c   :  { %2592 = vmatprep.subr.mxu1 %v7297_v42  ;;  %4823 = vmatprep.subr.mxu0 %v7272_v12 }
 0x66d   :  { %2593 = vmatpush1.msra.mxu1 %v7300_v32  ;;  %4824 = vmatpush3.msra.mxu0 %v7301_v7 }
 0x66e   :  { %2594 = vmatprep.subr.mxu1 %v7303_v23  ;;  %4825 = vmatprep.subr.mxu0 %v7272_v12  ;;  %v7402_v23 = vld [vmem:[#allocation73_spill] sm:$0xff] }
 0x66f   :  { %2595 = vmatpush1.msra.mxu1 %v7304_v55  ;;  %4826 = vmatpush3.msra.mxu0 %v7305_v13 }
 0x670   :  { %2596 = vmatprep.subr.mxu1 %v7308_v18  ;;  %4827 = vmatprep.subr.mxu0 %v7272_v12 }
 0x671   :  { %2597 = vmatpush1.msra.mxu1 %v7311_v20  ;;  %4828 = vmatpush3.msra.mxu0 %v7312_v63  ;;  %v7403_v20 = vld [vmem:[#allocation72_spill] sm:$0xff] }
 0x672   :  { %2598 = vmatprep.subr.mxu1 %v7316_v10  ;;  %4829 = vmatprep.subr.mxu0 %v7272_v12  ;;  %v7394_v10 = vld [vmem:[#allocation42_spill] sm:$0xff]  ;;  %v7404_v55 = vsel %vm6013_vm12, %v7402_v23, %v7403_v20 }
 0x673   :  { %2599 = vmatpush1.msra.mxu1 %v7317_v14  ;;  %4830 = vmatpush3.msra.mxu0 %v7318_v33  ;;  %v2763_v20 = vld [vmem:[#allocation6 + $0x84] sm:$0xff] }
 0x674   :  { %2600 = vmatprep.subr.mxu1 %v7320_v47  ;;  %4831 = vmatprep.subr.mxu0 %v7272_v12 }
 0x675   :  { %2601 = vmatpush1.msra.mxu1 %v7321_v35  ;;  %4832 = vmatpush3.msra.mxu0 %v7322_v25 }
 0x676   :  { %2602 = vmatprep.subr.mxu1 %v7323_v19  ;;  %4833 = vmatprep.subr.mxu0 %v7272_v12  ;;  %v2787_v19 = vld [vmem:[#allocation6 + $0x114] sm:$0xff] }
 0x677   :  { %2603 = vmatpush1.msra.mxu1 %v7324_v62  ;;  %4834 = vmatpush3.msra.mxu0 %v7325_v28  ;;  %v2788_v62 = vld [vmem:[#allocation6 + $0x110] ss:$12 sps:$4 sm:$0xff]   ;;  %v2859_v22 = vunpack.c.h.bf16 %v2787_v19 }
 0x678   :  { %2604 = vmatprep.subr.mxu1 %v7327_v53  ;;  %4835 = vmatprep.subr.mxu0 %v7272_v12  ;;  %v2785_v53 = vld [vmem:[#allocation6 + $0x108] sm:$0xff]  ;;  %v2860_v60 = vunpack.c.h.bf16 %v2788_v62  ;;  %v2857_v50 = vunpack.c.l.bf16 %v2788_v62 }
 0x679   :  { %2605 = vmatpush1.msra.mxu1 %v7328_v41  ;;  %4836 = vmatpush3.msra.mxu0 %v7377_v21  ;;  %v2858_v41 = vunpack.c.l.bf16 %v2787_v19  ;;  %v2784_v21 = vld [vmem:[#allocation6 + $0xf8] ss:$12 sps:$4 sm:$0xff]   ;;  %v2856_v43 = vunpack.c.h.bf16 %v2785_v53  ;;  %v2822_v19 = vunpack.c.l.bf16 %v2763_v20  ;;  %v2759_v62 = vld [vmem:[#allocation6 + $0x6c] sm:$0xff] }
 0x67a   :  { %2606 = vmatprep.subr.mxu1 %v7378_v16  ;;  %4837 = vmatprep.subr.mxu0 %v7272_v12  ;;  %v2855_v16 = vunpack.c.l.bf16 %v2785_v53  ;;  %v2854_v27 = vunpack.c.h.bf16 %v2784_v21  ;;  %v2851_v56 = vunpack.c.l.bf16 %v2784_v21  ;;  %v2760_v53 = vld [vmem:[#allocation6 + $0x68] ss:$12 sps:$4 sm:$0xff]   ;;  %v2817_v21 = vunpack.c.h.bf16 %v2759_v62 }
 0x67b   :  { %2607 = vmatpush1.msra.mxu1 %v7392_v37  ;;  %4838 = vmatpush3.msra.mxu0 %v7393_v52  ;;  %v2844_v37 = vunpack.c.h.bf16 %v2777_v48  ;;  %v2845_v52 = vunpack.c.l.bf16 %v2780_v3  ;;  %v7406_v3 = vld [vmem:[#allocation65_spill] sm:$0xff] }
 0x67c   :  { %2608 = vmatprep.subr.mxu1 %v7394_v10  ;;  %4839 = vmatprep.subr.mxu0 %v7272_v12  ;;  %v2843_v10 = vunpack.c.l.bf16 %v2777_v48 }
 0x67d   :  { %2609 = vmatpush1.msra.mxu1 %v7395_v6  ;;  %2642 = vmatprep.mubr.f32.mxu1 %v7272_v12  ;;  %v2773_v6 = vld [vmem:[#allocation6 + $0xc0] sm:$0xff] }
 0x67e   :  { %4840 = vmatpush3.msra.mxu0 %v7396_v24  ;;  %4841 = vmatprep.mubr.msk.f32.mxu0 %vm5190_vm1, %v7272_v12  ;;  %v2841_v24 = vunpack.c.h.bf16 %v2775_v40 }
 0x67f   :  { %4844 = vmatprep.subr.mxu0 %v7272_v12  ;;  %2861 = vmatprep.subr.mxu1 %v2859_v22 }
 0x71e   :  { %v2481_v26 = vpop.f32.mrf.mxu1  ;;  %v2552_v4 = vpop.f32.mrf.mxu0 }
 0x71f   :  { %v2556_v15 = vadd.f32 %v2481_v26, %v7397_v58  ;;  %v2570_v7 = vadd.f32 %v2552_v4, %v7338_v45  ;;  %v2840_v4 = vunpack.c.l.bf16 %v2775_v40  ;;  %v2771_v58 = vld [vmem:[#allocation6 + $0xb4] sm:$0xff] }
 0x720   :  { %v4808_v31 = vpop.f32.mrf.mxu0  ;;  %v2483_v34 = vpop.f32.mrf.mxu1  ;;  %v2835_v44 = vunpack.c.h.bf16 %v2771_v58 }
 0x721   :  { %v4016_v17 = vmul.f32 -1.442695, %v2556_v15  ;;  %v2563_v38 = vadd.f32 %v2483_v34, %v7401_v59  ;;  %v2772_v15 = vld [vmem:[#allocation6 + $0xb0] ss:$12 sps:$4 sm:$0xff]   ;;  %v2838_v31 = vunpack.c.h.bf16 %v2773_v6  ;;  %v2837_v34 = vunpack.c.l.bf16 %v2773_v6 }
 0x722   :  { %v2836_v59 = vunpack.c.h.bf16 %v2772_v15 }
 0x723   :  { %5049 = vpow2.f32 %v4016_v17  ;;  %v4017_v36 = vmul.f32 -1.442695, %v2563_v38  ;;  %v2834_v38 = vunpack.c.l.bf16 %v2771_v58 }
 0x725   :  { %5051 = vpow2.f32 %v4017_v36  ;;  %v2767_v36 = vld [vmem:[#allocation6 + $0x9c] sm:$0xff] }
 0x726   :  { %v2828_v23 = vunpack.c.l.bf16 %v2767_v36 }
 0x730   :  { %v5050_v42 = vpop.eup %5049 }
 0x731   :  { %v2560_v39 = vadd.f32 1.0, %v5050_v42  ;;  %v2768_v42 = vld [vmem:[#allocation6 + $0x98] ss:$12 sps:$4 sm:$0xff]  }
 0x732   :  { %v5052_v8 = vpop.eup %5051 }
 0x733   :  { %5053 = vrcp.f32 %v2560_v39  ;;  %v2567_v32 = vadd.f32 1.0, %v5052_v8  ;;  %v2832_v39 = vunpack.c.h.bf16 %v2769_v9  ;;  %v2833_v8 = vunpack.c.l.bf16 %v2772_v15 }
 0x735   :  { %5055 = vrcp.f32 %v2567_v32  ;;  %v2831_v32 = vunpack.c.l.bf16 %v2769_v9  ;;  %v7411_v9 = vld [vmem:[#allocation70_spill] sm:$0xff] }
 0x740   :  { %v5054_v47 = vpop.eup %5053 }
 0x741   :  { %v2571_v28 = vmul.f32 %v5054_v47, %v2570_v7  ;;  %v2765_v7 = vld [vmem:[#allocation6 + $0x90] sm:$0xff]  ;;  %v2829_v47 = vunpack.c.h.bf16 %v2767_v36 }
 0x742   :  { %v5056_v18 = vpop.eup %5055  ;;  %v2756_v36 = vld [vmem:[#allocation6 + $0x50] ss:$12 sps:$4 sm:$0xff]  }
 0x743   :  { %v2572_v13 = vadd.f32 %v2571_v28, %v7404_v55  ;;  %v2574_v63 = vsub.f32 1.0, %v5056_v18  ;;  %v2576_v33 = vmul.f32 %v5056_v18, %v6836_v2  ;;  %v2776_v2 = vld [vmem:[#allocation6 + $0xc8] ss:$12 sps:$4 sm:$0xff]   ;;  %v2830_v28 = vunpack.c.h.bf16 %v2768_v42  ;;  %v2764_v55 = vld [vmem:[#allocation6 + $0x80] ss:$12 sps:$4 sm:$0xff]  }
 0x744   :  { %v2842_v26 = vunpack.c.h.bf16 %v2776_v2  ;;  %v2839_v17 = vunpack.c.l.bf16 %v2776_v2  ;;  %v2827_v18 = vunpack.c.l.bf16 %v2768_v42  ;;  %v2821_v22 = vunpack.c.l.bf16 %v2764_v55  ;;  %v7408_v2 = vld [vmem:[#allocation66_spill] sm:$0xff] }
 0x745   :  { %5057 = vtanh.f32 %v2572_v13  ;;  %v2826_v13 = vunpack.c.h.bf16 %v2765_v7 }
 0x752   :  { %v5058_v25 = vpop.eup %5057 }
 0x753   :  { %v2575_v14 = vmul.f32 %v5058_v25, %v2574_v63  ;;  %v2825_v63 = vunpack.c.l.bf16 %v2765_v7  ;;  %v2761_v25 = vld [vmem:[#allocation6 + $0x78] sm:$0xff] }
 0x755   :  { %v6919_v35 = vadd.f32 %v2576_v33, %v2575_v14  ;;  %v2823_v14 = vunpack.c.h.bf16 %v2763_v20  ;;  %v2824_v33 = vunpack.c.h.bf16 %v2764_v55  ;;  %v2752_v20 = vld [vmem:[#allocation6 + $0x38] ss:$12 sps:$4 sm:$0xff]   ;;  %v2809_v55 = vunpack.c.l.bf16 %v2756_v36 }
 0x757   :  { %2643 = vmatmul.mubr.f32.vlgmr.msra.gmra.mxu1 %v6919_v35  ;;  %4842 = vmatmul.mubr.f32.vlgmr.msra.gmra.mxu0 %v6919_v35 }
 0x758   :  { %2925 = vmatprep.mubr.f32.mxu1 %v7272_v12  ;;  %4876 = vmatprep.mubr.msk.f32.mxu0 %vm5190_vm1, %v7272_v12 }
 0x759   :  { %4845 = vmatpush3.msra.mxu0 %v2860_v60  ;;  %2862 = vmatpush1.msra.mxu1 %v2858_v41  ;;  %v2820_v41 = vunpack.c.h.bf16 %v2761_v25  ;;  %v2819_v60 = vunpack.c.l.bf16 %v2761_v25  ;;  %v2806_v25 = vunpack.c.h.bf16 %v2752_v20 }
 0x75a   :  { %4846 = vmatprep.subr.mxu0 %v7272_v12  ;;  %2863 = vmatprep.subr.mxu1 %v2856_v43  ;;  %v2816_v43 = vunpack.c.l.bf16 %v2759_v62  ;;  %v2803_v62 = vunpack.c.l.bf16 %v2752_v20 }
 0x75b   :  { %4847 = vmatpush3.msra.mxu0 %v2857_v50  ;;  %2864 = vmatpush1.msra.mxu1 %v2855_v16  ;;  %v2818_v16 = vunpack.c.h.bf16 %v2760_v53  ;;  %v2755_v50 = vld [vmem:[#allocation6 + $0x54] sm:$0xff] }
 0x75c   :  { %4848 = vmatprep.subr.mxu0 %v7272_v12  ;;  %2865 = vmatprep.subr.mxu1 %v2853_v0  ;;  %v2815_v0 = vunpack.c.l.bf16 %v2760_v53  ;;  %v2810_v7 = vunpack.c.l.bf16 %v2755_v50  ;;  %v2745_v53 = vld [vmem:[#allocation6 + $0x18] sm:$0xff] }
 0x75d   :  { %4849 = vmatpush3.msra.mxu0 %v2854_v27  ;;  %2866 = vmatpush1.msra.mxu1 %v2852_v30  ;;  %v2813_v27 = vunpack.c.l.bf16 %v2757_v61  ;;  %v2811_v30 = vunpack.c.h.bf16 %v2755_v50  ;;  %v2743_v61 = vld [vmem:[#allocation6 + $0xc] sm:$0xff] }
 0x75e   :  { %4850 = vmatprep.subr.mxu0 %v7272_v12  ;;  %2867 = vmatprep.subr.mxu1 %v2850_v54  ;;  %v3209_v54 = vld [vmem:[#allocation7 + $0xb4] sm:$0xff] }
 0x75f   :  { %4851 = vmatpush3.msra.mxu0 %v2851_v56  ;;  %2868 = vmatpush1.msra.mxu1 %v2849_v11  ;;  %v1434_v56 = vsel %vm1019_vm10, %v7406_v3, %v7405_v57 }
 0x760   :  { %4852 = vmatprep.subr.mxu0 %v7272_v12  ;;  %2869 = vmatprep.subr.mxu1 %v2847_v1 }
 0x761   :  { %4853 = vmatpush3.msra.mxu0 %v2848_v29  ;;  %2870 = vmatpush1.msra.mxu1 %v2846_v49 }
 0x762   :  { %4854 = vmatprep.subr.mxu0 %v7272_v12  ;;  %2871 = vmatprep.subr.mxu1 %v2844_v37  ;;  %v7409_v37 = vld [vmem:[#allocation68_spill] sm:$0xff] }
 0x763   :  { %4855 = vmatpush3.msra.mxu0 %v2845_v52  ;;  %2872 = vmatpush1.msra.mxu1 %v2843_v10  ;;  %v1435_v52 = vsel %vm5911_vm11, %v7409_v37, %v7408_v2  ;;  %v3205_v2 = vld [vmem:[#allocation7 + $0x9c] sm:$0xff] }
 0x764   :  { %4856 = vmatprep.subr.mxu0 %v7272_v12  ;;  %2873 = vmatprep.subr.mxu1 %v2841_v24 }
 0x765   :  { %4857 = vmatpush3.msra.mxu0 %v2842_v26  ;;  %2874 = vmatpush1.msra.mxu1 %v2840_v4 }
 0x766   :  { %4858 = vmatprep.subr.mxu0 %v7272_v12  ;;  %2875 = vmatprep.subr.mxu1 %v2838_v31 }
 0x767   :  { %4859 = vmatpush3.msra.mxu0 %v2839_v17  ;;  %2876 = vmatpush1.msra.mxu1 %v2837_v34  ;;  %v7410_v34 = vld [vmem:[#allocation71_spill] sm:$0xff] }
 0x768   :  { %4860 = vmatprep.subr.mxu0 %v7272_v12  ;;  %2877 = vmatprep.subr.mxu1 %v2835_v44  ;;  %v7412_v44 = vsel %vm6013_vm12, %v7410_v34, %v7411_v9  ;;  %v3314_v34 = vunpack.c.l.bf16 %v3205_v2  ;;  %v3201_v9 = vld [vmem:[#allocation7 + $0x84] sm:$0xff] }
 0x769   :  { %4861 = vmatpush3.msra.mxu0 %v2836_v59  ;;  %2878 = vmatpush1.msra.mxu1 %v2834_v38 }
 0x76a   :  { %4862 = vmatprep.subr.mxu0 %v7272_v12  ;;  %2879 = vmatprep.subr.mxu1 %v2832_v39  ;;  %v2753_v39 = vld [vmem:[#allocation6 + $0x48] sm:$0xff] }
 0x76b   :  { %4863 = vmatpush3.msra.mxu0 %v2833_v8  ;;  %2880 = vmatpush1.msra.mxu1 %v2831_v32  ;;  %v2807_v46 = vunpack.c.l.bf16 %v2753_v39 }
 0x76c   :  { %4864 = vmatprep.subr.mxu0 %v7272_v12  ;;  %2881 = vmatprep.subr.mxu1 %v2829_v47  ;;  %v2751_v47 = vld [vmem:[#allocation6 + $0x3c] sm:$0xff] }
 0x76d   :  { %4865 = vmatpush3.msra.mxu0 %v2830_v28  ;;  %2882 = vmatpush1.msra.mxu1 %v2828_v23  ;;  %v2808_v23 = vunpack.c.h.bf16 %v2753_v39 }
 0x76e   :  { %4866 = vmatprep.subr.mxu0 %v7272_v12  ;;  %2883 = vmatprep.subr.mxu1 %v2826_v13  ;;  %v2749_v13 = vld [vmem:[#allocation6 + $0x30] sm:$0xff] }
 0x76f   :  { %4867 = vmatpush3.msra.mxu0 %v2827_v18  ;;  %2884 = vmatpush1.msra.mxu1 %v2825_v63  ;;  %v2805_v18 = vunpack.c.h.bf16 %v2751_v47  ;;  %v2804_v63 = vunpack.c.l.bf16 %v2751_v47  ;;  %v3197_v47 = vld [vmem:[#allocation7 + $0x6c] sm:$0xff] }
 0x770   :  { %4868 = vmatprep.subr.mxu0 %v7272_v12  ;;  %2885 = vmatprep.subr.mxu1 %v2823_v14  ;;  %v2747_v14 = vld [vmem:[#allocation6 + $0x24] sm:$0xff] }
 0x771   :  { %4869 = vmatpush3.msra.mxu0 %v2824_v33  ;;  %2886 = vmatpush1.msra.mxu1 %v2822_v19  ;;  %v2748_v33 = vld [vmem:[#allocation6 + $0x20] ss:$12 sps:$4 sm:$0xff]   ;;  %v2801_v19 = vunpack.c.l.bf16 %v2749_v13 }
 0x772   :  { %4870 = vmatprep.subr.mxu0 %v7272_v12  ;;  %2887 = vmatprep.subr.mxu1 %v2820_v41  ;;  %v2799_v41 = vunpack.c.h.bf16 %v2747_v14  ;;  %v2797_v50 = vunpack.c.l.bf16 %v2748_v33 }
 0x773   :  { %4871 = vmatpush3.msra.mxu0 %v2821_v22  ;;  %2888 = vmatpush1.msra.mxu1 %v2819_v60  ;;  %v2798_v22 = vunpack.c.l.bf16 %v2747_v14  ;;  %v2800_v60 = vunpack.c.h.bf16 %v2748_v33  ;;  %v3191_v33 = vld [vmem:[#allocation7 + $0x48] sm:$0xff] }
 0x774   :  { %4872 = vmatprep.subr.mxu0 %v7272_v12  ;;  %2889 = vmatprep.subr.mxu1 %v2817_v21  ;;  %v2796_v21 = vunpack.c.h.bf16 %v2745_v53 }
 0x775   :  { %4873 = vmatpush3.msra.mxu0 %v2818_v16  ;;  %2890 = vmatpush1.msra.mxu1 %v2816_v43  ;;  %v2744_v16 = vld [vmem:[#allocation6 + $0x8] ss:$12 sps:$4 sm:$0xff]   ;;  %v2795_v43 = vunpack.c.l.bf16 %v2745_v53  ;;  %v3189_v53 = vld [vmem:[#allocation7 + $0x3c] sm:$0xff] }
 0x776   :  { %4874 = vmatprep.subr.mxu0 %v7272_v12  ;;  %2891 = vmatprep.subr.mxu1 %v2814_v5  ;;  %v2741_v5 = vld [vmem:[#allocation6] sm:$0xff] }
 0x777   :  { %4875 = vmatpush3.msra.mxu0 %v2815_v0  ;;  %2892 = vmatpush1.msra.mxu1 %v2813_v27  ;;  %v2793_v0 = vunpack.c.h.bf16 %v2743_v61  ;;  %v2792_v27 = vunpack.c.l.bf16 %v2743_v61  ;;  %v2790_v57 = vunpack.c.h.bf16 %v2741_v5  ;;  %v2789_v3 = vunpack.c.l.bf16 %v2741_v5  ;;  %v3183_v5 = vld [vmem:[#allocation7 + $0x18] sm:$0xff] }
 0x778   :  { %4879 = vmatprep.subr.mxu0 %v7272_v12  ;;  %3036 = vmatprep.subr.mxu1 %v2811_v30  ;;  %v2794_v30 = vunpack.c.h.bf16 %v2744_v16  ;;  %v3291_v61 = vunpack.c.h.bf16 %v3189_v53 }
 0x817   :  { %v2644_v11 = vpop.f32.mrf.mxu1  ;;  %v2715_v48 = vpop.f32.mrf.mxu0 }
 0x818   :  { %v2719_v1 = vadd.f32 %v2644_v11, %v1434_v56  ;;  %v2733_v15 = vadd.f32 %v2715_v48, %v7338_v45  ;;  %v2812_v45 = vunpack.c.h.bf16 %v2756_v36  ;;  %v3273_v56 = vld [vmem:[#allocation7 + $0x234] sm:$0xff]  ;;  %v2791_v11 = vunpack.c.l.bf16 %v2744_v16  ;;  %v3207_v48 = vld [vmem:[#allocation7 + $0xa8] sm:$0xff] }
 0x819   :  { %v4843_v29 = vpop.f32.mrf.mxu0  ;;  %v2646_v40 = vpop.f32.mrf.mxu1  ;;  %v3416_v37 = vunpack.c.l.bf16 %v3273_v56  ;;  %v3185_v16 = vld [vmem:[#allocation7 + $0x24] sm:$0xff] }
 0x81a   :  { %v4018_v49 = vmul.f32 -1.442695, %v2719_v1  ;;  %v2726_v10 = vadd.f32 %v2646_v40, %v1435_v52  ;;  %v3271_v1 = vld [vmem:[#allocation7 + $0x228] sm:$0xff]  ;;  %v3321_v29 = vunpack.c.h.bf16 %v3209_v54  ;;  %v3320_v40 = vunpack.c.l.bf16 %v3209_v54  ;;  %v3269_v52 = vld [vmem:[#allocation7 + $0x21c] sm:$0xff] }
 0x81b   :  { %v3179_v54 = vld [vmem:[#allocation7] sm:$0xff] }
 0x81c   :  { %5059 = vpow2.f32 %v4018_v49  ;;  %v4019_v6 = vmul.f32 -1.442695, %v2726_v10  ;;  %v3417_v49 = vunpack.c.h.bf16 %v3273_v56  ;;  %v3318_v10 = vunpack.c.h.bf16 %v3207_v48 }
 0x81e   :  { %5061 = vpow2.f32 %v4019_v6  ;;  %v3414_v6 = vunpack.c.h.bf16 %v3271_v1 }
 0x829   :  { %v5060_v24 = vpop.eup %5059 }
 0x82a   :  { %v2723_v26 = vadd.f32 1.0, %v5060_v24  ;;  %v7413_v24 = vld [vmem:[#allocation20_spill] sm:$0xff] }
 0x82b   :  { %v5062_v4 = vpop.eup %5061 }
 0x82c   :  { %5063 = vrcp.f32 %v2723_v26  ;;  %v2730_v58 = vadd.f32 1.0, %v5062_v4  ;;  %v3317_v26 = vunpack.c.l.bf16 %v3207_v48  ;;  %v3203_v4 = vld [vmem:[#allocation7 + $0x90] sm:$0xff] }
 0x82d   :  { %v3311_v36 = vunpack.c.l.bf16 %v3203_v4  ;;  %v3241_v48 = vld [vmem:[#allocation7 + $0x174] sm:$0xff] }
 0x82e   :  { %5065 = vrcp.f32 %v2730_v58  ;;  %v3413_v58 = vunpack.c.l.bf16 %v3271_v1  ;;  %v3276_v1 = vunpack.c.h.bf16 %v3179_v54 }
 0x839   :  { %v5064_v31 = vpop.eup %5063 }
 0x83a   :  { %v2734_v17 = vmul.f32 %v5064_v31, %v2733_v15  ;;  %v3267_v15 = vld [vmem:[#allocation7 + $0x210] sm:$0xff]  ;;  %v3315_v31 = vunpack.c.h.bf16 %v3205_v2  ;;  %v3368_v2 = vunpack.c.l.bf16 %v3241_v48 }
 0x83b   :  { %v5066_v59 = vpop.eup %5065  ;;  %v3407_v39 = vunpack.c.l.bf16 %v3267_v15 }
 0x83c   :  { %v2735_v51 = vadd.f32 %v2734_v17, %v7412_v44  ;;  %v2737_v38 = vsub.f32 1.0, %v5066_v59  ;;  %v2739_v32 = vmul.f32 %v5066_v59, %v6919_v35  ;;  %v2802_v35 = vunpack.c.h.bf16 %v2749_v13 }
 0x83d   :  { %v3411_v17 = vunpack.c.h.bf16 %v3269_v52  ;;  %v3410_v44 = vunpack.c.l.bf16 %v3269_v52  ;;  %v3312_v59 = vunpack.c.h.bf16 %v3203_v4 }
 0x83e   :  { %5067 = vtanh.f32 %v2735_v51  ;;  %v3265_v51 = vld [vmem:[#allocation7 + $0x204] sm:$0xff] }
 0x84b   :  { %v5068_v42 = vpop.eup %5067 }
 0x84c   :  { %v2738_v8 = vmul.f32 %v5068_v42, %v2737_v38  ;;  %v3408_v38 = vunpack.c.h.bf16 %v3267_v15  ;;  %v3199_v42 = vld [vmem:[#allocation7 + $0x78] sm:$0xff]  ;;  %v3233_v15 = vld [vmem:[#allocation7 + $0x144] sm:$0xff] }
 0x84e   :  { %v2740_v28 = vadd.f32 %v2739_v32, %v2738_v8  ;;  %v3263_v8 = vld [vmem:[#allocation7 + $0x1f8] sm:$0xff]  ;;  %v3309_v32 = vunpack.c.h.bf16 %v3201_v9 }
 0x84f   :  { %v3402_v20 = vunpack.c.h.bf16 %v3263_v8  ;;  %v3401_v13 = vunpack.c.l.bf16 %v3263_v8 }
 0x850   :  { %2926 = vmatmul.mubr.f32.vlgmr.msra.gmra.mxu1 %v2740_v28  ;;  %4877 = vmatmul.mubr.f32.vlgmr.msra.gmra.mxu0 %v2740_v28  ;;  %v3404_v28 = vunpack.c.l.bf16 %v3265_v51 }
 0x851   :  { %3037 = vmatpush1.msra.mxu1 %v2810_v7  ;;  %4880 = vmatpush3.msra.mxu0 %v2812_v45  ;;  %v3405_v7 = vunpack.c.h.bf16 %v3265_v51  ;;  %v3308_v45 = vunpack.c.l.bf16 %v3201_v9  ;;  %v3231_v51 = vld [vmem:[#allocation7 + $0x138] sm:$0xff] }
 0x852   :  { %3038 = vmatprep.subr.mxu1 %v2808_v23  ;;  %4881 = vmatprep.subr.mxu0 %v7272_v12  ;;  %v3306_v23 = vunpack.c.h.bf16 %v3199_v42 }
 0x853   :  { %3039 = vmatpush1.msra.mxu1 %v2807_v46  ;;  %4882 = vmatpush3.msra.mxu0 %v2809_v55  ;;  %v3305_v46 = vunpack.c.l.bf16 %v3199_v42  ;;  %v3195_v55 = vld [vmem:[#allocation7 + $0x60] sm:$0xff]  ;;  %v3354_v42 = vunpack.c.h.bf16 %v3231_v51 }
 0x854   :  { %3040 = vmatprep.subr.mxu1 %v2805_v18  ;;  %4883 = vmatprep.subr.mxu0 %v7272_v12  ;;  %v3303_v18 = vunpack.c.h.bf16 %v3197_v47  ;;  %v3300_v14 = vunpack.c.h.bf16 %v3195_v55 }
 0x855   :  { %3041 = vmatpush1.msra.mxu1 %v2804_v63  ;;  %4884 = vmatpush3.msra.mxu0 %v2806_v25  ;;  %v3302_v63 = vunpack.c.l.bf16 %v3197_v47  ;;  %v3193_v25 = vld [vmem:[#allocation7 + $0x54] sm:$0xff] }
 0x856   :  { %3042 = vmatprep.subr.mxu1 %v2802_v35  ;;  %4885 = vmatprep.subr.mxu0 %v7272_v12  ;;  %v3299_v35 = vunpack.c.l.bf16 %v3195_v55  ;;  %v3253_v55 = vld [vmem:[#allocation7 + $0x1bc] sm:$0xff] }
 0x857   :  { %3043 = vmatpush1.msra.mxu1 %v2801_v19  ;;  %4886 = vmatpush3.msra.mxu0 %v2803_v62  ;;  %v3297_v19 = vunpack.c.h.bf16 %v3193_v25  ;;  %v3296_v62 = vunpack.c.l.bf16 %v3193_v25 }
 0x858   :  { %3044 = vmatprep.subr.mxu1 %v2799_v41  ;;  %4887 = vmatprep.subr.mxu0 %v7272_v12  ;;  %v3294_v41 = vunpack.c.h.bf16 %v3191_v33 }
 0x859   :  { %3045 = vmatpush1.msra.mxu1 %v2798_v22  ;;  %4888 = vmatpush3.msra.mxu0 %v2800_v60  ;;  %v3293_v22 = vunpack.c.l.bf16 %v3191_v33  ;;  %v3187_v60 = vld [vmem:[#allocation7 + $0x30] sm:$0xff] }
 0x85a   :  { %3046 = vmatprep.subr.mxu1 %v2796_v21  ;;  %4889 = vmatprep.subr.mxu0 %v7272_v12  ;;  %v3290_v21 = vunpack.c.l.bf16 %v3189_v53  ;;  %v3386_v53 = vunpack.c.l.bf16 %v3253_v55 }
 0x85b   :  { %3047 = vmatpush1.msra.mxu1 %v2795_v43  ;;  %4890 = vmatpush3.msra.mxu0 %v2797_v50  ;;  %v3288_v43 = vunpack.c.h.bf16 %v3187_v60  ;;  %v3287_v50 = vunpack.c.l.bf16 %v3187_v60 }
 0x85c   :  { %3048 = vmatprep.subr.mxu1 %v2793_v0  ;;  %4891 = vmatprep.subr.mxu0 %v7272_v12  ;;  %v3285_v0 = vunpack.c.h.bf16 %v3185_v16 }
 0x85d   :  { %3049 = vmatpush1.msra.mxu1 %v2792_v27  ;;  %4892 = vmatpush3.msra.mxu0 %v2794_v30  ;;  %v3284_v27 = vunpack.c.l.bf16 %v3185_v16  ;;  %v3181_v30 = vld [vmem:[#allocation7 + $0xc] sm:$0xff] }
 0x85e   :  { %3050 = vmatprep.subr.mxu1 %v2790_v57  ;;  %4893 = vmatprep.subr.mxu0 %v7272_v12  ;;  %v3282_v57 = vunpack.c.h.bf16 %v3183_v5  ;;  %v3279_v56 = vunpack.c.h.bf16 %v3181_v30 }
 0x85f   :  { %3051 = vmatpush1.msra.mxu1 %v2789_v3  ;;  %3084 = vmatprep.mubr.f32.mxu1 %v7272_v12  ;;  %v3281_v3 = vunpack.c.l.bf16 %v3183_v5 }
 0x860   :  { %4894 = vmatpush3.msra.mxu0 %v2791_v11  ;;  %4895 = vmatprep.mubr.msk.f32.mxu0 %vm5190_vm1, %v7272_v12  ;;  %v3278_v11 = vunpack.c.l.bf16 %v3181_v30 }
 0x861   :  { %4020 = vmatmul.mubr.msk.f32.vlgmr.msra.gmra.mxu1 %vm3017_vm13, %v7413_v24  ;;  %4896 = vmatmul.mubr.msk.f32.vlgmr.msra.gmra.mxu0 %vm3017_vm13, %v7413_v24 }
 0x862   :  { %3431 = vmatprep.subr.mxu1 %v3321_v29  ;;  %3502 = vmatprep.subr.mxu0 %v3417_v49  ;;  %v3275_v29 = vunpack.c.l.bf16 %v3179_v54  ;;  %v3239_v49 = vld [vmem:[#allocation7 + $0x168] sm:$0xff] }
 0x863   :  { %3432 = vmatpush1.msra.mxu1 %v3320_v40  ;;  %3503 = vmatpush1.msra.mxu0 %v3416_v37  ;;  %v3369_v40 = vunpack.c.h.bf16 %v3241_v48  ;;  %v3237_v37 = vld [vmem:[#allocation7 + $0x15c] sm:$0xff]  ;;  %v3366_v52 = vunpack.c.h.bf16 %v3239_v49  ;;  %v3217_v54 = vld [vmem:[#allocation7 + $0xe4] sm:$0xff] }
 0x864   :  { %3433 = vmatprep.subr.mxu1 %v3318_v10  ;;  %3504 = vmatprep.subr.mxu0 %v3414_v6  ;;  %v3365_v10 = vunpack.c.l.bf16 %v3239_v49  ;;  %v3235_v6 = vld [vmem:[#allocation7 + $0x150] sm:$0xff]  ;;  %v3363_v24 = vunpack.c.h.bf16 %v3237_v37  ;;  %v3332_v48 = vunpack.c.l.bf16 %v3217_v54  ;;  %v3215_v49 = vld [vmem:[#allocation7 + $0xd8] sm:$0xff] }
 0x865   :  { %3434 = vmatpush1.msra.mxu1 %v3317_v26  ;;  %3505 = vmatpush1.msra.mxu0 %v3413_v58  ;;  %v3362_v26 = vunpack.c.l.bf16 %v3237_v37  ;;  %v3360_v4 = vunpack.c.h.bf16 %v3235_v6  ;;  %v3359_v58 = vunpack.c.l.bf16 %v3235_v6  ;;  %v3213_v6 = vld [vmem:[#allocation7 + $0xcc] sm:$0xff] }
 0x866   :  { %3435 = vmatprep.subr.mxu1 %v3315_v31  ;;  %3506 = vmatprep.subr.mxu0 %v3411_v17  ;;  %v3261_v31 = vld [vmem:[#allocation7 + $0x1ec] sm:$0xff]  ;;  %v3356_v17 = vunpack.c.l.bf16 %v3233_v15 }
 0x867   :  { %3436 = vmatpush1.msra.mxu1 %v3314_v34  ;;  %3507 = vmatpush1.msra.mxu0 %v3410_v44  ;;  %v3357_v34 = vunpack.c.h.bf16 %v3233_v15  ;;  %v3398_v9 = vunpack.c.l.bf16 %v3261_v31  ;;  %v3399_v44 = vunpack.c.h.bf16 %v3261_v31  ;;  %v3326_v15 = vunpack.c.l.bf16 %v3213_v6 }
 0x868   :  { %3437 = vmatprep.subr.mxu1 %v3312_v59  ;;  %3508 = vmatprep.subr.mxu0 %v3408_v38  ;;  %v3259_v59 = vld [vmem:[#allocation7 + $0x1e0] sm:$0xff]  ;;  %v3229_v38 = vld [vmem:[#allocation7 + $0x12c] sm:$0xff]  ;;  %v3327_v31 = vunpack.c.h.bf16 %v3213_v6  ;;  %v3226_v6 = vld [vmem:[#allocation7 + $0x11c] ss:$216 sps:$4 sm:$0xff]  }
 0x869   :  { %3438 = vmatpush1.msra.mxu1 %v3311_v36  ;;  %3509 = vmatpush1.msra.mxu0 %v3407_v39  ;;  %v3353_v36 = vunpack.c.l.bf16 %v3231_v51  ;;  %v3395_v39 = vunpack.c.l.bf16 %v3259_v59  ;;  %v3396_v8 = vunpack.c.h.bf16 %v3259_v59  ;;  %v3350_v47 = vunpack.c.l.bf16 %v3229_v38 }
 0x86a   :  { %3439 = vmatprep.subr.mxu1 %v3309_v32  ;;  %3510 = vmatprep.subr.mxu0 %v3405_v7  ;;  %v3257_v32 = vld [vmem:[#allocation7 + $0x1d4] sm:$0xff]  ;;  %v3227_v7 = vld [vmem:[#allocation7 + $0x120] sm:$0xff] }
 0x86b   :  { %3440 = vmatpush1.msra.mxu1 %v3308_v45  ;;  %3511 = vmatpush1.msra.mxu0 %v3404_v28  ;;  %v3255_v45 = vld [vmem:[#allocation7 + $0x1c8] sm:$0xff]  ;;  %v3351_v28 = vunpack.c.h.bf16 %v3229_v38  ;;  %v7414_v38 = vld [vmem:[#allocation59_spill] sm:$0xff] }
 0x86c   :  { %3441 = vmatprep.subr.mxu1 %v3306_v23  ;;  %3512 = vmatprep.subr.mxu0 %v3402_v20  ;;  %v3392_v23 = vunpack.c.l.bf16 %v3257_v32  ;;  %v3393_v20 = vunpack.c.h.bf16 %v3257_v32  ;;  %v3389_v25 = vunpack.c.l.bf16 %v3255_v45 }
 0x86d   :  { %3442 = vmatpush1.msra.mxu1 %v3305_v46  ;;  %3513 = vmatpush1.msra.mxu0 %v3401_v13  ;;  %v3225_v46 = vld [vmem:[#allocation7 + $0x114] sm:$0xff]  ;;  %v3348_v13 = vunpack.c.h.bf16 %v3227_v7 }
 0x86e   :  { %3443 = vmatprep.subr.mxu1 %v3303_v18  ;;  %3566 = vmatprep.mubr.f32.mxu0 %v7272_v12  ;;  %v3390_v18 = vunpack.c.h.bf16 %v3255_v45  ;;  %v3345_v33 = vunpack.c.h.bf16 %v3225_v46 }
 0x86f   :  { %3444 = vmatpush1.msra.mxu1 %v3302_v63  ;;  %3514 = vmatprep.subr.mxu0 %v3399_v44  ;;  %v3347_v63 = vunpack.c.l.bf16 %v3227_v7 }
 0x870   :  { %3445 = vmatprep.subr.mxu1 %v3300_v14  ;;  %3515 = vmatpush1.msra.mxu0 %v3398_v9  ;;  %v3223_v14 = vld [vmem:[#allocation7 + $0x108] sm:$0xff] }
 0x871   :  { %3446 = vmatpush1.msra.mxu1 %v3299_v35  ;;  %3516 = vmatprep.subr.mxu0 %v3396_v8  ;;  %v3251_v35 = vld [vmem:[#allocation7 + $0x1b0] sm:$0xff]  ;;  %v3342_v60 = vunpack.c.h.bf16 %v3223_v14 }
 0x872   :  { %3447 = vmatprep.subr.mxu1 %v3297_v19  ;;  %3517 = vmatpush1.msra.mxu0 %v3395_v39  ;;  %v3387_v19 = vunpack.c.h.bf16 %v3253_v55  ;;  %v3383_v16 = vunpack.c.l.bf16 %v3251_v35  ;;  %v6975_v39 = vld [vmem:[%s7055_s7 + $0x10] sm:$0xff]  ;;  %v3210_v55 = vld [vmem:[#allocation7 + $0xb0] ss:$12 sps:$4 sm:$0xff]  }
 0x873   :  { %3448 = vmatpush1.msra.mxu1 %v3296_v62  ;;  %3518 = vmatprep.subr.mxu0 %v3393_v20  ;;  %v3344_v62 = vunpack.c.l.bf16 %v3225_v46  ;;  %v6987_v20 = vld [vmem:[%s7055_s7 + $0x8] sm:$0xff] }
 0x874   :  { %3449 = vmatprep.subr.mxu1 %v3294_v41  ;;  %3519 = vmatpush1.msra.mxu0 %v3392_v23  ;;  %v3221_v41 = vld [vmem:[#allocation7 + $0xfc] sm:$0xff] }
 0x875   :  { %3450 = vmatpush1.msra.mxu1 %v3293_v22  ;;  %v3249_v22 = vld [vmem:[#allocation7 + $0x1a4] sm:$0xff]  ;;  %3520 = vmatprep.subr.mxu0 %v3390_v18 }
 0x876   :  { %3451 = vmatprep.subr.mxu1 %v3291_v61  ;;  %v3384_v61 = vunpack.c.h.bf16 %v3251_v35  ;;  %3521 = vmatpush1.msra.mxu0 %v3389_v25  ;;  %v3381_v5 = vunpack.c.h.bf16 %v3249_v22  ;;  %v3238_v35 = vld [vmem:[#allocation7 + $0x164] ss:$216 sps:$4 sm:$0xff]  }
 0x877   :  { %3452 = vmatpush1.msra.mxu1 %v3290_v21  ;;  %v3341_v21 = vunpack.c.l.bf16 %v3223_v14  ;;  %3522 = vmatprep.subr.mxu0 %v3387_v19  ;;  %v3322_v14 = vunpack.c.h.bf16 %v3210_v55 }
 0x878   :  { %3453 = vmatprep.subr.mxu1 %v3288_v43  ;;  %v3219_v43 = vld [vmem:[#allocation7 + $0xf0] sm:$0xff]  ;;  %3523 = vmatpush1.msra.mxu0 %v3386_v53 }
 0x879   :  { %3454 = vmatpush1.msra.mxu1 %v3287_v50  ;;  %v3339_v50 = vunpack.c.h.bf16 %v3221_v41  ;;  %3524 = vmatprep.subr.mxu0 %v3384_v61  ;;  %v3336_v30 = vunpack.c.h.bf16 %v3219_v43  ;;  %v3364_v61 = vunpack.c.l.bf16 %v3238_v35 }
 0x87a   :  { %3455 = vmatprep.subr.mxu1 %v3285_v0  ;;  %v3338_v0 = vunpack.c.l.bf16 %v3221_v41  ;;  %3525 = vmatpush1.msra.mxu0 %v3383_v16  ;;  %v3206_v41 = vld [vmem:[#allocation7 + $0xa4] ss:$180 sps:$4 sm:$0xff]   ;;  %v3418_v16 = vunpack.c.h.bf16 %v3238_v35  ;;  %v3214_v35 = vld [vmem:[#allocation7 + $0xd4] ss:$216 sps:$4 sm:$0xff]  }
 0x87b   :  { %3456 = vmatpush1.msra.mxu1 %v3284_v27  ;;  %v3380_v27 = vunpack.c.l.bf16 %v3249_v22  ;;  %3526 = vmatprep.subr.mxu0 %v3381_v5  ;;  %v3319_v22 = vunpack.c.l.bf16 %v3210_v55 }
 0x87c   :  { %3457 = vmatprep.subr.mxu1 %v3282_v57  ;;  %v3335_v57 = vunpack.c.l.bf16 %v3219_v43  ;;  %v3316_v43 = vunpack.c.l.bf16 %v3206_v41 }
 0x87d   :  { %3458 = vmatpush1.msra.mxu1 %v3281_v3  ;;  %3527 = vmatpush1.msra.mxu0 %v3380_v27  ;;  %v3247_v3 = vld [vmem:[#allocation7 + $0x198] sm:$0xff]  ;;  %v3202_v27 = vld [vmem:[#allocation7 + $0x8c] ss:$180 sps:$4 sm:$0xff]  }
 0x87e   :  { %3459 = vmatprep.subr.mxu1 %v3279_v56  ;;  %v3377_v56 = vunpack.c.l.bf16 %v3247_v3 }
 0x87f   :  { %3460 = vmatpush1.msra.mxu1 %v3278_v11  ;;  %v3378_v11 = vunpack.c.h.bf16 %v3247_v3 }
 0x880   :  { %3461 = vmatprep.subr.mxu1 %v3276_v1  ;;  %v3333_v1 = vunpack.c.h.bf16 %v3217_v54  ;;  %v3268_v54 = vld [vmem:[#allocation7 + $0x80] ss:$408 sps:$4 sm:$0xff]  }
 0x881   :  { %3462 = vmatpush1.msra.mxu1 %v3275_v29  ;;  %v3245_v29 = vld [vmem:[#allocation7 + $0x18c] sm:$0xff]  ;;  %3528 = vmatprep.subr.mxu0 %v3378_v11  ;;  %v3310_v11 = vunpack.c.l.bf16 %v3202_v27 }
 0x882   :  { %3463 = vmatprep.subr.mxu1 %v3369_v40  ;;  %v3243_v40 = vld [vmem:[#allocation7 + $0x180] sm:$0xff]  ;;  %v3375_v37 = vunpack.c.h.bf16 %v3245_v29  ;;  %3529 = vmatpush1.msra.mxu0 %v3377_v56 }
 0x883   :  { %3464 = vmatpush2.msra.mxu1 %v3368_v2  ;;  %v3374_v2 = vunpack.c.l.bf16 %v3245_v29  ;;  %v3198_v29 = vld [vmem:[#allocation7 + $0x74] ss:$180 sps:$4 sm:$0xff]  }
 0x884   :  { %3465 = vmatprep.subr.mxu1 %v3366_v52  ;;  %v3329_v52 = vunpack.c.l.bf16 %v3215_v49  ;;  %3530 = vmatprep.subr.mxu0 %v3375_v37  ;;  %v3264_v37 = vld [vmem:[#allocation7 + $0x68] ss:$408 sps:$4 sm:$0xff]  }
 0x885   :  { %3466 = vmatpush2.msra.mxu1 %v3365_v10  ;;  %v3330_v10 = vunpack.c.h.bf16 %v3215_v49  ;;  %3531 = vmatpush1.msra.mxu0 %v3374_v2  ;;  %v3409_v49 = vunpack.c.h.bf16 %v3268_v54 }
 0x886   :  { %3467 = vmatprep.subr.mxu1 %v3363_v24  ;;  %v3242_v24 = vld [vmem:[#allocation7 + $0x170] ss:$12 sps:$4 sm:$0xff]  }
 0x887   :  { %3468 = vmatpush2.msra.mxu1 %v3362_v26  ;;  %v3211_v26 = vld [vmem:[#allocation7 + $0xc0] sm:$0xff]  ;;  %v3367_v53 = vunpack.c.l.bf16 %v3242_v24 }
 0x888   :  { %3469 = vmatprep.subr.mxu1 %v3360_v4  ;;  %v3371_v4 = vunpack.c.l.bf16 %v3243_v40  ;;  %v3323_v9 = vunpack.c.l.bf16 %v3211_v26 }
 0x889   :  { %3470 = vmatpush2.msra.mxu1 %v3359_v58  ;;  %v3372_v58 = vunpack.c.h.bf16 %v3243_v40  ;;  %v3307_v40 = vunpack.c.l.bf16 %v3268_v54 }
 0x88a   :  { %3471 = vmatprep.subr.mxu1 %v3357_v34  ;;  %v3324_v34 = vunpack.c.h.bf16 %v3211_v26  ;;  %v3194_v26 = vld [vmem:[#allocation7 + $0x5c] ss:$180 sps:$4 sm:$0xff]  }
 0x88b   :  { %3472 = vmatpush2.msra.mxu1 %v3356_v17  ;;  %v3370_v17 = vunpack.c.h.bf16 %v3242_v24  ;;  %3532 = vmatprep.subr.mxu0 %v3372_v58  ;;  %v3349_v24 = vunpack.c.h.bf16 %v3198_v29  ;;  %v3301_v58 = vunpack.c.l.bf16 %v3264_v37 }
 0x88c   :  { %3473 = vmatprep.subr.mxu1 %v3354_v42  ;;  %3533 = vmatpush1.msra.mxu0 %v3371_v4  ;;  %v3403_v4 = vunpack.c.h.bf16 %v3264_v37  ;;  %v4159_v37 = vld [vmem:[#allocation9 + $0x68] sm:$0xff]  }
 0x88d   :  { %3474 = vmatpush2.msra.mxu1 %v3353_v36  ;;  %4380 = vmatprep.subr.mxu0 %v3370_v17  ;;  %v3163_v36 = vsub.s32 3, %v7414_v38  ;;  %v3400_v17 = vunpack.c.h.bf16 %v3226_v6 }
 0x88e   :  { %3475 = vmatprep.subr.mxu1 %v3351_v28 }
 0x88f   :  { %3476 = vmatpush2.msra.mxu1 %v3350_v47  ;;  %v3172_v8 = vrot.slane %v6975_v39, %v3163_v36  ;;  %v6981_v47 = vld [vmem:[%s7055_s7] sm:$0xff]  ;;  %v3168_v46 = vrot.slane %v6987_v20, %v3163_v36 }
 0x890   :  { %3477 = vmatprep.subr.mxu1 %v3348_v13  ;;  %v3164_v28 = vrot.slane %v6981_v47, %v3163_v36 }
 0x891   :  { %3478 = vmatpush2.msra.mxu1 %v3347_v63 }
 0x892   :  { %3479 = vmatprep.subr.mxu1 %v3345_v33 }
 0x893   :  { %3480 = vmatpush2.msra.mxu1 %v3344_v62 }
 0x894   :  { %3481 = vmatprep.subr.mxu1 %v3342_v60 }
 0x895   :  { %3482 = vmatpush2.msra.mxu1 %v3341_v21  ;;  %v3272_v21 = vld [vmem:[#allocation7 + $0x98] ss:$408 sps:$4 sm:$0xff]  }
 0x896   :  { %3483 = vmatprep.subr.mxu1 %v3339_v50  ;;  %v3234_v50 = vld [vmem:[#allocation7 + $0x14c] ss:$216 sps:$4 sm:$0xff]  }
 0x897   :  { %3484 = vmatpush2.msra.mxu1 %v3338_v0  ;;  %v3361_v0 = vunpack.c.h.bf16 %v3206_v41  ;;  %v3358_v3 = vunpack.c.l.bf16 %v3234_v50  ;;  %v3412_v56 = vunpack.c.h.bf16 %v3234_v50  ;;  %v3246_v50 = vld [vmem:[#allocation7 + $0x188] ss:$12 sps:$4 sm:$0xff]  }
 0x898   :  { %3485 = vmatprep.subr.mxu1 %v3336_v30  ;;  %v3415_v30 = vunpack.c.h.bf16 %v3272_v21 }
 0x899   :  { %3486 = vmatpush2.msra.mxu1 %v3335_v57  ;;  %v3313_v57 = vunpack.c.l.bf16 %v3272_v21  ;;  %v3382_v21 = vunpack.c.h.bf16 %v3214_v35 }
 0x89a   :  { %3487 = vmatprep.subr.mxu1 %v3333_v1  ;;  %v3355_v1 = vunpack.c.h.bf16 %v3202_v27 }
 0x89b   :  { %3488 = vmatpush2.msra.mxu1 %v3332_v48  ;;  %v3230_v48 = vld [vmem:[#allocation7 + $0x134] ss:$216 sps:$4 sm:$0xff]  }
 0x89c   :  { %3489 = vmatprep.subr.mxu1 %v3330_v10  ;;  %v3352_v2 = vunpack.c.l.bf16 %v3230_v48  ;;  %v3304_v10 = vunpack.c.l.bf16 %v3198_v29  ;;  %v4152_v29 = vld [vmem:[#allocation9 + $0x30] sm:$0xff]  }
 0x89d   :  { %3490 = vmatpush2.msra.mxu1 %v3329_v52  ;;  %v3406_v52 = vunpack.c.h.bf16 %v3230_v48  ;;  %v4160_v48 = vld [vmem:[#allocation9 + $0x70] sm:$0xff]  }
 0x89e   :  { %3491 = vmatprep.subr.mxu1 %v3327_v31  ;;  %v3260_v31 = vld [vmem:[#allocation7 + $0x50] ss:$408 sps:$4 sm:$0xff]  }
 0x89f   :  { %3492 = vmatpush2.msra.mxu1 %v3326_v15  ;;  %v3346_v15 = vunpack.c.l.bf16 %v3226_v6  ;;  %v3295_v36 = vunpack.c.l.bf16 %v3260_v31 }
 0x8a0   :  { %3493 = vmatprep.subr.mxu1 %v3324_v34  ;;  %v3298_v34 = vunpack.c.l.bf16 %v3194_v26 }
 0x8a1   :  { %3494 = vmatpush2.msra.mxu1 %v3323_v9  ;;  %v3222_v9 = vld [vmem:[#allocation7 + $0x104] ss:$216 sps:$4 sm:$0xff]  }
 0x8a2   :  { %4898 = vmatprep.subr.mxu1 %v7272_v12 }
 0x910   :  { %v2998_v44 = vpop.f32.mrf.mxu0  ;;  %v2927_v59 = vpop.f32.mrf.mxu1 }
 0x912   :  { %v4878_v51 = vpop.f32.mrf.mxu0  ;;  %v2929_v42 = vpop.f32.mrf.mxu1 }
 0x913   :  { %v3190_v51 = vld [vmem:[#allocation7 + $0x44] ss:$180 sps:$4 sm:$0xff]  }
 0x921   :  { %v3086_v32 = vpop.f32.mrf.mxu1  ;;  %v3157_v7 = vpop.f32.mrf.mxu0 }
 0x922   :  { %v3087_v45 = vadd.f32 %v3086_v32, %v2927_v59  ;;  %v3158_v23 = vadd.f32 %v3157_v7, %v2998_v44  ;;  %v3343_v44 = vunpack.c.h.bf16 %v3194_v26  ;;  %v3397_v59 = vunpack.c.h.bf16 %v3260_v31 }
 0x923   :  { %v3088_v13 = vpop.f32.mrf.mxu1  ;;  %v4897_v18 = vpop.f32.mrf.mxu0  ;;  %v3394_v32 = vunpack.c.h.bf16 %v3222_v9  ;;  %v3292_v7 = vunpack.c.l.bf16 %v3190_v51  ;;  %v4100_v26 = vunpack.c.l.bf16 %v4159_v37 }
 0x924   :  { %v6990_v63 = vadd.f32 %v3172_v8, %v3158_v23  ;;  %v3089_v25 = vadd.f32 %v3088_v13, %v2929_v42  ;;  %v6992_v33 = vadd.f32 %v3164_v28, %v3087_v45  ;;  %v3340_v42 = vunpack.c.l.bf16 %v3222_v9  ;;  %v3256_v8 = vld [vmem:[#allocation7 + $0x38] ss:$408 sps:$4 sm:$0xff]   ;;  %v3218_v45 = vld [vmem:[#allocation7 + $0xec] ss:$216 sps:$4 sm:$0xff]  }
 0x925   :  { %v3337_v28 = vunpack.c.h.bf16 %v3190_v51  ;;  %v3186_v23 = vld [vmem:[#allocation7 + $0x2c] ss:$180 sps:$4 sm:$0xff]   ;;  %v3289_v55 = vunpack.c.l.bf16 %v3256_v8  ;;  %v3334_v13 = vunpack.c.l.bf16 %v3218_v45 }
 0x926   :  { %v3178_v19 = vmax.f32 %v6990_v63, 0.0  ;;  %v3174_v62 = vadd.f32 %v3168_v46, %v3089_v25  ;;  %v3176_v5 = vmax.f32 %v6992_v33, 0.0  ;;  %v3391_v46 = vunpack.c.h.bf16 %v3256_v8  ;;  %v3252_v18 = vld [vmem:[#allocation7 + $0x20] ss:$408 sps:$4 sm:$0xff]   ;;  %v4148_v8 = vld [vmem:[#allocation9 + $0x10] sm:$0xff]  }
 0x927   :  { %v3388_v25 = vunpack.c.h.bf16 %v3218_v45  ;;  %v3385_v41 = vunpack.c.h.bf16 %v3252_v18  ;;  %v4104_v33 = vunpack.c.l.bf16 %v4160_v48  ;;  %v4056_v45 = vunpack.c.l.bf16 %v4148_v8 }
 0x928   :  { %v3177_v60 = vmax.f32 %v3174_v62, 0.0  ;;  %3567 = vmatmul.mubr.f32.vlgmr.msra.gmra.mxu0 %v3178_v19  ;;  %v3331_v62 = vunpack.c.h.bf16 %v3186_v23 }
 0x929   :  { %4381 = vmatpush3.msra.mxu0 %v3322_v14  ;;  %v3286_v14 = vunpack.c.l.bf16 %v3186_v23  ;;  %v4147_v23 = vld [vmem:[#allocation9 + $0x8] sm:$0xff]  }
 0x92a   :  { %4382 = vmatprep.subr.mxu0 %v3367_v53  ;;  %3495 = vmatprep.mubr.f32.mxu1 %v3177_v60  ;;  %v3182_v53 = vld [vmem:[#allocation7 + $0x14] ss:$180 sps:$4 sm:$0xff]  }
 0x92b   :  { %4383 = vmatpush3.msra.mxu0 %v3319_v22  ;;  %3637 = vmatprep.mubr.f32.mxu0 %v3177_v60  ;;  %v3283_v22 = vunpack.c.l.bf16 %v3252_v18  ;;  %v3328_v60 = vunpack.c.l.bf16 %v3214_v35  ;;  %v4052_v35 = vunpack.c.l.bf16 %v4147_v23 }
 0x92c   :  { %3496 = vmatmul.mubr.f32.vlgmr.msra.gmra.mxu1 %v3176_v5  ;;  %4384 = vmatprep.subr.mxu0 %v3364_v61  ;;  %v3248_v61 = vld [vmem:[#allocation7 + $0x8] ss:$408 sps:$4 sm:$0xff]  }
 0x92d   :  { %4899 = vmatpush3.msra.mxu1 %v3418_v16  ;;  %4385 = vmatpush3.msra.mxu0 %v3316_v43  ;;  %v3280_v16 = vunpack.c.l.bf16 %v3182_v53  ;;  %v3325_v43 = vunpack.c.h.bf16 %v3182_v53  ;;  %v3277_v27 = vunpack.c.l.bf16 %v3248_v61 }
 0x92e   :  { %4900 = vmatprep.subr.mxu1 %v7272_v12  ;;  %4386 = vmatprep.subr.mxu0 %v3361_v0  ;;  %v3379_v0 = vunpack.c.h.bf16 %v3248_v61 }
 0x92f   :  { %4901 = vmatpush3.msra.mxu1 %v3415_v30  ;;  %4387 = vmatpush3.msra.mxu0 %v3313_v57  ;;  %v4161_v30 = vld [vmem:[#allocation9 + $0x78] sm:$0xff]  }
 0x930   :  { %4902 = vmatprep.subr.mxu1 %v7272_v12  ;;  %4388 = vmatprep.subr.mxu0 %v3358_v3  ;;  %v4153_v57 = vld [vmem:[#allocation9 + $0x38] sm:$0xff]   ;;  %v3376_v3 = vunpack.c.h.bf16 %v3246_v50  ;;  %v4109_v54 = vunpack.c.h.bf16 %v4161_v30 }
 0x931   :  { %4903 = vmatpush3.msra.mxu1 %v3412_v56  ;;  %4389 = vmatpush3.msra.mxu0 %v3310_v11  ;;  %v3373_v56 = vunpack.c.l.bf16 %v3246_v50  ;;  %v4077_v11 = vunpack.c.h.bf16 %v4153_v57 }
 0x932   :  { %4904 = vmatprep.subr.mxu1 %v7272_v12  ;;  %4390 = vmatprep.subr.mxu0 %v3355_v1  ;;  %v4108_v1 = vunpack.c.l.bf16 %v4161_v30 }
 0x933   :  { %4905 = vmatpush3.msra.mxu1 %v3409_v49  ;;  %4391 = vmatpush3.msra.mxu0 %v3307_v40  ;;  %v4076_v49 = vunpack.c.l.bf16 %v4153_v57  ;;  %v4105_v40 = vunpack.c.h.bf16 %v4160_v48  ;;  %v4164_v48 = vld [vmem:[#allocation9 + $0x90] sm:$0xff]  }
 0x934   :  { %4906 = vmatprep.subr.mxu1 %v7272_v12  ;;  %4392 = vmatprep.subr.mxu0 %v3352_v2  ;;  %v4073_v2 = vunpack.c.h.bf16 %v4152_v29 }
 0x935   :  { %4907 = vmatpush3.msra.mxu1 %v3406_v52  ;;  %4393 = vmatpush3.msra.mxu0 %v3304_v10  ;;  %v4072_v52 = vunpack.c.l.bf16 %v4152_v29  ;;  %v4101_v10 = vunpack.c.h.bf16 %v4159_v37  ;;  %v4120_v29 = vunpack.c.l.bf16 %v4164_v48 }
 0x936   :  { %4908 = vmatprep.subr.mxu1 %v7272_v12  ;;  %4394 = vmatprep.subr.mxu0 %v3349_v24  ;;  %v4158_v24 = vld [vmem:[#allocation9 + $0x60] sm:$0xff]  }
 0x937   :  { %4909 = vmatpush3.msra.mxu1 %v3403_v4  ;;  %4395 = vmatpush3.msra.mxu0 %v3301_v58  ;;  %v4150_v4 = vld [vmem:[#allocation9 + $0x20] sm:$0xff]   ;;  %v4096_v31 = vunpack.c.l.bf16 %v4158_v24 }
 0x938   :  { %4910 = vmatprep.subr.mxu1 %v7272_v12  ;;  %4396 = vmatprep.subr.mxu0 %v3346_v15  ;;  %v4065_v58 = vunpack.c.h.bf16 %v4150_v4  ;;  %v4157_v15 = vld [vmem:[#allocation9 + $0x58] sm:$0xff]  }
 0x939   :  { %4911 = vmatpush3.msra.mxu1 %v3400_v17  ;;  %4397 = vmatpush3.msra.mxu0 %v3298_v34  ;;  %v4149_v17 = vld [vmem:[#allocation9 + $0x18] sm:$0xff]   ;;  %v4064_v34 = vunpack.c.l.bf16 %v4150_v4  ;;  %v4093_v9 = vunpack.c.h.bf16 %v4157_v15  ;;  %v4092_v51 = vunpack.c.l.bf16 %v4157_v15 }
 0x93a   :  { %4912 = vmatprep.subr.mxu1 %v7272_v12  ;;  %4398 = vmatprep.subr.mxu0 %v3343_v44  ;;  %v4061_v44 = vunpack.c.h.bf16 %v4149_v17 }
 0x93b   :  { %4913 = vmatpush3.msra.mxu1 %v3397_v59  ;;  %4399 = vmatpush3.msra.mxu0 %v3295_v36  ;;  %v4060_v59 = vunpack.c.l.bf16 %v4149_v17  ;;  %v4156_v36 = vld [vmem:[#allocation9 + $0x50] sm:$0xff]  }
 0x93c   :  { %4914 = vmatprep.subr.mxu1 %v7272_v12  ;;  %4400 = vmatprep.subr.mxu0 %v3340_v42  ;;  %v4089_v42 = vunpack.c.h.bf16 %v4156_v36 }
 0x93d   :  { %4915 = vmatpush3.msra.mxu1 %v3394_v32  ;;  %4401 = vmatpush3.msra.mxu0 %v3292_v7  ;;  %v4057_v32 = vunpack.c.h.bf16 %v4148_v8  ;;  %v4088_v7 = vunpack.c.l.bf16 %v4156_v36 }
 0x93e   :  { %4916 = vmatprep.subr.mxu1 %v7272_v12  ;;  %4402 = vmatprep.subr.mxu0 %v3337_v28  ;;  %v4155_v28 = vld [vmem:[#allocation9 + $0x48] sm:$0xff]  }
 0x93f   :  { %4917 = vmatpush3.msra.mxu1 %v3391_v46  ;;  %4403 = vmatpush3.msra.mxu0 %v3289_v55  ;;  %v4154_v46 = vld [vmem:[#allocation9 + $0x40] sm:$0xff]   ;;  %v4085_v55 = vunpack.c.h.bf16 %v4155_v28  ;;  %v4084_v18 = vunpack.c.l.bf16 %v4155_v28 }
 0x940   :  { %4918 = vmatprep.subr.mxu1 %v7272_v12  ;;  %4404 = vmatprep.subr.mxu0 %v3334_v13  ;;  %v4053_v13 = vunpack.c.h.bf16 %v4147_v23  ;;  %v4081_v53 = vunpack.c.h.bf16 %v4154_v46 }
 0x941   :  { %4919 = vmatpush3.msra.mxu1 %v3388_v25  ;;  %4405 = vmatpush3.msra.mxu0 %v3286_v14  ;;  %v4047_v25 = vld [vmem:[#allocation9] sm:$0xff]   ;;  %v4169_v14 = vld [vmem:[#allocation9 + $0xb8] sm:$0xff]  }
 0x942   :  { %4920 = vmatprep.subr.mxu1 %v7272_v12  ;;  %4406 = vmatprep.subr.mxu0 %v3331_v62  ;;  %v4141_v62 = vunpack.c.h.bf16 %v4169_v14 }
 0x943   :  { %4921 = vmatpush3.msra.mxu1 %v3385_v41  ;;  %4407 = vmatpush3.msra.mxu0 %v3283_v22  ;;  %v4140_v41 = vunpack.c.l.bf16 %v4169_v14  ;;  %v4168_v22 = vld [vmem:[#allocation9 + $0xb0] sm:$0xff]  }
 0x944   :  { %4922 = vmatprep.subr.mxu1 %v7272_v12  ;;  %4408 = vmatprep.subr.mxu0 %v3328_v60  ;;  %v4049_v60 = vunpack.c.h.bf16 %v4047_v25  ;;  %v4137_v61 = vunpack.c.h.bf16 %v4168_v22  ;;  %v4136_v50 = vunpack.c.l.bf16 %v4168_v22 }
 0x945   :  { %4923 = vmatpush3.msra.mxu1 %v3382_v21  ;;  %4409 = vmatpush3.msra.mxu0 %v3280_v16  ;;  %v4080_v21 = vunpack.c.l.bf16 %v4154_v46  ;;  %v4167_v16 = vld [vmem:[#allocation9 + $0xa8] sm:$0xff]  }
 0x946   :  { %4924 = vmatprep.subr.mxu1 %v7272_v12  ;;  %4410 = vmatprep.subr.mxu0 %v3325_v43  ;;  %v4048_v43 = vunpack.c.l.bf16 %v4047_v25  ;;  %v4132_v30 = vunpack.c.l.bf16 %v4167_v16 }
 0x947   :  { %4925 = vmatpush3.msra.mxu1 %v3379_v0  ;;  %4411 = vmatpush3.msra.mxu0 %v3277_v27  ;;  %v4133_v0 = vunpack.c.h.bf16 %v4167_v16  ;;  %v4166_v27 = vld [vmem:[#allocation9 + $0xa0] sm:$0xff]  }
 0x948   :  { %4926 = vmatprep.subr.mxu1 %v7272_v12  ;;  %3638 = vmatmul.mubr.f32.vlgmr.msra.gmra.mxu0 %v3176_v5  ;;  %v4151_v5 = vld [vmem:[#allocation9 + $0x28] sm:$0xff]   ;;  %v4129_v57 = vunpack.c.h.bf16 %v4166_v27 }
 0x949   :  { %4927 = vmatpush3.msra.mxu1 %v3376_v3  ;;  %4930 = vmatprep.mubr.msk.f32.mxu1 %vm5190_vm1, %v7272_v12  ;;  %v4069_v6 = vunpack.c.h.bf16 %v4151_v5  ;;  %v4068_v63 = vunpack.c.l.bf16 %v4151_v5  ;;  %v4165_v3 = vld [vmem:[#allocation9 + $0x98] sm:$0xff]  }
 0x94a   :  { %4928 = vmatprep.subr.mxu1 %v7272_v12  ;;  %4432 = vmatprep.subr.mxu0 %v4109_v54  ;;  %v4128_v54 = vunpack.c.l.bf16 %v4166_v27 }
 0x94b   :  { %4929 = vmatpush3.msra.mxu1 %v3373_v56  ;;  %4433 = vmatpush3.msra.mxu0 %v4077_v11  ;;  %v4125_v56 = vunpack.c.h.bf16 %v4165_v3  ;;  %v4124_v11 = vunpack.c.l.bf16 %v4165_v3 }
 0x94c   :  { %4931 = vmatmul.mubr.f32.vlgmr.msra.gmra.mxu1 %v3178_v19  ;;  %4434 = vmatprep.subr.mxu0 %v4108_v1  ;;  %v4097_v19 = vunpack.c.h.bf16 %v4158_v24  ;;  %v4121_v1 = vunpack.c.h.bf16 %v4164_v48 }
 0x94d   :  { %4435 = vmatpush3.msra.mxu0 %v4076_v49  ;;  %4933 = vmatprep.subr.mxu1 %v7272_v12  ;;  %v4163_v49 = vld [vmem:[#allocation9 + $0x88] sm:$0xff]  }
 0x94e   :  { %4436 = vmatprep.subr.mxu0 %v4105_v40  ;;  %4965 = vmatprep.mubr.msk.f32.mxu1 %vm5190_vm1, %v7272_v12  ;;  %v4162_v40 = vld [vmem:[#allocation9 + $0x80] sm:$0xff]   ;;  %v4116_v37 = vunpack.c.l.bf16 %v4163_v49 }
 0x94f   :  { %4437 = vmatpush3.msra.mxu0 %v4073_v2  ;;  %4934 = vmatpush3.msra.mxu1 %v4141_v62  ;;  %v4117_v2 = vunpack.c.h.bf16 %v4163_v49  ;;  %v4112_v5 = vunpack.c.l.bf16 %v4162_v40 }
 0x950   :  { %4438 = vmatprep.subr.mxu0 %v4104_v33  ;;  %4935 = vmatprep.subr.mxu1 %v7272_v12  ;;  %v4113_v33 = vunpack.c.h.bf16 %v4162_v40 }
 0x951   :  { %4439 = vmatpush3.msra.mxu0 %v4072_v52  ;;  %4936 = vmatpush3.msra.mxu1 %v4140_v41  ;;  %v3421_v52 = vsub.s32 4, %v7414_v38 }
 0x952   :  { %4440 = vmatprep.subr.mxu0 %v4101_v10  ;;  %4937 = vmatprep.subr.mxu1 %v7272_v12 }
 0x953   :  { %4441 = vmatpush3.msra.mxu0 %v4069_v6  ;;  %4938 = vmatpush3.msra.mxu1 %v4137_v61  ;;  %v3422_v10 = vrot.slane %v6981_v47, %v3421_v52  ;;  %v3426_v6 = vrot.slane %v6987_v20, %v3421_v52 }
 0x954   :  { %4442 = vmatprep.subr.mxu0 %v4100_v26  ;;  %4939 = vmatprep.subr.mxu1 %v7272_v12 }
 0x955   :  { %4443 = vmatpush3.msra.mxu0 %v4068_v63  ;;  %4940 = vmatpush3.msra.mxu1 %v4136_v50 }
 0x956   :  { %4444 = vmatprep.subr.mxu0 %v4097_v19  ;;  %4941 = vmatprep.subr.mxu1 %v7272_v12 }
 0x957   :  { %4445 = vmatpush3.msra.mxu0 %v4065_v58  ;;  %4942 = vmatpush3.msra.mxu1 %v4133_v0 }
 0x958   :  { %4446 = vmatprep.subr.mxu0 %v4096_v31  ;;  %4943 = vmatprep.subr.mxu1 %v7272_v12 }
 0x959   :  { %4447 = vmatpush3.msra.mxu0 %v4064_v34  ;;  %4944 = vmatpush3.msra.mxu1 %v4132_v30 }
 0x95a   :  { %4448 = vmatprep.subr.mxu0 %v4093_v9  ;;  %4945 = vmatprep.subr.mxu1 %v7272_v12  ;;  %v3430_v9 = vrot.slane %v6975_v39, %v3421_v52 }
 0x95b   :  { %4449 = vmatpush3.msra.mxu0 %v4061_v44  ;;  %4946 = vmatpush3.msra.mxu1 %v4129_v57 }
 0x95c   :  { %4450 = vmatprep.subr.mxu0 %v4092_v51  ;;  %4947 = vmatprep.subr.mxu1 %v7272_v12 }
 0x95d   :  { %4451 = vmatpush3.msra.mxu0 %v4060_v59  ;;  %4948 = vmatpush3.msra.mxu1 %v4128_v54 }
 0x95e   :  { %4452 = vmatprep.subr.mxu0 %v4089_v42  ;;  %4949 = vmatprep.subr.mxu1 %v7272_v12 }
 0x95f   :  { %4453 = vmatpush3.msra.mxu0 %v4057_v32  ;;  %4950 = vmatpush3.msra.mxu1 %v4125_v56 }
 0x960   :  { %4454 = vmatprep.subr.mxu0 %v4088_v7  ;;  %4951 = vmatprep.subr.mxu1 %v7272_v12  ;;  %v3814_v7 = vsub.s32 5, %v7414_v38 }
 0x961   :  { %4455 = vmatpush3.msra.mxu0 %v4056_v45  ;;  %4952 = vmatpush3.msra.mxu1 %v4124_v11 }
 0x962   :  { %4456 = vmatprep.subr.mxu0 %v4085_v55  ;;  %4953 = vmatprep.subr.mxu1 %v7272_v12  ;;  %v3815_v23 = vrot.slane %v6981_v47, %v3814_v7 }
 0x963   :  { %4457 = vmatpush3.msra.mxu0 %v4053_v13  ;;  %4954 = vmatpush3.msra.mxu1 %v4121_v1 }
 0x964   :  { %4458 = vmatprep.subr.mxu0 %v4084_v18  ;;  %4955 = vmatprep.subr.mxu1 %v7272_v12 }
 0x965   :  { %4459 = vmatpush3.msra.mxu0 %v4052_v35  ;;  %4956 = vmatpush3.msra.mxu1 %v4120_v29 }
 0x966   :  { %4460 = vmatprep.subr.mxu0 %v4081_v53  ;;  %4957 = vmatprep.subr.mxu1 %v7272_v12 }
 0x967   :  { %4461 = vmatpush3.msra.mxu0 %v4049_v60  ;;  %4958 = vmatpush3.msra.mxu1 %v4117_v2 }
 0x968   :  { %4462 = vmatprep.subr.mxu0 %v4080_v21  ;;  %4959 = vmatprep.subr.mxu1 %v7272_v12 }
 0x969   :  { %4463 = vmatpush3.msra.mxu0 %v4048_v43  ;;  %4960 = vmatpush3.msra.mxu1 %v4116_v37 }
 0x96a   :  { %4961 = vmatprep.subr.mxu1 %v7272_v12 }
 0x96b   :  { %4962 = vmatpush3.msra.mxu1 %v4113_v33 }
 0x96c   :  { %4963 = vmatprep.subr.mxu1 %v7272_v12 }
 0x96d   :  { %4964 = vmatpush3.msra.mxu1 %v4112_v5 }
 0x9e8   :  { %v3568_v24 = vpop.f32.mrf.mxu0 }
 0x9ea   :  { %v3570_v58 = vpop.f32.mrf.mxu0 }
 0x9ec   :  { %v3497_v26 = vpop.f32.mrf.mxu1 }
 0x9ed   :  { %v3498_v4 = vadd.f32 %v3497_v26, %v3422_v10 }
 0x9ee   :  { %v3499_v63 = vpop.f32.mrf.mxu1 }
 0x9ef   :  { %v3500_v19 = vadd.f32 %v3499_v63, %v3426_v6  ;;  %v3569_v15 = vadd.f32 %v3568_v24, %v3498_v4 }
 0x9f1   :  { %v3571_v31 = vadd.f32 %v3570_v58, %v3500_v19  ;;  %v3713_v34 = vmax.f32 %v3569_v15, 0.0 }
 0x9f3   :  { %v3714_v17 = vmax.f32 %v3571_v31, 0.0 }
 0x9f5   :  { %3880 = vmatprep.mubr.f32.mxu0 %v3714_v17 }
 0x9f6   :  { %3881 = vmatmul.mubr.f32.vlgmr.msra.gmra.mxu0 %v3713_v34 }
 0xa08   :  { %v4412_v12 = vpop.f32.mrf.mxu0 }
 0xa0a   :  { %v4413_v44 = vpop.f32.mrf.mxu0 }
 0xa0b   :  { %v4414_v51 = vadd.f32 %v4413_v44, %v4412_v12 }
 0xa0c   :  { %v3709_v59 = vpop.f32.mrf.mxu1 }
 0xa0d   :  { %v3640_v36 = vadd.f32 %v4414_v51, %v3430_v9 }
 0xa0e   :  { %v4932_v20 = vpop.f32.mrf.mxu1 }
 0xa0f   :  { %v3710_v42 = vadd.f32 %v3709_v59, %v3640_v36 }
 0xa11   :  { %v3715_v8 = vmax.f32 %v3710_v42, 0.0 }
 0xa13   :  { %4966 = vmatmul.mubr.f32.vlgmr.msra.gmra.mxu1 %v3715_v8 }
 0xab6   :  { %v4464_v32 = vpop.f32.mrf.mxu0 }
 0xab8   :  { %v4465_v45 = vpop.f32.mrf.mxu0 }
 0xab9   :  { %v4466_v28 = vadd.f32 %v4465_v45, %v4464_v32 }
 0xabb   :  { %v3883_v46 = vadd.f32 %v4466_v28, %v3815_v23 }
 0xad3   :  { %v3952_v55 = vpop.f32.mrf.mxu1 }
 0xad4   :  { %v3953_v13 = vadd.f32 %v3952_v55, %v3883_v46 }
 0xad5   :  { %v4967_v18 = vpop.f32.mrf.mxu1 }
 0xad6   :  { %3956 = vst [vmem:[%s7056_s8] sm:$0xff] %v3953_v13 }
 0xad7   :  { %3961 = vsyncpa [#allocation3], 1 }
 0xad8   :  { %3962 = vsyncpa [#allocation5], 1 }
 0xad9   :  { %3963 = vsyncpa [#allocation8], 1 }

</bundles_post_ra>
